<compile_context>
chip_gen: v5e
topology: v5e:2x2
jax: 0.10.0
libtpu: 0.0.40
codegen_flags: <defaults>
</compile_context>

<pallas_src>
import numpy as np

import jax
import jax.numpy as jnp
from jax.experimental import pallas as pl
from jax.experimental.pallas import tpu as pltpu

# ----------------------------------------------------------------------------
# Static configuration
# ----------------------------------------------------------------------------
LATENT = 16
H0, W0 = 32, 8          # input spatial
H1, W1 = 15, 3          # after conv1 (3x3, stride 2)
H2, W2 = 7, 1           # after conv2 (3x3, stride 2)
P0 = H0 * W0            # 256
P1 = H1 * W1            # 45
P2N = H2 * W2           # 7
FLAT = 32 * P2N         # 224 (hard-coded in the PyTorch module)

# weight-slab row offsets (all multiples of 8 -> tile-aligned in-kernel slices)
W1M_OFF, W1M_ROWS = 0, 16
W2V_OFF, W2V_ROWS = 16, 288
WHV_OFF, WHV_ROWS = 304, 224
WL2V_OFF, WL2V_ROWS = 528, 224
WT1V_OFF, WT1V_ROWS = 752, 144
WT2V_OFF, WT2V_ROWS = 896, 9
WSLAB_ROWS, WSLAB_COLS = 912, 32

# bias-slab row offsets
B1_OFF, B2_OFF, BH_OFF, BD1_OFF, BD2_OFF, BDEC_OFF = 0, 16, 48, 80, 96, 104
BSLAB_ROWS, BSLAB_COLS = 136, 8


# ----------------------------------------------------------------------------
# Per-sample 0/1 selection matrices (numpy, depend only on static shapes)
# ----------------------------------------------------------------------------
def _conv_select(h, w, k, s, oh, ow):
    """Gather: tap t=(i,j) of a VALID conv picks input (s*r+i, s*c+j)."""
    p = np.zeros((k * k, h * w, oh * ow), np.float32)
    for i in range(k):
        for j in range(k):
            t = i * k + j
            for r in range(oh):
                for c in range(ow):
                    p[t, (s * r + i) * w + (s * c + j), r * ow + c] = 1.0
    return p


def _convT_scatter(h, w, k, s, oh, ow):
    """Scatter: ConvTranspose2d input (r, c) adds into output (s*r+i, s*c+j)."""
    p = np.zeros((k * k, h * w, oh * ow), np.float32)
    for i in range(k):
        for j in range(k):
            t = i * k + j
            for r in range(h):
                for c in range(w):
                    p[t, r * w + c, (s * r + i) * ow + (s * c + j)] = 1.0
    return p


# ----------------------------------------------------------------------------
# The fused per-sample Pallas kernel (one grid step = one batch element)
# ----------------------------------------------------------------------------
def _ae_kernel(patches_ref, eps_ref, wslab_ref, bslab_ref,
               p2_ref, p2t_ref, p1t_ref, recon_ref, heads_ref):
    f32 = jnp.float32
    bf16 = jnp.bfloat16

    def mm(a, b):  # bf16 MXU matmul, f32 accumulation
        return jax.lax.dot_general(a.astype(bf16), b.astype(bf16),
                                   (((1,), (0,)), ((), ())),
                                   preferred_element_type=f32)

    # ---- biases (f32) ----
    b1 = bslab_ref[B1_OFF:B1_OFF + 16, 0:1]
    b2 = bslab_ref[B2_OFF:B2_OFF + 32, 0:1]
    bh = bslab_ref[BH_OFF:BH_OFF + 32, 0:1]
    bd1 = bslab_ref[BD1_OFF:BD1_OFF + 16, 0:1]
    bd2 = bslab_ref[BD2_OFF:BD2_OFF + 1, 0:1]
    bdec = bslab_ref[BDEC_OFF:BDEC_OFF + 32, 0:P2N]

    # ---- encoder conv1 (3x3 s2): one matmul over the 9 pre-gathered taps ----
    w1m = wslab_ref[W1M_OFF:W1M_OFF + W1M_ROWS, 0:9]
    a1 = jnp.maximum(mm(w1m, patches_ref[...]) + b1, 0.0)          # (16, 45)

    # ---- encoder conv2: ONE stacked channel mix, then 9 tap-gather matmuls ----
    w2v = wslab_ref[W2V_OFF:W2V_OFF + W2V_ROWS, 0:16]              # (288, 16)
    mixes = mm(w2v, a1)                                            # (288, 45)
    acc = None
    for t in range(9):
        part = mm(mixes[32 * t:32 * t + 32, :], p2_ref[t])         # (32, 7)
        acc = part if acc is None else acc + part
    a2 = jnp.maximum(acc + b2, 0.0)                                # (32, 7)

    # ---- fused mean/logvar heads: ONE matmul + diagonal-mask reduction ----
    whv = wslab_ref[WHV_OFF:WHV_OFF + WHV_ROWS, 0:32]              # (224, 32)
    u = mm(whv, a2)                                                # (224, 7)
    r_idx = jax.lax.broadcasted_iota(jnp.int32, (FLAT, P2N), 0)
    l_idx = jax.lax.broadcasted_iota(jnp.int32, (FLAT, P2N), 1)
    d = r_idx - 32 * l_idx
    u = jnp.where((d >= 0) & (d < 32), u, 0.0)                     # keep U[32h+o, h]
    uv = jnp.sum(u, axis=1, keepdims=True)                         # (224, 1)
    heads = bh
    for h in range(P2N):
        heads = heads + uv[32 * h:32 * h + 32, :]                  # (32, 1)
    heads_ref[...] = heads                                         # rows 0:16 mean, 16:32 logvar

    mean = heads[0:LATENT, :]
    logvar = heads[LATENT:2 * LATENT, :]
    # Mirrors the module exactly: z = mean + logvar * epsilon (no exp of logvar).
    z = mean + logvar * eps_ref[...]                               # (16, 1)

    # ---- linear2 -> decoder input (32, 7): ONE matmul + lane-select assembly ----
    wl2v = wslab_ref[WL2V_OFF:WL2V_OFF + WL2V_ROWS, 0:16]          # (224, 16)
    decv = mm(wl2v, z)                                             # (224, 1), rows 32h+c
    lane = jax.lax.broadcasted_iota(jnp.int32, (32, P2N), 1)
    dec = bdec
    for h in range(P2N):
        dec = dec + (lane == h).astype(f32) * decv[32 * h:32 * h + 32, :]

    # ---- decoder convT1 (3x3 s2): ONE stacked mix, then 9 tap-scatter matmuls ----
    wt1v = wslab_ref[WT1V_OFF:WT1V_OFF + WT1V_ROWS, 0:32]          # (144, 32)
    mixes1 = mm(wt1v, dec)                                         # (144, 7)
    acc = None
    for t in range(9):
        part = mm(mixes1[16 * t:16 * t + 16, :], p2t_ref[t])       # (16, 45)
        acc = part if acc is None else acc + part
    a3 = jnp.maximum(acc + bd1, 0.0)                               # (16, 45)

    # ---- decoder convT2 (3x3 s2, output_padding 1): per-tap mix + scatter ----
    acc = None
    for t in range(9):
        row = mm(wslab_ref[WT2V_OFF + t:WT2V_OFF + t + 1, 0:16], a3)   # (1, 45)
        part = mm(row, p1t_ref[t])                                     # (1, 256)
        acc = part if acc is None else acc + part
    recon_ref[...] = acc + bd2                                     # lane-dense (1, 256) store


# ----------------------------------------------------------------------------
# One-time parameter / constant preparation (outside the per-call hot path)
# ----------------------------------------------------------------------------
def prepare_params(params):
    f = np.float32
    w1m = np.asarray(params["w_e1"], f).reshape(16, 9)
    w2v = np.asarray(params["w_e2"], f).transpose(2, 3, 0, 1).reshape(W2V_ROWS, 16)
    w_heads = np.concatenate([np.asarray(params["w_mean"], f),
                              np.asarray(params["w_logvar"], f)], axis=1)       # (224, 32)
    whv = w_heads.reshape(32, P2N, 2 * LATENT).transpose(1, 2, 0).reshape(WHV_ROWS, 32)
    wl2v = (np.asarray(params["w_lin2"], f).reshape(LATENT, 32, P2N)
            .transpose(2, 1, 0).reshape(WL2V_ROWS, LATENT))
    wt1v = np.asarray(params["w_d1"], f).transpose(2, 3, 1, 0).reshape(WT1V_ROWS, 32)
    wt2v = np.asarray(params["w_d2"], f).transpose(2, 3, 1, 0).reshape(WT2V_ROWS, 16)

    wslab = np.zeros((WSLAB_ROWS, WSLAB_COLS), f)
    wslab[W1M_OFF:W1M_OFF + W1M_ROWS, 0:9] = w1m
    wslab[W2V_OFF:W2V_OFF + W2V_ROWS, 0:16] = w2v
    wslab[WHV_OFF:WHV_OFF + WHV_ROWS, 0:32] = whv
    wslab[WL2V_OFF:WL2V_OFF + WL2V_ROWS, 0:16] = wl2v
    wslab[WT1V_OFF:WT1V_OFF + WT1V_ROWS, 0:32] = wt1v
    wslab[WT2V_OFF:WT2V_OFF + WT2V_ROWS, 0:16] = wt2v

    bslab = np.zeros((BSLAB_ROWS, BSLAB_COLS), f)
    bslab[B1_OFF:B1_OFF + 16, 0] = np.asarray(params["b_e1"], f)
    bslab[B2_OFF:B2_OFF + 32, 0] = np.asarray(params["b_e2"], f)
    bslab[BH_OFF:BH_OFF + 32, 0] = np.concatenate(
        [np.asarray(params["b_mean"], f), np.asarray(params["b_logvar"], f)])
    bslab[BD1_OFF:BD1_OFF + 16, 0] = np.asarray(params["b_d1"], f)
    bslab[BD2_OFF, 0] = np.asarray(params["b_d2"], f)[0]
    bslab[BDEC_OFF:BDEC_OFF + 32, 0:P2N] = np.asarray(params["b_lin2"], f).reshape(32, P2N)

    p2 = _conv_select(H1, W1, 3, 2, H2, W2)            # (9, 45, 7)   per-sample
    p2t = p2.transpose(0, 2, 1)                        # (9, 7, 45)
    p1t = _convT_scatter(H1, W1, 3, 2, H0, W0)         # (9, 45, 256)

    return dict(
        wslab=jnp.asarray(wslab, jnp.bfloat16),        # 0/1 and weights exact-ish in bf16
        bslab=jnp.asarray(bslab, jnp.float32),         # biases kept f32
        p2=jnp.asarray(p2, jnp.bfloat16),
        p2t=jnp.asarray(p2t, jnp.bfloat16),
        p1t=jnp.asarray(p1t, jnp.bfloat16),
    )


def _im2col_input(x):
    """(N,1,32,8) -> (N, 9, 45) bf16: im2col of the input for the stride-2 3x3 conv1."""
    n = x.shape[0]
    cols = []
    for i in range(3):
        for j in range(3):
            cols.append(
                x[:, 0, i:i + 2 * (H1 - 1) + 1:2, j:j + 2 * (W1 - 1) + 1:2].reshape(n, P1))
    return jnp.stack(cols, axis=1).astype(jnp.bfloat16)


# ----------------------------------------------------------------------------
# Forward pass (matches the PyTorch module's forward())
# ----------------------------------------------------------------------------
@jax.jit
def autoencoder_forward(prepped, x, eps):
    n = x.shape[0]
    patches = _im2col_input(x)                                     # (n, 9, 45) bf16
    eps_col = eps.reshape(n, LATENT, 1).astype(jnp.float32)        # (n, 16, 1)

    recon_flat, heads = pl.pallas_call(
        _ae_kernel,
        out_shape=(
            jax.ShapeDtypeStruct((n, 1, P0), jnp.float32),         # lane-dense recon rows
            jax.ShapeDtypeStruct((n, 2 * LATENT, 1), jnp.float32),  # [mean; logvar] columns
        ),
        grid_spec=pltpu.PrefetchScalarGridSpec(
            num_scalar_prefetch=0,
            grid=(n,),
            in_specs=[
                pl.BlockSpec((None, 9, P1), lambda b: (b, 0, 0)),       # patches (per sample)
                pl.BlockSpec((None, LATENT, 1), lambda b: (b, 0, 0)),   # eps     (per sample)
                pl.BlockSpec((WSLAB_ROWS, WSLAB_COLS), lambda b: (0, 0)),
                pl.BlockSpec((BSLAB_ROWS, BSLAB_COLS), lambda b: (0, 0)),
                pl.BlockSpec((9, P1, P2N), lambda b: (0, 0, 0)),
                pl.BlockSpec((9, P2N, P1), lambda b: (0, 0, 0)),
                pl.BlockSpec((9, P1, P0), lambda b: (0, 0, 0)),
            ],
            out_specs=(
                pl.BlockSpec((None, 1, P0), lambda b: (b, 0, 0)),
                pl.BlockSpec((None, 2 * LATENT, 1), lambda b: (b, 0, 0)),
            ),
        ),
        compiler_params=pltpu.CompilerParams(dimension_semantics=("parallel",)),
    )(patches, eps_col, prepped["wslab"], prepped["bslab"],
      prepped["p2"], prepped["p2t"], prepped["p1t"])

    recon = recon_flat.reshape(n, 1, H0, W0)
    mean = heads[:, :LATENT, 0]
    logvar = heads[:, LATENT:, 0]
    return recon, mean, logvar


# ----------------------------------------------------------------------------
# Parameters and a pure-JAX reference (for a numerical self-check)
# ----------------------------------------------------------------------------
def init_params(key):
    def nrm(k, shape, scale=0.1):
        return scale * jax.random.normal(k, shape, dtype=jnp.float32)

    ks = jax.random.split(key, 14)
    return dict(
        w_e1=nrm(ks[0], (16, 1, 3, 3)), b_e1=nrm(ks[1], (16,)),
        w_e2=nrm(ks[2], (32, 16, 3, 3)), b_e2=nrm(ks[3], (32,)),
        w_mean=nrm(ks[4], (FLAT, LATENT)), b_mean=nrm(ks[5], (LATENT,)),
        w_logvar=nrm(ks[6], (FLAT, LATENT)), b_logvar=nrm(ks[7], (LATENT,)),
        w_lin2=nrm(ks[8], (LATENT, FLAT)), b_lin2=nrm(ks[9], (FLAT,)),
        w_d1=nrm(ks[10], (32, 16, 3, 3)), b_d1=nrm(ks[11], (16,)),   # (in, out, kh, kw)
        w_d2=nrm(ks[12], (16, 1, 3, 3)), b_d2=nrm(ks[13], (1,)),
    )


def reference_forward(params, x, eps):
    dn = ("NCHW", "OIHW", "NCHW")

    def conv(v, w, b, s):
        y = jax.lax.conv_general_dilated(v, w, (s, s), "VALID", dimension_numbers=dn)
        return y + b.reshape(1, -1, 1, 1)

    def convT(v, w, b, s, op):
        wf = jnp.flip(w, (2, 3)).transpose(1, 0, 2, 3)
        kh, kw = w.shape[2], w.shape[3]
        y = jax.lax.conv_general_dilated(
            v, wf, (1, 1), [(kh - 1, kh - 1 + op), (kw - 1, kw - 1 + op)],
            lhs_dilation=(s, s), dimension_numbers=dn)
        return y + b.reshape(1, -1, 1, 1)

    h = jax.nn.relu(conv(x, params["w_e1"], params["b_e1"], 2))
    h = jax.nn.relu(conv(h, params["w_e2"], params["b_e2"], 2))
    flat = h.reshape(h.shape[0], -1)
    mean = flat @ params["w_mean"] + params["b_mean"]
    logvar = flat @ params["w_logvar"] + params["b_logvar"]
    z = mean + logvar * eps
    dec = (z @ params["w_lin2"] + params["b_lin2"]).reshape(h.shape)
    d = jax.nn.relu(convT(dec, params["w_d1"], params["b_d1"], 2, 0))
    out = convT(d, params["w_d2"], params["b_d2"], 2, 1)
    return out, mean, logvar


if __name__ == "__main__":
    key = jax.random.PRNGKey(0)
    kp, kx, ke = jax.random.split(key, 3)
    n = 2

    params = init_params(kp)
    x = jax.random.normal(kx, (n, 1, H0, W0), dtype=jnp.float32)
    # epsilon is an explicit input (deterministic stand-in for torch.randn_like).
    eps = jax.random.normal(ke, (n, LATENT), dtype=jnp.float32)

    prepped = prepare_params(params)            # one-time weight/constant layout prep
    recon, mean, logvar = autoencoder_forward(prepped, x, eps)
    jax.block_until_ready((recon, mean, logvar))

    assert recon.shape == (n, 1, H0, W0)
    assert mean.shape == (n, LATENT) and logvar.shape == (n, LATENT)

    # Numerical self-check against a pure-JAX f32 reference of the same module.
    # (bf16 matmul operands with f32 accumulation -> slightly relaxed atol.)
    r_ref, m_ref, lv_ref = reference_forward(params, x, eps)
    for got, ref in ((recon, r_ref), (mean, m_ref), (logvar, lv_ref)):
        err = float(jnp.max(jnp.abs(got - ref)))
        assert jnp.allclose(got, ref, rtol=5e-2, atol=2e-2), err

    print("KERNEL_OK")
</pallas_src>

<mosaic_0001>
module attributes {stable_mosaic.version = 11 : i64} {
  func.func @_ae_kernel(%arg0: i32, %arg1: memref<1x9x45xbf16, #tpu.memory_space<vmem>>, %arg2: memref<1x16x1xf32, #tpu.memory_space<vmem>>, %arg3: memref<912x32xbf16, #tpu.memory_space<vmem>>, %arg4: memref<136x8xf32, #tpu.memory_space<vmem>>, %arg5: memref<9x45x7xbf16, #tpu.memory_space<vmem>>, %arg6: memref<9x7x45xbf16, #tpu.memory_space<vmem>>, %arg7: memref<9x45x256xbf16, #tpu.memory_space<vmem>>, %arg8: memref<1x1x256xf32, #tpu.memory_space<vmem>>, %arg9: memref<1x32x1xf32, #tpu.memory_space<vmem>>) attributes {dimension_semantics = [#tpu.dimension_semantics<parallel>], iteration_bounds = array<i64: 2>, scalar_prefetch = 0 : i64, scratch_operands = 0 : i64, tpu.core_type = #tpu.core_type<tc>, window_params = [{transform_indices = @transform_0, window_bounds = array<i64: 1, 9, 45>}, {transform_indices = @transform_1, window_bounds = array<i64: 1, 16, 1>}, {pipeline_mode = #tpu.pipeline_mode<synchronous>, transform_indices = @transform_2, window_bounds = array<i64: 912, 32>}, {pipeline_mode = #tpu.pipeline_mode<synchronous>, transform_indices = @transform_3, window_bounds = array<i64: 136, 8>}, {pipeline_mode = #tpu.pipeline_mode<synchronous>, transform_indices = @transform_4, window_bounds = array<i64: 9, 45, 7>}, {pipeline_mode = #tpu.pipeline_mode<synchronous>, transform_indices = @transform_5, window_bounds = array<i64: 9, 7, 45>}, {pipeline_mode = #tpu.pipeline_mode<synchronous>, transform_indices = @transform_6, window_bounds = array<i64: 9, 45, 256>}, {transform_indices = @transform_7, window_bounds = array<i64: 1, 1, 256>}, {transform_indices = @transform_8, window_bounds = array<i64: 1, 32, 1>}]} {
    %c0 = arith.constant 0 : index
    %c0_0 = arith.constant 0 : index
    %0 = vector.load %arg4[%c0, %c0_0] : memref<136x8xf32, #tpu.memory_space<vmem>>, vector<16x1xf32>
    %c16 = arith.constant 16 : index
    %c0_1 = arith.constant 0 : index
    %1 = vector.load %arg4[%c16, %c0_1] : memref<136x8xf32, #tpu.memory_space<vmem>>, vector<32x1xf32>
    %c48 = arith.constant 48 : index
    %c0_2 = arith.constant 0 : index
    %2 = vector.load %arg4[%c48, %c0_2] : memref<136x8xf32, #tpu.memory_space<vmem>>, vector<32x1xf32>
    %c80 = arith.constant 80 : index
    %c0_3 = arith.constant 0 : index
    %3 = vector.load %arg4[%c80, %c0_3] : memref<136x8xf32, #tpu.memory_space<vmem>>, vector<16x1xf32>
    %c96 = arith.constant 96 : index
    %c0_4 = arith.constant 0 : index
    %4 = vector.load %arg4[%c96, %c0_4] : memref<136x8xf32, #tpu.memory_space<vmem>>, vector<1x1xf32>
    %c104 = arith.constant 104 : index
    %c0_5 = arith.constant 0 : index
    %5 = vector.load %arg4[%c104, %c0_5] : memref<136x8xf32, #tpu.memory_space<vmem>>, vector<32x7xf32>
    %c0_6 = arith.constant 0 : index
    %c0_7 = arith.constant 0 : index
    %6 = vector.load %arg3[%c0_6, %c0_7] : memref<912x32xbf16, #tpu.memory_space<vmem>>, vector<16x9xbf16>
    %c0_8 = arith.constant 0 : index
    %c0_9 = arith.constant 0 : index
    %c0_10 = arith.constant 0 : index
    %7 = vector.load %arg1[%c0_8, %c0_9, %c0_10] : memref<1x9x45xbf16, #tpu.memory_space<vmem>>, vector<1x9x45xbf16>
    %8 = vector.shape_cast %7 : vector<1x9x45xbf16> to vector<9x45xbf16>
    %cst = arith.constant dense<0.000000e+00> : vector<16x45xf32>
    %9 = tpu.matmul %6, %8, %cst {dimension_numbers = #tpu.dot_dimension_numbers<[1], [0], [0], [1], [0, 0, 1, 1], [], []>} : vector<16x9xbf16>, vector<9x45xbf16>, vector<16x45xf32> -> vector<16x45xf32>
    %10 = vector.broadcast %0 : vector<16x1xf32> to vector<16x45xf32>
    %11 = arith.addf %9, %10 : vector<16x45xf32>
    %cst_11 = arith.constant 0.000000e+00 : f32
    %12 = vector.broadcast %cst_11 : f32 to vector<16x45xf32>
    %13 = arith.maximumf %11, %12 : vector<16x45xf32>
    %c16_12 = arith.constant 16 : index
    %c0_13 = arith.constant 0 : index
    %14 = vector.load %arg3[%c16_12, %c0_13] : memref<912x32xbf16, #tpu.memory_space<vmem>>, vector<288x16xbf16>
    %15 = arith.truncf %13 : vector<16x45xf32> to vector<16x45xbf16>
    %cst_14 = arith.constant dense<0.000000e+00> : vector<288x45xf32>
    %16 = tpu.matmul %14, %15, %cst_14 {dimension_numbers = #tpu.dot_dimension_numbers<[1], [0], [0], [1], [0, 0, 1, 1], [], []>} : vector<288x16xbf16>, vector<16x45xbf16>, vector<288x45xf32> -> vector<288x45xf32>
    %17 = vector.extract_strided_slice %16 {offsets = [0, 0], sizes = [32, 45], strides = [1, 1]} : vector<288x45xf32> to vector<32x45xf32>
    %c0_15 = arith.constant 0 : index
    %c0_16 = arith.constant 0 : index
    %c0_17 = arith.constant 0 : index
    %18 = vector.load %arg5[%c0_15, %c0_16, %c0_17] : memref<9x45x7xbf16, #tpu.memory_space<vmem>>, vector<1x45x7xbf16>
    %19 = vector.shape_cast %18 : vector<1x45x7xbf16> to vector<45x7xbf16>
    %20 = arith.truncf %17 : vector<32x45xf32> to vector<32x45xbf16>
    %cst_18 = arith.constant dense<0.000000e+00> : vector<32x7xf32>
    %21 = tpu.matmul %20, %19, %cst_18 {dimension_numbers = #tpu.dot_dimension_numbers<[1], [0], [0], [1], [0, 0, 1, 1], [], []>} : vector<32x45xbf16>, vector<45x7xbf16>, vector<32x7xf32> -> vector<32x7xf32>
    %22 = vector.extract_strided_slice %16 {offsets = [32, 0], sizes = [32, 45], strides = [1, 1]} : vector<288x45xf32> to vector<32x45xf32>
    %c1 = arith.constant 1 : index
    %c0_19 = arith.constant 0 : index
    %c0_20 = arith.constant 0 : index
    %23 = vector.load %arg5[%c1, %c0_19, %c0_20] : memref<9x45x7xbf16, #tpu.memory_space<vmem>>, vector<1x45x7xbf16>
    %24 = vector.shape_cast %23 : vector<1x45x7xbf16> to vector<45x7xbf16>
    %25 = arith.truncf %22 : vector<32x45xf32> to vector<32x45xbf16>
    %cst_21 = arith.constant dense<0.000000e+00> : vector<32x7xf32>
    %26 = tpu.matmul %25, %24, %cst_21 {dimension_numbers = #tpu.dot_dimension_numbers<[1], [0], [0], [1], [0, 0, 1, 1], [], []>} : vector<32x45xbf16>, vector<45x7xbf16>, vector<32x7xf32> -> vector<32x7xf32>
    %27 = arith.addf %21, %26 : vector<32x7xf32>
    %28 = vector.extract_strided_slice %16 {offsets = [64, 0], sizes = [32, 45], strides = [1, 1]} : vector<288x45xf32> to vector<32x45xf32>
    %c2 = arith.constant 2 : index
    %c0_22 = arith.constant 0 : index
    %c0_23 = arith.constant 0 : index
    %29 = vector.load %arg5[%c2, %c0_22, %c0_23] : memref<9x45x7xbf16, #tpu.memory_space<vmem>>, vector<1x45x7xbf16>
    %30 = vector.shape_cast %29 : vector<1x45x7xbf16> to vector<45x7xbf16>
    %31 = arith.truncf %28 : vector<32x45xf32> to vector<32x45xbf16>
    %cst_24 = arith.constant dense<0.000000e+00> : vector<32x7xf32>
    %32 = tpu.matmul %31, %30, %cst_24 {dimension_numbers = #tpu.dot_dimension_numbers<[1], [0], [0], [1], [0, 0, 1, 1], [], []>} : vector<32x45xbf16>, vector<45x7xbf16>, vector<32x7xf32> -> vector<32x7xf32>
    %33 = arith.addf %27, %32 : vector<32x7xf32>
    %34 = vector.extract_strided_slice %16 {offsets = [96, 0], sizes = [32, 45], strides = [1, 1]} : vector<288x45xf32> to vector<32x45xf32>
    %c3 = arith.constant 3 : index
    %c0_25 = arith.constant 0 : index
    %c0_26 = arith.constant 0 : index
    %35 = vector.load %arg5[%c3, %c0_25, %c0_26] : memref<9x45x7xbf16, #tpu.memory_space<vmem>>, vector<1x45x7xbf16>
    %36 = vector.shape_cast %35 : vector<1x45x7xbf16> to vector<45x7xbf16>
    %37 = arith.truncf %34 : vector<32x45xf32> to vector<32x45xbf16>
    %cst_27 = arith.constant dense<0.000000e+00> : vector<32x7xf32>
    %38 = tpu.matmul %37, %36, %cst_27 {dimension_numbers = #tpu.dot_dimension_numbers<[1], [0], [0], [1], [0, 0, 1, 1], [], []>} : vector<32x45xbf16>, vector<45x7xbf16>, vector<32x7xf32> -> vector<32x7xf32>
    %39 = arith.addf %33, %38 : vector<32x7xf32>
    %40 = vector.extract_strided_slice %16 {offsets = [128, 0], sizes = [32, 45], strides = [1, 1]} : vector<288x45xf32> to vector<32x45xf32>
    %c4 = arith.constant 4 : index
    %c0_28 = arith.constant 0 : index
    %c0_29 = arith.constant 0 : index
    %41 = vector.load %arg5[%c4, %c0_28, %c0_29] : memref<9x45x7xbf16, #tpu.memory_space<vmem>>, vector<1x45x7xbf16>
    %42 = vector.shape_cast %41 : vector<1x45x7xbf16> to vector<45x7xbf16>
    %43 = arith.truncf %40 : vector<32x45xf32> to vector<32x45xbf16>
    %cst_30 = arith.constant dense<0.000000e+00> : vector<32x7xf32>
    %44 = tpu.matmul %43, %42, %cst_30 {dimension_numbers = #tpu.dot_dimension_numbers<[1], [0], [0], [1], [0, 0, 1, 1], [], []>} : vector<32x45xbf16>, vector<45x7xbf16>, vector<32x7xf32> -> vector<32x7xf32>
    %45 = arith.addf %39, %44 : vector<32x7xf32>
    %46 = vector.extract_strided_slice %16 {offsets = [160, 0], sizes = [32, 45], strides = [1, 1]} : vector<288x45xf32> to vector<32x45xf32>
    %c5 = arith.constant 5 : index
    %c0_31 = arith.constant 0 : index
    %c0_32 = arith.constant 0 : index
    %47 = vector.load %arg5[%c5, %c0_31, %c0_32] : memref<9x45x7xbf16, #tpu.memory_space<vmem>>, vector<1x45x7xbf16>
    %48 = vector.shape_cast %47 : vector<1x45x7xbf16> to vector<45x7xbf16>
    %49 = arith.truncf %46 : vector<32x45xf32> to vector<32x45xbf16>
    %cst_33 = arith.constant dense<0.000000e+00> : vector<32x7xf32>
    %50 = tpu.matmul %49, %48, %cst_33 {dimension_numbers = #tpu.dot_dimension_numbers<[1], [0], [0], [1], [0, 0, 1, 1], [], []>} : vector<32x45xbf16>, vector<45x7xbf16>, vector<32x7xf32> -> vector<32x7xf32>
    %51 = arith.addf %45, %50 : vector<32x7xf32>
    %52 = vector.extract_strided_slice %16 {offsets = [192, 0], sizes = [32, 45], strides = [1, 1]} : vector<288x45xf32> to vector<32x45xf32>
    %c6 = arith.constant 6 : index
    %c0_34 = arith.constant 0 : index
    %c0_35 = arith.constant 0 : index
    %53 = vector.load %arg5[%c6, %c0_34, %c0_35] : memref<9x45x7xbf16, #tpu.memory_space<vmem>>, vector<1x45x7xbf16>
    %54 = vector.shape_cast %53 : vector<1x45x7xbf16> to vector<45x7xbf16>
    %55 = arith.truncf %52 : vector<32x45xf32> to vector<32x45xbf16>
    %cst_36 = arith.constant dense<0.000000e+00> : vector<32x7xf32>
    %56 = tpu.matmul %55, %54, %cst_36 {dimension_numbers = #tpu.dot_dimension_numbers<[1], [0], [0], [1], [0, 0, 1, 1], [], []>} : vector<32x45xbf16>, vector<45x7xbf16>, vector<32x7xf32> -> vector<32x7xf32>
    %57 = arith.addf %51, %56 : vector<32x7xf32>
    %58 = vector.extract_strided_slice %16 {offsets = [224, 0], sizes = [32, 45], strides = [1, 1]} : vector<288x45xf32> to vector<32x45xf32>
    %c7 = arith.constant 7 : index
    %c0_37 = arith.constant 0 : index
    %c0_38 = arith.constant 0 : index
    %59 = vector.load %arg5[%c7, %c0_37, %c0_38] : memref<9x45x7xbf16, #tpu.memory_space<vmem>>, vector<1x45x7xbf16>
    %60 = vector.shape_cast %59 : vector<1x45x7xbf16> to vector<45x7xbf16>
    %61 = arith.truncf %58 : vector<32x45xf32> to vector<32x45xbf16>
    %cst_39 = arith.constant dense<0.000000e+00> : vector<32x7xf32>
    %62 = tpu.matmul %61, %60, %cst_39 {dimension_numbers = #tpu.dot_dimension_numbers<[1], [0], [0], [1], [0, 0, 1, 1], [], []>} : vector<32x45xbf16>, vector<45x7xbf16>, vector<32x7xf32> -> vector<32x7xf32>
    %63 = arith.addf %57, %62 : vector<32x7xf32>
    %64 = vector.extract_strided_slice %16 {offsets = [256, 0], sizes = [32, 45], strides = [1, 1]} : vector<288x45xf32> to vector<32x45xf32>
    %c8 = arith.constant 8 : index
    %c0_40 = arith.constant 0 : index
    %c0_41 = arith.constant 0 : index
    %65 = vector.load %arg5[%c8, %c0_40, %c0_41] : memref<9x45x7xbf16, #tpu.memory_space<vmem>>, vector<1x45x7xbf16>
    %66 = vector.shape_cast %65 : vector<1x45x7xbf16> to vector<45x7xbf16>
    %67 = arith.truncf %64 : vector<32x45xf32> to vector<32x45xbf16>
    %cst_42 = arith.constant dense<0.000000e+00> : vector<32x7xf32>
    %68 = tpu.matmul %67, %66, %cst_42 {dimension_numbers = #tpu.dot_dimension_numbers<[1], [0], [0], [1], [0, 0, 1, 1], [], []>} : vector<32x45xbf16>, vector<45x7xbf16>, vector<32x7xf32> -> vector<32x7xf32>
    %69 = arith.addf %63, %68 : vector<32x7xf32>
    %70 = vector.broadcast %1 : vector<32x1xf32> to vector<32x7xf32>
    %71 = arith.addf %69, %70 : vector<32x7xf32>
    %cst_43 = arith.constant 0.000000e+00 : f32
    %72 = vector.broadcast %cst_43 : f32 to vector<32x7xf32>
    %73 = arith.maximumf %71, %72 : vector<32x7xf32>
    %c304 = arith.constant 304 : index
    %c0_44 = arith.constant 0 : index
    %74 = vector.load %arg3[%c304, %c0_44] : memref<912x32xbf16, #tpu.memory_space<vmem>>, vector<224x32xbf16>
    %75 = arith.truncf %73 : vector<32x7xf32> to vector<32x7xbf16>
    %cst_45 = arith.constant dense<0.000000e+00> : vector<224x7xf32>
    %76 = tpu.matmul %74, %75, %cst_45 {dimension_numbers = #tpu.dot_dimension_numbers<[1], [0], [0], [1], [0, 0, 1, 1], [], []>} : vector<224x32xbf16>, vector<32x7xbf16>, vector<224x7xf32> -> vector<224x7xf32>
    %77 = tpu.iota {dimensions = array<i32: 0>} : vector<224x7xi32>
    %78 = tpu.iota {dimensions = array<i32: 1>} : vector<224x7xi32>
    %c32_i32 = arith.constant 32 : i32
    %79 = vector.broadcast %c32_i32 : i32 to vector<224x7xi32>
    %80 = arith.muli %79, %78 : vector<224x7xi32>
    %81 = arith.subi %77, %80 : vector<224x7xi32>
    %c0_i32 = arith.constant 0 : i32
    %82 = vector.broadcast %c0_i32 : i32 to vector<224x7xi32>
    %83 = arith.cmpi sge, %81, %82 : vector<224x7xi32>
    %c32_i32_46 = arith.constant 32 : i32
    %84 = vector.broadcast %c32_i32_46 : i32 to vector<224x7xi32>
    %85 = arith.cmpi slt, %81, %84 : vector<224x7xi32>
    %86 = arith.andi %83, %85 : vector<224x7xi1>
    %cst_47 = arith.constant 0.000000e+00 : f32
    %87 = vector.broadcast %cst_47 : f32 to vector<224x7xf32>
    %88 = arith.select %86, %76, %87 : vector<224x7xi1>, vector<224x7xf32>
    %cst_48 = arith.constant dense<0.000000e+00> : vector<224xf32>
    %89 = vector.multi_reduction <add>, %88, %cst_48 [1] : vector<224x7xf32> to vector<224xf32>
    %90 = vector.shape_cast %89 : vector<224xf32> to vector<224x1xf32>
    %91 = vector.extract_strided_slice %90 {offsets = [0, 0], sizes = [32, 1], strides = [1, 1]} : vector<224x1xf32> to vector<32x1xf32>
    %92 = arith.addf %2, %91 : vector<32x1xf32>
    %93 = vector.extract_strided_slice %90 {offsets = [32, 0], sizes = [32, 1], strides = [1, 1]} : vector<224x1xf32> to vector<32x1xf32>
    %94 = arith.addf %92, %93 : vector<32x1xf32>
    %95 = vector.extract_strided_slice %90 {offsets = [64, 0], sizes = [32, 1], strides = [1, 1]} : vector<224x1xf32> to vector<32x1xf32>
    %96 = arith.addf %94, %95 : vector<32x1xf32>
    %97 = vector.extract_strided_slice %90 {offsets = [96, 0], sizes = [32, 1], strides = [1, 1]} : vector<224x1xf32> to vector<32x1xf32>
    %98 = arith.addf %96, %97 : vector<32x1xf32>
    %99 = vector.extract_strided_slice %90 {offsets = [128, 0], sizes = [32, 1], strides = [1, 1]} : vector<224x1xf32> to vector<32x1xf32>
    %100 = arith.addf %98, %99 : vector<32x1xf32>
    %101 = vector.extract_strided_slice %90 {offsets = [160, 0], sizes = [32, 1], strides = [1, 1]} : vector<224x1xf32> to vector<32x1xf32>
    %102 = arith.addf %100, %101 : vector<32x1xf32>
    %103 = vector.extract_strided_slice %90 {offsets = [192, 0], sizes = [32, 1], strides = [1, 1]} : vector<224x1xf32> to vector<32x1xf32>
    %104 = arith.addf %102, %103 : vector<32x1xf32>
    %c0_49 = arith.constant 0 : index
    %c0_50 = arith.constant 0 : index
    %c0_51 = arith.constant 0 : index
    %105 = vector.load %arg9[%c0_49, %c0_50, %c0_51] : memref<1x32x1xf32, #tpu.memory_space<vmem>>, vector<1x32x1xf32>
    %106 = vector.shape_cast %105 : vector<1x32x1xf32> to vector<32x1xf32>
    %107 = vector.shape_cast %104 : vector<32x1xf32> to vector<1x32x1xf32>
    tpu.vector_store %arg9[%c0_49, %c0_50, %c0_51], %107 {strides = array<i32>} : memref<1x32x1xf32, #tpu.memory_space<vmem>>, vector<1x32x1xf32>,
    %108 = vector.extract_strided_slice %104 {offsets = [0, 0], sizes = [16, 1], strides = [1, 1]} : vector<32x1xf32> to vector<16x1xf32>
    %109 = vector.extract_strided_slice %104 {offsets = [16, 0], sizes = [16, 1], strides = [1, 1]} : vector<32x1xf32> to vector<16x1xf32>
    %c0_52 = arith.constant 0 : index
    %c0_53 = arith.constant 0 : index
    %c0_54 = arith.constant 0 : index
    %110 = vector.load %arg2[%c0_52, %c0_53, %c0_54] : memref<1x16x1xf32, #tpu.memory_space<vmem>>, vector<1x16x1xf32>
    %111 = vector.shape_cast %110 : vector<1x16x1xf32> to vector<16x1xf32>
    %112 = arith.mulf %109, %111 : vector<16x1xf32>
    %113 = arith.addf %108, %112 : vector<16x1xf32>
    %c528 = arith.constant 528 : index
    %c0_55 = arith.constant 0 : index
    %114 = vector.load %arg3[%c528, %c0_55] : memref<912x32xbf16, #tpu.memory_space<vmem>>, vector<224x16xbf16>
    %115 = arith.truncf %113 : vector<16x1xf32> to vector<16x1xbf16>
    %cst_56 = arith.constant dense<0.000000e+00> : vector<224x1xf32>
    %116 = tpu.matmul %114, %115, %cst_56 {dimension_numbers = #tpu.dot_dimension_numbers<[1], [0], [0], [1], [0, 0, 1, 1], [], []>} : vector<224x16xbf16>, vector<16x1xbf16>, vector<224x1xf32> -> vector<224x1xf32>
    %117 = tpu.iota {dimensions = array<i32: 1>} : vector<32x7xi32>
    %c0_i32_57 = arith.constant 0 : i32
    %118 = vector.broadcast %c0_i32_57 : i32 to vector<32x7xi32>
    %119 = arith.cmpi eq, %117, %118 : vector<32x7xi32>
    %120 = arith.extui %119 : vector<32x7xi1> to vector<32x7xi32>
    %121 = arith.sitofp %120 : vector<32x7xi32> to vector<32x7xf32>
    %122 = vector.extract_strided_slice %116 {offsets = [0, 0], sizes = [32, 1], strides = [1, 1]} : vector<224x1xf32> to vector<32x1xf32>
    %123 = vector.broadcast %122 : vector<32x1xf32> to vector<32x7xf32>
    %124 = arith.mulf %121, %123 : vector<32x7xf32>
    %125 = arith.addf %5, %124 : vector<32x7xf32>
    %c1_i32 = arith.constant 1 : i32
    %126 = vector.broadcast %c1_i32 : i32 to vector<32x7xi32>
    %127 = arith.cmpi eq, %117, %126 : vector<32x7xi32>
    %128 = arith.extui %127 : vector<32x7xi1> to vector<32x7xi32>
    %129 = arith.sitofp %128 : vector<32x7xi32> to vector<32x7xf32>
    %130 = vector.extract_strided_slice %116 {offsets = [32, 0], sizes = [32, 1], strides = [1, 1]} : vector<224x1xf32> to vector<32x1xf32>
    %131 = vector.broadcast %130 : vector<32x1xf32> to vector<32x7xf32>
    %132 = arith.mulf %129, %131 : vector<32x7xf32>
    %133 = arith.addf %125, %132 : vector<32x7xf32>
    %c2_i32 = arith.constant 2 : i32
    %134 = vector.broadcast %c2_i32 : i32 to vector<32x7xi32>
    %135 = arith.cmpi eq, %117, %134 : vector<32x7xi32>
    %136 = arith.extui %135 : vector<32x7xi1> to vector<32x7xi32>
    %137 = arith.sitofp %136 : vector<32x7xi32> to vector<32x7xf32>
    %138 = vector.extract_strided_slice %116 {offsets = [64, 0], sizes = [32, 1], strides = [1, 1]} : vector<224x1xf32> to vector<32x1xf32>
    %139 = vector.broadcast %138 : vector<32x1xf32> to vector<32x7xf32>
    %140 = arith.mulf %137, %139 : vector<32x7xf32>
    %141 = arith.addf %133, %140 : vector<32x7xf32>
    %c3_i32 = arith.constant 3 : i32
    %142 = vector.broadcast %c3_i32 : i32 to vector<32x7xi32>
    %143 = arith.cmpi eq, %117, %142 : vector<32x7xi32>
    %144 = arith.extui %143 : vector<32x7xi1> to vector<32x7xi32>
    %145 = arith.sitofp %144 : vector<32x7xi32> to vector<32x7xf32>
    %146 = vector.extract_strided_slice %116 {offsets = [96, 0], sizes = [32, 1], strides = [1, 1]} : vector<224x1xf32> to vector<32x1xf32>
    %147 = vector.broadcast %146 : vector<32x1xf32> to vector<32x7xf32>
    %148 = arith.mulf %145, %147 : vector<32x7xf32>
    %149 = arith.addf %141, %148 : vector<32x7xf32>
    %c4_i32 = arith.constant 4 : i32
    %150 = vector.broadcast %c4_i32 : i32 to vector<32x7xi32>
    %151 = arith.cmpi eq, %117, %150 : vector<32x7xi32>
    %152 = arith.extui %151 : vector<32x7xi1> to vector<32x7xi32>
    %153 = arith.sitofp %152 : vector<32x7xi32> to vector<32x7xf32>
    %154 = vector.extract_strided_slice %116 {offsets = [128, 0], sizes = [32, 1], strides = [1, 1]} : vector<224x1xf32> to vector<32x1xf32>
    %155 = vector.broadcast %154 : vector<32x1xf32> to vector<32x7xf32>
    %156 = arith.mulf %153, %155 : vector<32x7xf32>
    %157 = arith.addf %149, %156 : vector<32x7xf32>
    %c5_i32 = arith.constant 5 : i32
    %158 = vector.broadcast %c5_i32 : i32 to vector<32x7xi32>
    %159 = arith.cmpi eq, %117, %158 : vector<32x7xi32>
    %160 = arith.extui %159 : vector<32x7xi1> to vector<32x7xi32>
    %161 = arith.sitofp %160 : vector<32x7xi32> to vector<32x7xf32>
    %162 = vector.extract_strided_slice %116 {offsets = [160, 0], sizes = [32, 1], strides = [1, 1]} : vector<224x1xf32> to vector<32x1xf32>
    %163 = vector.broadcast %162 : vector<32x1xf32> to vector<32x7xf32>
    %164 = arith.mulf %161, %163 : vector<32x7xf32>
    %165 = arith.addf %157, %164 : vector<32x7xf32>
    %c6_i32 = arith.constant 6 : i32
    %166 = vector.broadcast %c6_i32 : i32 to vector<32x7xi32>
    %167 = arith.cmpi eq, %117, %166 : vector<32x7xi32>
    %168 = arith.extui %167 : vector<32x7xi1> to vector<32x7xi32>
    %169 = arith.sitofp %168 : vector<32x7xi32> to vector<32x7xf32>
    %170 = vector.extract_strided_slice %116 {offsets = [192, 0], sizes = [32, 1], strides = [1, 1]} : vector<224x1xf32> to vector<32x1xf32>
    %171 = vector.broadcast %170 : vector<32x1xf32> to vector<32x7xf32>
    %172 = arith.mulf %169, %171 : vector<32x7xf32>
    %173 = arith.addf %165, %172 : vector<32x7xf32>
    %c752 = arith.constant 752 : index
    %c0_58 = arith.constant 0 : index
    %174 = vector.load %arg3[%c752, %c0_58] : memref<912x32xbf16, #tpu.memory_space<vmem>>, vector<144x32xbf16>
    %175 = arith.truncf %173 : vector<32x7xf32> to vector<32x7xbf16>
    %cst_59 = arith.constant dense<0.000000e+00> : vector<144x7xf32>
    %176 = tpu.matmul %174, %175, %cst_59 {dimension_numbers = #tpu.dot_dimension_numbers<[1], [0], [0], [1], [0, 0, 1, 1], [], []>} : vector<144x32xbf16>, vector<32x7xbf16>, vector<144x7xf32> -> vector<144x7xf32>
    %177 = vector.extract_strided_slice %176 {offsets = [0, 0], sizes = [16, 7], strides = [1, 1]} : vector<144x7xf32> to vector<16x7xf32>
    %c0_60 = arith.constant 0 : index
    %c0_61 = arith.constant 0 : index
    %c0_62 = arith.constant 0 : index
    %178 = vector.load %arg6[%c0_60, %c0_61, %c0_62] : memref<9x7x45xbf16, #tpu.memory_space<vmem>>, vector<1x7x45xbf16>
    %179 = vector.shape_cast %178 : vector<1x7x45xbf16> to vector<7x45xbf16>
    %180 = arith.truncf %177 : vector<16x7xf32> to vector<16x7xbf16>
    %cst_63 = arith.constant dense<0.000000e+00> : vector<16x45xf32>
    %181 = tpu.matmul %180, %179, %cst_63 {dimension_numbers = #tpu.dot_dimension_numbers<[1], [0], [0], [1], [0, 0, 1, 1], [], []>} : vector<16x7xbf16>, vector<7x45xbf16>, vector<16x45xf32> -> vector<16x45xf32>
    %182 = vector.extract_strided_slice %176 {offsets = [16, 0], sizes = [16, 7], strides = [1, 1]} : vector<144x7xf32> to vector<16x7xf32>
    %c1_64 = arith.constant 1 : index
    %c0_65 = arith.constant 0 : index
    %c0_66 = arith.constant 0 : index
    %183 = vector.load %arg6[%c1_64, %c0_65, %c0_66] : memref<9x7x45xbf16, #tpu.memory_space<vmem>>, vector<1x7x45xbf16>
    %184 = vector.shape_cast %183 : vector<1x7x45xbf16> to vector<7x45xbf16>
    %185 = arith.truncf %182 : vector<16x7xf32> to vector<16x7xbf16>
    %cst_67 = arith.constant dense<0.000000e+00> : vector<16x45xf32>
    %186 = tpu.matmul %185, %184, %cst_67 {dimension_numbers = #tpu.dot_dimension_numbers<[1], [0], [0], [1], [0, 0, 1, 1], [], []>} : vector<16x7xbf16>, vector<7x45xbf16>, vector<16x45xf32> -> vector<16x45xf32>
    %187 = arith.addf %181, %186 : vector<16x45xf32>
    %188 = vector.extract_strided_slice %176 {offsets = [32, 0], sizes = [16, 7], strides = [1, 1]} : vector<144x7xf32> to vector<16x7xf32>
    %c2_68 = arith.constant 2 : index
    %c0_69 = arith.constant 0 : index
    %c0_70 = arith.constant 0 : index
    %189 = vector.load %arg6[%c2_68, %c0_69, %c0_70] : memref<9x7x45xbf16, #tpu.memory_space<vmem>>, vector<1x7x45xbf16>
    %190 = vector.shape_cast %189 : vector<1x7x45xbf16> to vector<7x45xbf16>
    %191 = arith.truncf %188 : vector<16x7xf32> to vector<16x7xbf16>
    %cst_71 = arith.constant dense<0.000000e+00> : vector<16x45xf32>
    %192 = tpu.matmul %191, %190, %cst_71 {dimension_numbers = #tpu.dot_dimension_numbers<[1], [0], [0], [1], [0, 0, 1, 1], [], []>} : vector<16x7xbf16>, vector<7x45xbf16>, vector<16x45xf32> -> vector<16x45xf32>
    %193 = arith.addf %187, %192 : vector<16x45xf32>
    %194 = vector.extract_strided_slice %176 {offsets = [48, 0], sizes = [16, 7], strides = [1, 1]} : vector<144x7xf32> to vector<16x7xf32>
    %c3_72 = arith.constant 3 : index
    %c0_73 = arith.constant 0 : index
    %c0_74 = arith.constant 0 : index
    %195 = vector.load %arg6[%c3_72, %c0_73, %c0_74] : memref<9x7x45xbf16, #tpu.memory_space<vmem>>, vector<1x7x45xbf16>
    %196 = vector.shape_cast %195 : vector<1x7x45xbf16> to vector<7x45xbf16>
    %197 = arith.truncf %194 : vector<16x7xf32> to vector<16x7xbf16>
    %cst_75 = arith.constant dense<0.000000e+00> : vector<16x45xf32>
    %198 = tpu.matmul %197, %196, %cst_75 {dimension_numbers = #tpu.dot_dimension_numbers<[1], [0], [0], [1], [0, 0, 1, 1], [], []>} : vector<16x7xbf16>, vector<7x45xbf16>, vector<16x45xf32> -> vector<16x45xf32>
    %199 = arith.addf %193, %198 : vector<16x45xf32>
    %200 = vector.extract_strided_slice %176 {offsets = [64, 0], sizes = [16, 7], strides = [1, 1]} : vector<144x7xf32> to vector<16x7xf32>
    %c4_76 = arith.constant 4 : index
    %c0_77 = arith.constant 0 : index
    %c0_78 = arith.constant 0 : index
    %201 = vector.load %arg6[%c4_76, %c0_77, %c0_78] : memref<9x7x45xbf16, #tpu.memory_space<vmem>>, vector<1x7x45xbf16>
    %202 = vector.shape_cast %201 : vector<1x7x45xbf16> to vector<7x45xbf16>
    %203 = arith.truncf %200 : vector<16x7xf32> to vector<16x7xbf16>
    %cst_79 = arith.constant dense<0.000000e+00> : vector<16x45xf32>
    %204 = tpu.matmul %203, %202, %cst_79 {dimension_numbers = #tpu.dot_dimension_numbers<[1], [0], [0], [1], [0, 0, 1, 1], [], []>} : vector<16x7xbf16>, vector<7x45xbf16>, vector<16x45xf32> -> vector<16x45xf32>
    %205 = arith.addf %199, %204 : vector<16x45xf32>
    %206 = vector.extract_strided_slice %176 {offsets = [80, 0], sizes = [16, 7], strides = [1, 1]} : vector<144x7xf32> to vector<16x7xf32>
    %c5_80 = arith.constant 5 : index
    %c0_81 = arith.constant 0 : index
    %c0_82 = arith.constant 0 : index
    %207 = vector.load %arg6[%c5_80, %c0_81, %c0_82] : memref<9x7x45xbf16, #tpu.memory_space<vmem>>, vector<1x7x45xbf16>
    %208 = vector.shape_cast %207 : vector<1x7x45xbf16> to vector<7x45xbf16>
    %209 = arith.truncf %206 : vector<16x7xf32> to vector<16x7xbf16>
    %cst_83 = arith.constant dense<0.000000e+00> : vector<16x45xf32>
    %210 = tpu.matmul %209, %208, %cst_83 {dimension_numbers = #tpu.dot_dimension_numbers<[1], [0], [0], [1], [0, 0, 1, 1], [], []>} : vector<16x7xbf16>, vector<7x45xbf16>, vector<16x45xf32> -> vector<16x45xf32>
    %211 = arith.addf %205, %210 : vector<16x45xf32>
    %212 = vector.extract_strided_slice %176 {offsets = [96, 0], sizes = [16, 7], strides = [1, 1]} : vector<144x7xf32> to vector<16x7xf32>
    %c6_84 = arith.constant 6 : index
    %c0_85 = arith.constant 0 : index
    %c0_86 = arith.constant 0 : index
    %213 = vector.load %arg6[%c6_84, %c0_85, %c0_86] : memref<9x7x45xbf16, #tpu.memory_space<vmem>>, vector<1x7x45xbf16>
    %214 = vector.shape_cast %213 : vector<1x7x45xbf16> to vector<7x45xbf16>
    %215 = arith.truncf %212 : vector<16x7xf32> to vector<16x7xbf16>
    %cst_87 = arith.constant dense<0.000000e+00> : vector<16x45xf32>
    %216 = tpu.matmul %215, %214, %cst_87 {dimension_numbers = #tpu.dot_dimension_numbers<[1], [0], [0], [1], [0, 0, 1, 1], [], []>} : vector<16x7xbf16>, vector<7x45xbf16>, vector<16x45xf32> -> vector<16x45xf32>
    %217 = arith.addf %211, %216 : vector<16x45xf32>
    %218 = vector.extract_strided_slice %176 {offsets = [112, 0], sizes = [16, 7], strides = [1, 1]} : vector<144x7xf32> to vector<16x7xf32>
    %c7_88 = arith.constant 7 : index
    %c0_89 = arith.constant 0 : index
    %c0_90 = arith.constant 0 : index
    %219 = vector.load %arg6[%c7_88, %c0_89, %c0_90] : memref<9x7x45xbf16, #tpu.memory_space<vmem>>, vector<1x7x45xbf16>
    %220 = vector.shape_cast %219 : vector<1x7x45xbf16> to vector<7x45xbf16>
    %221 = arith.truncf %218 : vector<16x7xf32> to vector<16x7xbf16>
    %cst_91 = arith.constant dense<0.000000e+00> : vector<16x45xf32>
    %222 = tpu.matmul %221, %220, %cst_91 {dimension_numbers = #tpu.dot_dimension_numbers<[1], [0], [0], [1], [0, 0, 1, 1], [], []>} : vector<16x7xbf16>, vector<7x45xbf16>, vector<16x45xf32> -> vector<16x45xf32>
    %223 = arith.addf %217, %222 : vector<16x45xf32>
    %224 = vector.extract_strided_slice %176 {offsets = [128, 0], sizes = [16, 7], strides = [1, 1]} : vector<144x7xf32> to vector<16x7xf32>
    %c8_92 = arith.constant 8 : index
    %c0_93 = arith.constant 0 : index
    %c0_94 = arith.constant 0 : index
    %225 = vector.load %arg6[%c8_92, %c0_93, %c0_94] : memref<9x7x45xbf16, #tpu.memory_space<vmem>>, vector<1x7x45xbf16>
    %226 = vector.shape_cast %225 : vector<1x7x45xbf16> to vector<7x45xbf16>
    %227 = arith.truncf %224 : vector<16x7xf32> to vector<16x7xbf16>
    %cst_95 = arith.constant dense<0.000000e+00> : vector<16x45xf32>
    %228 = tpu.matmul %227, %226, %cst_95 {dimension_numbers = #tpu.dot_dimension_numbers<[1], [0], [0], [1], [0, 0, 1, 1], [], []>} : vector<16x7xbf16>, vector<7x45xbf16>, vector<16x45xf32> -> vector<16x45xf32>
    %229 = arith.addf %223, %228 : vector<16x45xf32>
    %230 = vector.broadcast %3 : vector<16x1xf32> to vector<16x45xf32>
    %231 = arith.addf %229, %230 : vector<16x45xf32>
    %cst_96 = arith.constant 0.000000e+00 : f32
    %232 = vector.broadcast %cst_96 : f32 to vector<16x45xf32>
    %233 = arith.maximumf %231, %232 : vector<16x45xf32>
    %c896 = arith.constant 896 : index
    %c0_97 = arith.constant 0 : index
    %234 = vector.load %arg3[%c896, %c0_97] : memref<912x32xbf16, #tpu.memory_space<vmem>>, vector<1x16xbf16>
    %235 = arith.truncf %233 : vector<16x45xf32> to vector<16x45xbf16>
    %cst_98 = arith.constant dense<0.000000e+00> : vector<1x45xf32>
    %236 = tpu.matmul %234, %235, %cst_98 {dimension_numbers = #tpu.dot_dimension_numbers<[1], [0], [0], [1], [0, 0, 1, 1], [], []>} : vector<1x16xbf16>, vector<16x45xbf16>, vector<1x45xf32> -> vector<1x45xf32>
    %c0_99 = arith.constant 0 : index
    %c0_100 = arith.constant 0 : index
    %c0_101 = arith.constant 0 : index
    %237 = vector.load %arg7[%c0_99, %c0_100, %c0_101] : memref<9x45x256xbf16, #tpu.memory_space<vmem>>, vector<1x45x256xbf16>
    %238 = vector.shape_cast %237 : vector<1x45x256xbf16> to vector<45x256xbf16>
    %239 = arith.truncf %236 : vector<1x45xf32> to vector<1x45xbf16>
    %cst_102 = arith.constant dense<0.000000e+00> : vector<1x256xf32>
    %240 = tpu.matmul %239, %238, %cst_102 {dimension_numbers = #tpu.dot_dimension_numbers<[1], [0], [0], [1], [0, 0, 1, 1], [], []>} : vector<1x45xbf16>, vector<45x256xbf16>, vector<1x256xf32> -> vector<1x256xf32>
    %c897 = arith.constant 897 : index
    %c0_103 = arith.constant 0 : index
    %241 = vector.load %arg3[%c897, %c0_103] : memref<912x32xbf16, #tpu.memory_space<vmem>>, vector<1x16xbf16>
    %242 = arith.truncf %233 : vector<16x45xf32> to vector<16x45xbf16>
    %cst_104 = arith.constant dense<0.000000e+00> : vector<1x45xf32>
    %243 = tpu.matmul %241, %242, %cst_104 {dimension_numbers = #tpu.dot_dimension_numbers<[1], [0], [0], [1], [0, 0, 1, 1], [], []>} : vector<1x16xbf16>, vector<16x45xbf16>, vector<1x45xf32> -> vector<1x45xf32>
    %c1_105 = arith.constant 1 : index
    %c0_106 = arith.constant 0 : index
    %c0_107 = arith.constant 0 : index
    %244 = vector.load %arg7[%c1_105, %c0_106, %c0_107] : memref<9x45x256xbf16, #tpu.memory_space<vmem>>, vector<1x45x256xbf16>
    %245 = vector.shape_cast %244 : vector<1x45x256xbf16> to vector<45x256xbf16>
    %246 = arith.truncf %243 : vector<1x45xf32> to vector<1x45xbf16>
    %cst_108 = arith.constant dense<0.000000e+00> : vector<1x256xf32>
    %247 = tpu.matmul %246, %245, %cst_108 {dimension_numbers = #tpu.dot_dimension_numbers<[1], [0], [0], [1], [0, 0, 1, 1], [], []>} : vector<1x45xbf16>, vector<45x256xbf16>, vector<1x256xf32> -> vector<1x256xf32>
    %248 = arith.addf %240, %247 : vector<1x256xf32>
    %c898 = arith.constant 898 : index
    %c0_109 = arith.constant 0 : index
    %249 = vector.load %arg3[%c898, %c0_109] : memref<912x32xbf16, #tpu.memory_space<vmem>>, vector<1x16xbf16>
    %250 = arith.truncf %233 : vector<16x45xf32> to vector<16x45xbf16>
    %cst_110 = arith.constant dense<0.000000e+00> : vector<1x45xf32>
    %251 = tpu.matmul %249, %250, %cst_110 {dimension_numbers = #tpu.dot_dimension_numbers<[1], [0], [0], [1], [0, 0, 1, 1], [], []>} : vector<1x16xbf16>, vector<16x45xbf16>, vector<1x45xf32> -> vector<1x45xf32>
    %c2_111 = arith.constant 2 : index
    %c0_112 = arith.constant 0 : index
    %c0_113 = arith.constant 0 : index
    %252 = vector.load %arg7[%c2_111, %c0_112, %c0_113] : memref<9x45x256xbf16, #tpu.memory_space<vmem>>, vector<1x45x256xbf16>
    %253 = vector.shape_cast %252 : vector<1x45x256xbf16> to vector<45x256xbf16>
    %254 = arith.truncf %251 : vector<1x45xf32> to vector<1x45xbf16>
    %cst_114 = arith.constant dense<0.000000e+00> : vector<1x256xf32>
    %255 = tpu.matmul %254, %253, %cst_114 {dimension_numbers = #tpu.dot_dimension_numbers<[1], [0], [0], [1], [0, 0, 1, 1], [], []>} : vector<1x45xbf16>, vector<45x256xbf16>, vector<1x256xf32> -> vector<1x256xf32>
    %256 = arith.addf %248, %255 : vector<1x256xf32>
    %c899 = arith.constant 899 : index
    %c0_115 = arith.constant 0 : index
    %257 = vector.load %arg3[%c899, %c0_115] : memref<912x32xbf16, #tpu.memory_space<vmem>>, vector<1x16xbf16>
    %258 = arith.truncf %233 : vector<16x45xf32> to vector<16x45xbf16>
    %cst_116 = arith.constant dense<0.000000e+00> : vector<1x45xf32>
    %259 = tpu.matmul %257, %258, %cst_116 {dimension_numbers = #tpu.dot_dimension_numbers<[1], [0], [0], [1], [0, 0, 1, 1], [], []>} : vector<1x16xbf16>, vector<16x45xbf16>, vector<1x45xf32> -> vector<1x45xf32>
    %c3_117 = arith.constant 3 : index
    %c0_118 = arith.constant 0 : index
    %c0_119 = arith.constant 0 : index
    %260 = vector.load %arg7[%c3_117, %c0_118, %c0_119] : memref<9x45x256xbf16, #tpu.memory_space<vmem>>, vector<1x45x256xbf16>
    %261 = vector.shape_cast %260 : vector<1x45x256xbf16> to vector<45x256xbf16>
    %262 = arith.truncf %259 : vector<1x45xf32> to vector<1x45xbf16>
    %cst_120 = arith.constant dense<0.000000e+00> : vector<1x256xf32>
    %263 = tpu.matmul %262, %261, %cst_120 {dimension_numbers = #tpu.dot_dimension_numbers<[1], [0], [0], [1], [0, 0, 1, 1], [], []>} : vector<1x45xbf16>, vector<45x256xbf16>, vector<1x256xf32> -> vector<1x256xf32>
    %264 = arith.addf %256, %263 : vector<1x256xf32>
    %c900 = arith.constant 900 : index
    %c0_121 = arith.constant 0 : index
    %265 = vector.load %arg3[%c900, %c0_121] : memref<912x32xbf16, #tpu.memory_space<vmem>>, vector<1x16xbf16>
    %266 = arith.truncf %233 : vector<16x45xf32> to vector<16x45xbf16>
    %cst_122 = arith.constant dense<0.000000e+00> : vector<1x45xf32>
    %267 = tpu.matmul %265, %266, %cst_122 {dimension_numbers = #tpu.dot_dimension_numbers<[1], [0], [0], [1], [0, 0, 1, 1], [], []>} : vector<1x16xbf16>, vector<16x45xbf16>, vector<1x45xf32> -> vector<1x45xf32>
    %c4_123 = arith.constant 4 : index
    %c0_124 = arith.constant 0 : index
    %c0_125 = arith.constant 0 : index
    %268 = vector.load %arg7[%c4_123, %c0_124, %c0_125] : memref<9x45x256xbf16, #tpu.memory_space<vmem>>, vector<1x45x256xbf16>
    %269 = vector.shape_cast %268 : vector<1x45x256xbf16> to vector<45x256xbf16>
    %270 = arith.truncf %267 : vector<1x45xf32> to vector<1x45xbf16>
    %cst_126 = arith.constant dense<0.000000e+00> : vector<1x256xf32>
    %271 = tpu.matmul %270, %269, %cst_126 {dimension_numbers = #tpu.dot_dimension_numbers<[1], [0], [0], [1], [0, 0, 1, 1], [], []>} : vector<1x45xbf16>, vector<45x256xbf16>, vector<1x256xf32> -> vector<1x256xf32>
    %272 = arith.addf %264, %271 : vector<1x256xf32>
    %c901 = arith.constant 901 : index
    %c0_127 = arith.constant 0 : index
    %273 = vector.load %arg3[%c901, %c0_127] : memref<912x32xbf16, #tpu.memory_space<vmem>>, vector<1x16xbf16>
    %274 = arith.truncf %233 : vector<16x45xf32> to vector<16x45xbf16>
    %cst_128 = arith.constant dense<0.000000e+00> : vector<1x45xf32>
    %275 = tpu.matmul %273, %274, %cst_128 {dimension_numbers = #tpu.dot_dimension_numbers<[1], [0], [0], [1], [0, 0, 1, 1], [], []>} : vector<1x16xbf16>, vector<16x45xbf16>, vector<1x45xf32> -> vector<1x45xf32>
    %c5_129 = arith.constant 5 : index
    %c0_130 = arith.constant 0 : index
    %c0_131 = arith.constant 0 : index
    %276 = vector.load %arg7[%c5_129, %c0_130, %c0_131] : memref<9x45x256xbf16, #tpu.memory_space<vmem>>, vector<1x45x256xbf16>
    %277 = vector.shape_cast %276 : vector<1x45x256xbf16> to vector<45x256xbf16>
    %278 = arith.truncf %275 : vector<1x45xf32> to vector<1x45xbf16>
    %cst_132 = arith.constant dense<0.000000e+00> : vector<1x256xf32>
    %279 = tpu.matmul %278, %277, %cst_132 {dimension_numbers = #tpu.dot_dimension_numbers<[1], [0], [0], [1], [0, 0, 1, 1], [], []>} : vector<1x45xbf16>, vector<45x256xbf16>, vector<1x256xf32> -> vector<1x256xf32>
    %280 = arith.addf %272, %279 : vector<1x256xf32>
    %c902 = arith.constant 902 : index
    %c0_133 = arith.constant 0 : index
    %281 = vector.load %arg3[%c902, %c0_133] : memref<912x32xbf16, #tpu.memory_space<vmem>>, vector<1x16xbf16>
    %282 = arith.truncf %233 : vector<16x45xf32> to vector<16x45xbf16>
    %cst_134 = arith.constant dense<0.000000e+00> : vector<1x45xf32>
    %283 = tpu.matmul %281, %282, %cst_134 {dimension_numbers = #tpu.dot_dimension_numbers<[1], [0], [0], [1], [0, 0, 1, 1], [], []>} : vector<1x16xbf16>, vector<16x45xbf16>, vector<1x45xf32> -> vector<1x45xf32>
    %c6_135 = arith.constant 6 : index
    %c0_136 = arith.constant 0 : index
    %c0_137 = arith.constant 0 : index
    %284 = vector.load %arg7[%c6_135, %c0_136, %c0_137] : memref<9x45x256xbf16, #tpu.memory_space<vmem>>, vector<1x45x256xbf16>
    %285 = vector.shape_cast %284 : vector<1x45x256xbf16> to vector<45x256xbf16>
    %286 = arith.truncf %283 : vector<1x45xf32> to vector<1x45xbf16>
    %cst_138 = arith.constant dense<0.000000e+00> : vector<1x256xf32>
    %287 = tpu.matmul %286, %285, %cst_138 {dimension_numbers = #tpu.dot_dimension_numbers<[1], [0], [0], [1], [0, 0, 1, 1], [], []>} : vector<1x45xbf16>, vector<45x256xbf16>, vector<1x256xf32> -> vector<1x256xf32>
    %288 = arith.addf %280, %287 : vector<1x256xf32>
    %c903 = arith.constant 903 : index
    %c0_139 = arith.constant 0 : index
    %289 = vector.load %arg3[%c903, %c0_139] : memref<912x32xbf16, #tpu.memory_space<vmem>>, vector<1x16xbf16>
    %290 = arith.truncf %233 : vector<16x45xf32> to vector<16x45xbf16>
    %cst_140 = arith.constant dense<0.000000e+00> : vector<1x45xf32>
    %291 = tpu.matmul %289, %290, %cst_140 {dimension_numbers = #tpu.dot_dimension_numbers<[1], [0], [0], [1], [0, 0, 1, 1], [], []>} : vector<1x16xbf16>, vector<16x45xbf16>, vector<1x45xf32> -> vector<1x45xf32>
    %c7_141 = arith.constant 7 : index
    %c0_142 = arith.constant 0 : index
    %c0_143 = arith.constant 0 : index
    %292 = vector.load %arg7[%c7_141, %c0_142, %c0_143] : memref<9x45x256xbf16, #tpu.memory_space<vmem>>, vector<1x45x256xbf16>
    %293 = vector.shape_cast %292 : vector<1x45x256xbf16> to vector<45x256xbf16>
    %294 = arith.truncf %291 : vector<1x45xf32> to vector<1x45xbf16>
    %cst_144 = arith.constant dense<0.000000e+00> : vector<1x256xf32>
    %295 = tpu.matmul %294, %293, %cst_144 {dimension_numbers = #tpu.dot_dimension_numbers<[1], [0], [0], [1], [0, 0, 1, 1], [], []>} : vector<1x45xbf16>, vector<45x256xbf16>, vector<1x256xf32> -> vector<1x256xf32>
    %296 = arith.addf %288, %295 : vector<1x256xf32>
    %c904 = arith.constant 904 : index
    %c0_145 = arith.constant 0 : index
    %297 = vector.load %arg3[%c904, %c0_145] : memref<912x32xbf16, #tpu.memory_space<vmem>>, vector<1x16xbf16>
    %298 = arith.truncf %233 : vector<16x45xf32> to vector<16x45xbf16>
    %cst_146 = arith.constant dense<0.000000e+00> : vector<1x45xf32>
    %299 = tpu.matmul %297, %298, %cst_146 {dimension_numbers = #tpu.dot_dimension_numbers<[1], [0], [0], [1], [0, 0, 1, 1], [], []>} : vector<1x16xbf16>, vector<16x45xbf16>, vector<1x45xf32> -> vector<1x45xf32>
    %c8_147 = arith.constant 8 : index
    %c0_148 = arith.constant 0 : index
    %c0_149 = arith.constant 0 : index
    %300 = vector.load %arg7[%c8_147, %c0_148, %c0_149] : memref<9x45x256xbf16, #tpu.memory_space<vmem>>, vector<1x45x256xbf16>
    %301 = vector.shape_cast %300 : vector<1x45x256xbf16> to vector<45x256xbf16>
    %302 = arith.truncf %299 : vector<1x45xf32> to vector<1x45xbf16>
    %cst_150 = arith.constant dense<0.000000e+00> : vector<1x256xf32>
    %303 = tpu.matmul %302, %301, %cst_150 {dimension_numbers = #tpu.dot_dimension_numbers<[1], [0], [0], [1], [0, 0, 1, 1], [], []>} : vector<1x45xbf16>, vector<45x256xbf16>, vector<1x256xf32> -> vector<1x256xf32>
    %304 = arith.addf %296, %303 : vector<1x256xf32>
    %305 = vector.broadcast %4 : vector<1x1xf32> to vector<1x256xf32>
    %306 = arith.addf %304, %305 : vector<1x256xf32>
    %c0_151 = arith.constant 0 : index
    %c0_152 = arith.constant 0 : index
    %c0_153 = arith.constant 0 : index
    %307 = vector.load %arg8[%c0_151, %c0_152, %c0_153] : memref<1x1x256xf32, #tpu.memory_space<vmem>>, vector<1x1x256xf32>
    %308 = vector.shape_cast %307 : vector<1x1x256xf32> to vector<1x256xf32>
    %309 = vector.shape_cast %306 : vector<1x256xf32> to vector<1x1x256xf32>
    tpu.vector_store %arg8[%c0_151, %c0_152, %c0_153], %309 {strides = array<i32>} : memref<1x1x256xf32, #tpu.memory_space<vmem>>, vector<1x1x256xf32>,
    return
  }
  func.func @transform_0(%arg0: i32) -> (i32, i32, i32) {
    %c0_i32 = arith.constant 0 : i32
    %c0_i32_0 = arith.constant 0 : i32
    %c0_i32_1 = arith.constant 0 : i32
    return %arg0, %c0_i32, %c0_i32_0 : i32, i32, i32
  }
  func.func @transform_1(%arg0: i32) -> (i32, i32, i32) {
    %c0_i32 = arith.constant 0 : i32
    %c0_i32_0 = arith.constant 0 : i32
    %c0_i32_1 = arith.constant 0 : i32
    return %arg0, %c0_i32, %c0_i32_0 : i32, i32, i32
  }
  func.func @transform_2(%arg0: i32) -> (i32, i32) {
    %c0_i32 = arith.constant 0 : i32
    %c0_i32_0 = arith.constant 0 : i32
    %c0_i32_1 = arith.constant 0 : i32
    return %c0_i32, %c0_i32_0 : i32, i32
  }
  func.func @transform_3(%arg0: i32) -> (i32, i32) {
    %c0_i32 = arith.constant 0 : i32
    %c0_i32_0 = arith.constant 0 : i32
    %c0_i32_1 = arith.constant 0 : i32
    return %c0_i32, %c0_i32_0 : i32, i32
  }
  func.func @transform_4(%arg0: i32) -> (i32, i32, i32) {
    %c0_i32 = arith.constant 0 : i32
    %c0_i32_0 = arith.constant 0 : i32
    %c0_i32_1 = arith.constant 0 : i32
    %c0_i32_2 = arith.constant 0 : i32
    return %c0_i32, %c0_i32_0, %c0_i32_1 : i32, i32, i32
  }
  func.func @transform_5(%arg0: i32) -> (i32, i32, i32) {
    %c0_i32 = arith.constant 0 : i32
    %c0_i32_0 = arith.constant 0 : i32
    %c0_i32_1 = arith.constant 0 : i32
    %c0_i32_2 = arith.constant 0 : i32
    return %c0_i32, %c0_i32_0, %c0_i32_1 : i32, i32, i32
  }
  func.func @transform_6(%arg0: i32) -> (i32, i32, i32) {
    %c0_i32 = arith.constant 0 : i32
    %c0_i32_0 = arith.constant 0 : i32
    %c0_i32_1 = arith.constant 0 : i32
    %c0_i32_2 = arith.constant 0 : i32
    return %c0_i32, %c0_i32_0, %c0_i32_1 : i32, i32, i32
  }
  func.func @transform_7(%arg0: i32) -> (i32, i32, i32) {
    %c0_i32 = arith.constant 0 : i32
    %c0_i32_0 = arith.constant 0 : i32
    %c0_i32_1 = arith.constant 0 : i32
    return %arg0, %c0_i32, %c0_i32_0 : i32, i32, i32
  }
  func.func @transform_8(%arg0: i32) -> (i32, i32, i32) {
    %c0_i32 = arith.constant 0 : i32
    %c0_i32_0 = arith.constant 0 : i32
    %c0_i32_1 = arith.constant 0 : i32
    return %arg0, %c0_i32, %c0_i32_0 : i32, i32, i32
  }
}

</mosaic_0001>

<bundles_post_ra>
// kernel: squeeze.9
= control target key start
LH: loop header
LB: loop body
LE: loop exit
PB: predicated region body
PF: predicated region fallthrough
CT: control target
= control target key end

     0   :  { %s81_s10 = smov 3  ;;  %s95_s11 = smov 3  ;;  %vm64_vm0 = vcmask 23552   ;;  %vm71_vm1 = vcmask 367952   ;;  %vm78_vm2 = vcmask 343352   ;;  %vm85_vm3 = vcmask 318752   ;;  %s241_s0 = inlined_call_operand.vmem [shape: bf16[2,1,15,3], index: 0, kind: input, shape index: {}]   ;;  %s242_s1 = inlined_call_operand.vmem [shape: bf16[2,1,45], index: 1, kind: output, shape index: {}]  }
   0x1   :  { %v190_v0 = vld [vmem:[%s241_s0 + $0x8] sm:$0xff]   ;;  %v187_v1 = vld [vmem:[%s241_s0] sm:$0xff]   ;;  %s67_s0 = smov 3  ;;  %s205_s12 = smov 42   ;;  %vm92_vm4 = vcmask 294152   ;;  %vm99_vm5 = vcmask 269552  }
   0x2   :  { %v185_v2 = vunpack.c.h.bf16 %v190_v0  ;;  %v189_v3 = vunpack.c.h.bf16 %v187_v1  ;;  %v184_v4 = vunpack.c.l.bf16 %v190_v0  ;;  %v188_v5 = vunpack.c.l.bf16 %v187_v1  ;;  %s206_s13 = smov 36   ;;  %s74_s14 = smov 3 }
   0x3   :  { %s88_s15 = smov 3  ;;  %s207_s16 = smov 30   ;;  %vm106_vm6 = vcmask 244952   ;;  %vm113_vm7 = vcmask 220352   ;;  %vm120_vm8 = vcmask 195752   ;;  %vm127_vm9 = vcmask 171152  }
   0x4   :  { %18 = vst [vmem:[#allocation1 + $0x18] sm:$0xff] %v185_v2  ;;  %s102_s17 = smov 3  ;;  %s208_s18 = smov 39   ;;  %vm134_vm10 = vcmask 146552   ;;  %vm141_vm11 = vcmask 121952   ;;  %vm148_vm12 = vcmask 97352  }
   0x5   :  { %48 = vst [vmem:[#allocation1 + $0x8] sm:$0xff] %v189_v3  ;;  %s209_s19 = smov 33   ;;  %s109_s20 = smov 3  ;;  %vm155_vm13 = vcmask 72752   ;;  %vm162_vm14 = vcmask 48152  }
   0x6   :  { %33 = vst [vmem:[#allocation1 + $0x10] sm:$0xff] %v184_v4  ;;  %s116_s21 = smov 3  ;;  %s210_s22 = smov 27  }
   0x7   :  { %61 = vst [vmem:[#allocation1] sm:$0xff] %v188_v5  ;;  %s123_s23 = smov 3  ;;  %s211_s24 = smov 24  }
   0x8   :  { %s212_s25 = smov 21   ;;  %s130_s26 = smov 3 }
   0x9   :  { %s137_s27 = smov 3  ;;  %s213_s28 = smov 18  }
   0xa   :  { %s144_s29 = smov 3  ;;  %s214_s30 = smov 15  }
   0xb   :  { %s215_s2 = smov 12   ;;  %s151_s3 = smov 3 }
   0xc   :  { %v68_v6 = vld [vmem:[#allocation1 + $0xe] ss:$16 sm:%s67_s0]   ;;  %v82_v7 = vld [vmem:[#allocation1 + $0xc] ss:$16 sm:%s81_s10]   ;;  %v96_v8 = vld [vmem:[#allocation1 + $0xa] ss:$16 sm:%s95_s11]  }
   0xd   :  { %69 = vrot.lane.b32.xlu0 %v68_v6, %s205_s12  ;;  %83 = vrot.lane.b32.xlu1 %v82_v7, %s206_s13  ;;  %v75_v9 = vld [vmem:[#allocation1 + $0xd] ss:$16 sm:%s74_s14]   ;;  %v89_v10 = vld [vmem:[#allocation1 + $0xb] ss:$16 sm:%s88_s15]   ;;  %s158_s4 = smov 3  ;;  %s216_s5 = smov 9  }
   0xe   :  { %97 = vrot.lane.b32.xlu2 %v96_v8, %s207_s16  ;;  %v103_v11 = vld [vmem:[#allocation1 + $0x9] ss:$16 sm:%s102_s17]   ;;  %v110_v12 = vld [vmem:[#allocation1 + $0x8] ss:$16 sm:%s109_s20]   ;;  %v117_v13 = vld [vmem:[#allocation1 + $0x7] ss:$16 sm:%s116_s21]  }
   0xf   :  { %v124_v14 = vld [vmem:[#allocation1 + $0x6] ss:$16 sm:%s123_s23]   ;;  %v131_v15 = vld [vmem:[#allocation1 + $0x5] ss:$16 sm:%s130_s26]   ;;  %v138_v16 = vld [vmem:[#allocation1 + $0x4] ss:$16 sm:%s137_s27]  }
  0x10   :  { %v145_v17 = vld [vmem:[#allocation1 + $0x3] ss:$16 sm:%s144_s29]   ;;  %v152_v18 = vld [vmem:[#allocation1 + $0x2] ss:$16 sm:%s151_s3]   ;;  %v159_v19 = vld [vmem:[#allocation1 + $0x1] ss:$16 sm:%s158_s4]  }
  0x11   :  { %s217_s6 = smov 6   ;;  %s218_s7 = smov 3  }
  0x12   :  { %s62_s8 = smov 3 }
  0x13   :  { %v63_v20 = vld [vmem:[#allocation1] ss:$16 sm:%s62_s8]  }
  0x14   :  { %65 = vst.msk [vmem:[#allocation0] ss:$8 sm:$0x3] %vm64_vm0, %v63_v20  }
  0x15   :  { %76 = vrot.lane.b32.xlu0 %v75_v9, %s208_s18  ;;  %90 = vrot.lane.b32.xlu1 %v89_v10, %s209_s19 }
  0x16   :  { %104 = vrot.lane.b32.xlu2 %v103_v11, %s210_s22 }
  0x1d   :  { %111 = vrot.lane.b32.xlu0 %v110_v12, %s211_s24  ;;  %118 = vrot.lane.b32.xlu1 %v117_v13, %s212_s25 }
  0x1e   :  { %125 = vrot.lane.b32.xlu2 %v124_v14, %s213_s28 }
  0x25   :  { %132 = vrot.lane.b32.xlu0 %v131_v15, %s214_s30  ;;  %139 = vrot.lane.b32.xlu1 %v138_v16, %s215_s2 }
  0x26   :  { %146 = vrot.lane.b32.xlu2 %v145_v17, %s216_s5 }
  0x2d   :  { %153 = vrot.lane.b32.xlu0 %v152_v18, %s217_s6  ;;  %160 = vrot.lane.b32.xlu1 %v159_v19, %s218_s7 }
  0x68   :  { %v98_v21 = vpop.permute.xlu2 %97  }
  0x70   :  { %v105_v22 = vpop.permute.xlu2 %104  }
  0x78   :  { %v126_v23 = vpop.permute.xlu2 %125  }
  0x7f   :  { %v70_v24 = vpop.permute.xlu0 %69   ;;  %v84_v25 = vpop.permute.xlu1 %83  }
  0x80   :  { %72 = vst.msk [vmem:[#allocation0] ss:$8 sm:$0x3] %vm71_vm1, %v70_v24   ;;  %v147_v26 = vpop.permute.xlu2 %146  }
  0x87   :  { %v77_v27 = vpop.permute.xlu0 %76   ;;  %v91_v28 = vpop.permute.xlu1 %90  }
  0x88   :  { %79 = vst.msk [vmem:[#allocation0] ss:$8 sm:$0x3] %vm78_vm2, %v77_v27  }
  0x89   :  { %86 = vst.msk [vmem:[#allocation0] ss:$8 sm:$0x3] %vm85_vm3, %v84_v25  }
  0x8a   :  { %93 = vst.msk [vmem:[#allocation0] ss:$8 sm:$0x3] %vm92_vm4, %v91_v28  }
  0x8b   :  { %100 = vst.msk [vmem:[#allocation0] ss:$8 sm:$0x3] %vm99_vm5, %v98_v21  }
  0x8c   :  { %107 = vst.msk [vmem:[#allocation0] ss:$8 sm:$0x3] %vm106_vm6, %v105_v22  }
  0x8f   :  { %v112_v29 = vpop.permute.xlu0 %111   ;;  %v119_v30 = vpop.permute.xlu1 %118  }
  0x90   :  { %114 = vst.msk [vmem:[#allocation0] ss:$8 sm:$0x3] %vm113_vm7, %v112_v29  }
  0x91   :  { %121 = vst.msk [vmem:[#allocation0] ss:$8 sm:$0x3] %vm120_vm8, %v119_v30  }
  0x92   :  { %128 = vst.msk [vmem:[#allocation0] ss:$8 sm:$0x3] %vm127_vm9, %v126_v23  }
  0x97   :  { %v133_v31 = vpop.permute.xlu0 %132   ;;  %v140_v32 = vpop.permute.xlu1 %139  }
  0x98   :  { %135 = vst.msk [vmem:[#allocation0] ss:$8 sm:$0x3] %vm134_vm10, %v133_v31  }
  0x99   :  { %142 = vst.msk [vmem:[#allocation0] ss:$8 sm:$0x3] %vm141_vm11, %v140_v32  }
  0x9a   :  { %149 = vst.msk [vmem:[#allocation0] ss:$8 sm:$0x3] %vm148_vm12, %v147_v26  }
  0x9f   :  { %v154_v33 = vpop.permute.xlu0 %153   ;;  %v161_v34 = vpop.permute.xlu1 %160  }
  0xa0   :  { %156 = vst.msk [vmem:[#allocation0] ss:$8 sm:$0x3] %vm155_vm13, %v154_v33  }
  0xa1   :  { %163 = vst.msk [vmem:[#allocation0] ss:$8 sm:$0x3] %vm162_vm14, %v161_v34  }
  0xa8   :  { %v166_v35 = vld [vmem:[#allocation0] sm:$0x3]  ;;  %v172_v36 = vld [vmem:[#allocation0 + $0x8] sm:$0x3] }
  0xa9   :  { %v167_v37 = vpack.c.bf16 0.0, %v166_v35  ;;  %v173_v38 = vpack.c.bf16 0.0, %v172_v36 }
  0xab   :  { %170 = vst [vmem:[%s242_s1] sm:$0x1] %v167_v37 }
  0xac   :  { %181 = vst [vmem:[%s242_s1 + $0x1] sm:$0x1] %v173_v38 }

// kernel: autoencoder_forward.1
= control target key start
LH: loop header
LB: loop body
LE: loop exit
PB: predicated region body
PF: predicated region fallthrough
CT: control target
= control target key end

     0   :  { %s4517_s27 = smov 0   ;;  %s5546_s0 = inlined_call_operand.vmem [shape: bf16[2,9,45], index: 0, kind: input, shape index: {}]   ;;  %s5547_s1 = inlined_call_operand.vmem [shape: f32[2,16,1], index: 1, kind: input, shape index: {}]   ;;  %s5548_s2 = inlined_call_operand.vmem [shape: bf16[912,32], index: 2, kind: input, shape index: {}]   ;;  %s5549_s3 = inlined_call_operand.vmem [shape: f32[136,8], index: 3, kind: input, shape index: {}]   ;;  %s5550_s4 = inlined_call_operand.vmem [shape: bf16[9,45,7], index: 4, kind: input, shape index: {}]   ;;  %s5551_s5 = inlined_call_operand.vmem [shape: bf16[9,7,45], index: 5, kind: input, shape index: {}]   ;;  %s5552_s6 = inlined_call_operand.vmem [shape: bf16[9,45,256], index: 6, kind: input, shape index: {}]   ;;  %s5553_s7 = inlined_call_operand.vmem [shape: f32[2,1,256], index: 7, kind: output, shape index: {0}]   ;;  %s5554_s8 = inlined_call_operand.vmem [shape: f32[2,32,1], index: 8, kind: output, shape index: {1}]  }
   0x1 LB: > { %s3519_s28 = sadd.s32 4294967295, %s4467_s27   ;;  %p3523_p0 = scmp.ge.s32.totalorder %s4467_s27, 1  ;;  %s4467_s27 = sphi %s4517_s27, %s19_s27  }
   0x2   : > { %p275_p1 = scmp.lt.s32.totalorder %s4467_s27, 3 }
   0x4   : > { %p276_p2 = pnand %p3523_p0, %p275_p1 }
   0x5   : > { %p318_p3 = scmp.lt.s32.totalorder (!%p276_p2), %s3519_s28, 1 }
   0x6   : > { %279 = sbr.rel (%p276_p2) target bundleno = 2945 (0xb81), region = 48 }
   0xb   : > { %vm383_vm0 = vcmask 1043456   ;;  %vm2342_vm1 = vcmask 1042432   ;;  %s5556_s28 = smov (!%p318_p3, %s3519_s28), 1  ;;  %v4469_v0 = vmov 65535   ;;  %v338_v2 = vld [vmem:[%s5549_s3] sm:$0xff]  ;;  %vm384_vm2 = vcmask 1044480  }
   0xc   : > { %v2343_v1 = vsel %vm2342_vm1, 4294967295, %v4469_v0  ;;  %v385_v3 = vsel %vm383_vm0, 4294967295, %v4469_v0  ;;  %s4306_s9 = sshll.u32 %s5556_s28, 3  ;;  %v4470_v5 = vmov 0   ;;  %v4309_v11 = vld [vmem:[%s5548_s2] sm:$0xff]  ;;  %v339_v12 = vld [vmem:[%s5549_s3 + $0x8] sm:$0xff] }
   0xd   : > { %v4530_v4 = vsel %vm383_vm0, %v2343_v1, 0  ;;  %4458 = vset.pattern.permute.xlu0 %v4470_v5  ;;  %4459 = vset.pattern.permute.xlu1 %v4470_v5  ;;  %s322_s12 = scalar_lea.vmem %s5546_s0, %s4306_s9  ;;  %v386_v8 = vsel %vm384_vm2, %v385_v3, 0  ;;  %vm379_vm3 = vcmask 72704   ;;  %v4311_v22 = vld [vmem:[%s5548_s2 + $0x8] sm:$0xff]  ;;  %vm533_vm4 = vcmask 130048   ;;  %v4312_v23 = vld [vmem:[%s5548_s2 + $0x10] sm:$0xff] }
   0xe   : > { %361 = vperm.xlu0 %4458, %v338_v2   ;;  %4460 = vset.pattern.permute.xlu2 %v4470_v5  ;;  %v3537_v6 = vld [vmem:[%s322_s12] sm:$0xf]  ;;  %v4310_v7 = vld [vmem:[%s322_s12] sm:$0x10]  ;;  %v4313_v24 = vld [vmem:[%s5548_s2 + $0x18] sm:$0xff]  ;;  %vm728_vm5 = vcmask 1045504  }
   0xf   : > { %v3538_v9 = vor.u32 %v4310_v7, %v3537_v6  ;;  %v4314_v25 = vld [vmem:[%s5548_s2 + $0x20] sm:$0xff]  ;;  %v4315_v26 = vld [vmem:[%s5548_s2 + $0x28] sm:$0xff]  ;;  %v4316_v27 = vld [vmem:[%s5548_s2 + $0x30] sm:$0xff]  ;;  %vm729_vm6 = vcmask 1046528   ;;  %v730_v28 = vsel %vm728_vm5, 4294967295, %v4469_v0  ;;  %vm721_vm7 = vcmask 367616  }
  0x10   : > { %v4566_v29 = vsel %vm729_vm6, %v730_v28, 0  ;;  %v3660_v30 = vld [vmem:[%s5550_s4 + $0x10] sm:$0xf]  ;;  %v4331_v31 = vld [vmem:[%s5550_s4 + $0x10] sm:$0x70]  ;;  %v4317_v34 = vld [vmem:[%s5548_s2 + $0x38] sm:$0xff] }
  0x11   : > { %v388_v10 = vand.u32 %v3538_v9, %v386_v8  ;;  %v3661_v32 = vor.u32 %v4331_v31, %v3660_v30  ;;  %v4330_v35 = vld [vmem:[%s5550_s4 + $0x8] sm:$0xff]  ;;  %v4329_v36 = vld [vmem:[%s5550_s4] sm:$0xff]  ;;  %v4332_v45 = vld [vmem:[%s5550_s4 + $0x18] sm:$0xff]  ;;  %vm1333_vm8 = vcmask 261120   ;;  %vm1627_vm12 = vcmask 56320   ;;  %s4308_s29 = sshll.u32 %s5556_s28, 5 }
  0x12   : > { %v4318_v37 = vld [vmem:[%s5548_s2 + $0x40] sm:$0xff]  ;;  %v3646_v38 = vld [vmem:[%s5550_s4 + $0x28] sm:$0xf]  ;;  %v4334_v39 = vld [vmem:[%s5550_s4 + $0x28] sm:$0x70]  ;;  %s4937_s10 = scalar_lea.vmem %s5554_s8, %s4308_s29  ;;  %s4307_s13 = sshll.u32 %s5556_s28, 4 }
  0x13   : > { %397 = vmatpush.bf16.msra.mxu0 %v388_v10  ;;  %v778_v33 = vand.u32 %v3661_v32, %v4566_v29  ;;  %v3647_v40 = vor.u32 %v4334_v39, %v3646_v38  ;;  %v4319_v42 = vld [vmem:[%s5548_s2 + $0x48] sm:$0xff]  ;;  %v4333_v44 = vld [vmem:[%s5550_s4 + $0x20] sm:$0xff]  ;;  %v4320_v48 = vld [vmem:[%s5548_s2 + $0x50] sm:$0xff]  ;;  %s327_s16 = scalar_lea.vmem %s5547_s1, %s4307_s13  ;;  %s3528_s21 = sshll.u32 %s5556_s28, 1 }
  0x14   : > { %v3680_v52 = vld [vmem:[%s5550_s4 + $0x40] sm:$0xf]  ;;  %v4337_v53 = vld [vmem:[%s5550_s4 + $0x40] sm:$0x70]  ;;  %v4321_v56 = vld [vmem:[%s5548_s2 + $0x58] sm:$0xff]  ;;  %s331_s24 = scalar_lea.vmem %s5553_s7, %s3528_s21 }
  0x15   : > { %785 = vmatpush.bf16.msra.mxu3 %v778_v33  ;;  %v733_v41 = vand.u32 %v3647_v40, %v4566_v29  ;;  %v3681_v54 = vor.u32 %v4337_v53, %v3680_v52  ;;  %v4336_v58 = vld [vmem:[%s5550_s4 + $0x38] sm:$0xff]  ;;  %v4335_v59 = vld [vmem:[%s5550_s4 + $0x30] sm:$0xff]  ;;  %v4322_v62 = vld [vmem:[%s5548_s2 + $0x60] sm:$0xff] }
  0x16   : > { %366 = vperm.xlu0 %4458, %v339_v12   ;;  %3539 = vmatmul.msk.bf16.vlgmr.msra.gmra.mxu0 %vm379_vm3, %v4309_v11  ;;  %v3700_v2 = vld [vmem:[%s5550_s4 + $0x58] sm:$0xf]  ;;  %v4340_v3 = vld [vmem:[%s5550_s4 + $0x58] sm:$0x70]  ;;  %v4323_v7 = vld [vmem:[%s5548_s2 + $0x68] sm:$0xff] }
  0x17   : > { %740 = vmatpush.bf16.msra.mxu2 %v733_v41  ;;  %v832_v55 = vand.u32 %v3681_v54, %v4566_v29  ;;  %v3701_v5 = vor.u32 %v4340_v3, %v3700_v2  ;;  %v4339_v9 = vld [vmem:[%s5550_s4 + $0x50] sm:$0xff]  ;;  %v4338_v10 = vld [vmem:[%s5550_s4 + $0x48] sm:$0xff]  ;;  %v4345_v38 = vld [vmem:[%s5550_s4 + $0x80] sm:$0xff] }
  0x18   : > { %v3740_v32 = vld [vmem:[%s5550_s4 + $0x88] sm:$0xf]  ;;  %v4346_v33 = vld [vmem:[%s5550_s4 + $0x88] sm:$0x70]  ;;  %v4344_v39 = vld [vmem:[%s5550_s4 + $0x78] sm:$0xff] }
  0x19   : > { %786 = vmatpush.bf16.msra.mxu3 %v4330_v35  ;;  %839 = vmatpush.bf16.msrb.mxu0 %v832_v55  ;;  %v890_v6 = vand.u32 %v3701_v5, %v4566_v29  ;;  %v4347_v52 = vld [vmem:[%s5550_s4 + $0x90] sm:$0xff]  ;;  %v4350_v3 = vld [vmem:[%s5550_s4 + $0xa8] sm:$0xff] }
  0x1a   : > { %v4351_v2 = vld [vmem:[%s5550_s4 + $0xb0] sm:$0xff] }
  0x1b   : > { %741 = vmatpush.bf16.msra.mxu2 %v4333_v44 }
  0x1d   : > { %787 = vmatpush.bf16.msra.mxu3 %v4329_v36  ;;  %840 = vmatpush.bf16.msrb.mxu0 %v4336_v58  ;;  %v4327_v36 = vld [vmem:[%s5548_s2 + $0x88] sm:$0xff] }
  0x1f   : > { %742 = vmatpush.bf16.msra.mxu2 %v4332_v45 }
  0x21   : > { %841 = vmatpush.bf16.msrb.mxu0 %v4335_v59 }
  0x23   : > { %897 = vmatpush.bf16.msrb.mxu2 %v890_v6 }
  0x27   : > { %898 = vmatpush.bf16.msrb.mxu2 %v4339_v9 }
  0x2b   : > { %899 = vmatpush.bf16.msrb.mxu2 %v4338_v10 }
  0x80   : > { %v362_v13 = vpop.permute.xlu0 %361 }
  0x88   : > { %v367_v16 = vpop.permute.xlu0 %366 }
  0x93   : > { %v399_v14 = vpop.f32.mrf.mxu0 }
  0x94   : > { %v400_v15 = vadd.f32 %v399_v14, %v362_v13  ;;  %v4324_v13 = vld [vmem:[%s5548_s2 + $0x70] sm:$0xff] }
  0x96   : > { %v404_v19 = vmax.f32 %v400_v15, 0.0 }
  0x9b   : > { %v401_v17 = vpop.f32.mrf.mxu0 }
  0x9c   : > { %v402_v18 = vadd.f32 %v401_v17, %v367_v16  ;;  %v3720_v17 = vld [vmem:[%s5550_s4 + $0x70] sm:$0xf] }
  0x9e   : > { %v405_v20 = vmax.f32 %v402_v18, 0.0  ;;  %v4343_v18 = vld [vmem:[%s5550_s4 + $0x70] sm:$0x70] }
  0xa0   : > { %v442_v21 = vpack.c.bf16 %v405_v20, %v404_v19  ;;  %v3721_v19 = vor.u32 %v4343_v18, %v3720_v17  ;;  %v4354_v17 = vld [vmem:[%s5550_s4 + $0xc8] sm:$0xff]  ;;  %v4353_v18 = vld [vmem:[%s5550_s4 + $0xc0] sm:$0xff] }
  0xa2   : > { %595 = vmatpush.bf16.msra.mxu1 %v442_v21  ;;  %v948_v20 = vand.u32 %v3721_v19, %v4566_v29  ;;  %v4325_v21 = vld [vmem:[%s5548_s2 + $0x78] sm:$0xff] }
  0xa4   : > { %955 = vmatpush.bf16.msrb.mxu3 %v948_v20 }
  0xa5   : > { %3612 = vmatmul.msk.bf16.vlgmr.msra.gmra.mxu1 %vm533_vm4, %v4311_v22 }
  0xb5   : > { %3613 = vmatmul.msk.bf16.gmra.mxu1 %vm533_vm4, %v4312_v23  ;;  %v4342_v23 = vld [vmem:[%s5550_s4 + $0x68] sm:$0xff] }
  0xb6   : > { %956 = vmatpush.bf16.msrb.mxu3 %v4342_v23 }
  0xc5   : > { %3614 = vmatmul.msk.bf16.gmra.mxu1 %vm533_vm4, %v4313_v24  ;;  %v4341_v24 = vld [vmem:[%s5550_s4 + $0x60] sm:$0xff] }
  0xc6   : > { %957 = vmatpush.bf16.msrb.mxu3 %v4341_v24  ;;  %v342_v24 = vld [vmem:[%s5549_s3 + $0x20] sm:$0xff] }
  0xc7   : > { %1217 = vperm.xlu1 %4459, %v342_v24  }
  0xd5   : > { %3615 = vmatmul.msk.bf16.gmra.mxu1 %vm533_vm4, %v4314_v25 }
  0xe5   : > { %3616 = vmatmul.msk.bf16.gmra.mxu1 %vm533_vm4, %v4315_v26 }
  0xf5   : > { %3617 = vmatmul.msk.bf16.gmra.mxu1 %vm533_vm4, %v4316_v27  ;;  %v4326_v27 = vld [vmem:[%s5548_s2 + $0x80] sm:$0xff] }
 0x105   : > { %3618 = vmatmul.msk.bf16.gmra.mxu1 %vm533_vm4, %v4317_v34  ;;  %v3741_v34 = vor.u32 %v4346_v33, %v3740_v32  ;;  %v341_v32 = vld [vmem:[%s5549_s3 + $0x18] sm:$0xff] }
 0x107   : > { %v1006_v35 = vand.u32 %v3741_v34, %v4566_v29 }
 0x109   : > { %1013 = vmatpush.bf16.msra.mxu0 %v1006_v35 }
 0x10d   : > { %1014 = vmatpush.bf16.msra.mxu0 %v4345_v38 }
 0x111   : > { %1015 = vmatpush.bf16.msra.mxu0 %v4344_v39 }
 0x115   : > { %3619 = vmatmul.msk.bf16.gmra.mxu1 %vm533_vm4, %v4318_v37 }
 0x122   : > { %v597_v43 = vpop.f32.mrf.mxu1 }
 0x125   : > { %3620 = vmatmul.msk.bf16.gmra.mxu1 %vm533_vm4, %v4319_v42  ;;  %v4328_v42 = vld [vmem:[%s5548_s2 + $0x90] sm:$0xff] }
 0x12a   : > { %v599_v46 = vpop.f32.mrf.mxu1 }
 0x12b   : > { %v693_v47 = vpack.c.bf16 %v599_v46, %v597_v43  ;;  %v3760_v46 = vld [vmem:[%s5550_s4 + $0xa0] sm:$0xf] }
 0x12d   : > { %3662 = vmatmul.msk.bf16.vlgmr.msra.gmra.mxu3 %vm721_vm7, %v693_v47  ;;  %v4349_v47 = vld [vmem:[%s5550_s4 + $0xa0] sm:$0x70] }
 0x132   : > { %v602_v49 = vpop.f32.mrf.mxu1 }
 0x135   : > { %3621 = vmatmul.msk.bf16.gmra.mxu1 %vm533_vm4, %v4320_v48  ;;  %v3761_v48 = vor.u32 %v4349_v47, %v3760_v46 }
 0x13a   : > { %v604_v50 = vpop.f32.mrf.mxu1 }
 0x13b   : > { %v694_v51 = vpack.c.bf16 %v604_v50, %v602_v49  ;;  %v1064_v49 = vand.u32 %v3761_v48, %v4566_v29 }
 0x13d   : > { %3663 = vmatmul.msk.bf16.gmra.mxu3 %vm721_vm7, %v694_v51  ;;  %v4348_v51 = vld [vmem:[%s5550_s4 + $0x98] sm:$0xff] }
 0x142   : > { %v607_v57 = vpop.f32.mrf.mxu1 }
 0x145   : > { %3622 = vmatmul.msk.bf16.gmra.mxu1 %vm533_vm4, %v4321_v56 }
 0x14a   : > { %v609_v60 = vpop.f32.mrf.mxu1 }
 0x14b   : > { %v702_v61 = vpack.c.bf16 %v609_v60, %v607_v57 }
 0x14d   : > { %3648 = vmatmul.msk.bf16.vlgmr.msra.gmra.mxu2 %vm721_vm7, %v702_v61  ;;  %v3780_v61 = vld [vmem:[%s5550_s4 + $0xb8] sm:$0xf] }
 0x14e   : > { %1071 = vmatpush.bf16.msra.mxu2 %v1064_v49 }
 0x152   : > { %v612_v63 = vpop.f32.mrf.mxu1  ;;  %1072 = vmatpush.bf16.msra.mxu2 %v4348_v51 }
 0x155   : > { %3623 = vmatmul.msk.bf16.gmra.mxu1 %vm533_vm4, %v4322_v62  ;;  %v4352_v62 = vld [vmem:[%s5550_s4 + $0xb8] sm:$0x70] }
 0x156   : > { %1073 = vmatpush.bf16.msra.mxu2 %v4347_v52 }
 0x15a   : > { %v614_v0 = vpop.f32.mrf.mxu1 }
 0x15b   : > { %v703_v1 = vpack.c.bf16 %v614_v0, %v612_v63  ;;  %v3781_v63 = vor.u32 %v4352_v62, %v3780_v61 }
 0x15d   : > { %3649 = vmatmul.msk.bf16.gmra.mxu2 %vm721_vm7, %v703_v1  ;;  %v1122_v0 = vand.u32 %v3781_v63, %v4566_v29 }
 0x15f   : > { %1129 = vmatpush.bf16.msra.mxu3 %v1122_v0 }
 0x162   : > { %v617_v8 = vpop.f32.mrf.mxu1 }
 0x163   : > { %1130 = vmatpush.bf16.msra.mxu3 %v4351_v2 }
 0x165   : > { %3624 = vmatmul.msk.bf16.gmra.mxu1 %vm533_vm4, %v4323_v7 }
 0x167   : > { %1131 = vmatpush.bf16.msra.mxu3 %v4350_v3 }
 0x16a   : > { %v619_v11 = vpop.f32.mrf.mxu1 }
 0x16b   : > { %v806_v12 = vpack.c.bf16 %v619_v11, %v617_v8 }
 0x16d   : > { %3682 = vmatmul.msk.bf16.vlgmr.msrb.gmra.mxu0 %vm721_vm7, %v806_v12  ;;  %v3800_v12 = vld [vmem:[%s5550_s4 + $0xd0] sm:$0xf] }
 0x172   : > { %v622_v14 = vpop.f32.mrf.mxu1 }
 0x175   : > { %3625 = vmatmul.msk.bf16.gmra.mxu1 %vm533_vm4, %v4324_v13  ;;  %v4355_v13 = vld [vmem:[%s5550_s4 + $0xd0] sm:$0x70] }
 0x17a   : > { %v624_v15 = vpop.f32.mrf.mxu1 }
 0x17b   : > { %v807_v16 = vpack.c.bf16 %v624_v15, %v622_v14  ;;  %v3801_v14 = vor.u32 %v4355_v13, %v3800_v12 }
 0x17d   : > { %3683 = vmatmul.msk.bf16.gmra.mxu0 %vm721_vm7, %v807_v16  ;;  %v1180_v15 = vand.u32 %v3801_v14, %v4566_v29 }
 0x17f   : > { %1187 = vmatpush.bf16.msrb.mxu0 %v1180_v15 }
 0x182   : > { %v627_v22 = vpop.f32.mrf.mxu1 }
 0x183   : > { %1188 = vmatpush.bf16.msrb.mxu0 %v4354_v17 }
 0x185   : > { %3626 = vmatmul.msk.bf16.gmra.mxu1 %vm533_vm4, %v4325_v21 }
 0x187   : > { %1189 = vmatpush.bf16.msrb.mxu0 %v4353_v18 }
 0x18a   : > { %v629_v25 = vpop.f32.mrf.mxu1 }
 0x18b   : > { %v864_v26 = vpack.c.bf16 %v629_v25, %v627_v22 }
 0x18d   : > { %3702 = vmatmul.msk.bf16.vlgmr.msrb.gmra.mxu2 %vm721_vm7, %v864_v26  ;;  %v343_v26 = vld [vmem:[%s5549_s3 + $0x28] sm:$0xff] }
 0x18e   : > { %1222 = vperm.xlu1 %4459, %v343_v26  }
 0x192   : > { %v632_v28 = vpop.f32.mrf.mxu1 }
 0x195   : > { %3627 = vmatmul.msk.bf16.gmra.mxu1 %vm533_vm4, %v4326_v27 }
 0x19a   : > { %v634_v30 = vpop.f32.mrf.mxu1 }
 0x19b   : > { %v865_v31 = vpack.c.bf16 %v634_v30, %v632_v28  ;;  %v340_v30 = vld [vmem:[%s5549_s3 + $0x10] sm:$0xff] }
 0x19c   : > { %1207 = vperm.xlu2 %4460, %v340_v30  }
 0x19d   : > { %3703 = vmatmul.msk.bf16.gmra.mxu2 %vm721_vm7, %v865_v31 }
 0x1a2   : > { %v637_v37 = vpop.f32.mrf.mxu1 }
 0x1a4   : > { %1212 = vperm.xlu2 %4460, %v341_v32  }
 0x1a5   : > { %3628 = vmatmul.msk.bf16.gmra.mxu1 %vm533_vm4, %v4327_v36 }
 0x1aa   : > { %v639_v40 = vpop.f32.mrf.mxu1 }
 0x1ab   : > { %v922_v41 = vpack.c.bf16 %v639_v40, %v637_v37 }
 0x1ad   : > { %3722 = vmatmul.msk.bf16.vlgmr.msrb.gmra.mxu3 %vm721_vm7, %v922_v41 }
 0x1b0   : > { %v789_v55 = vpop.f32.mrf.mxu3 }
 0x1b2   : > { %v642_v43 = vpop.f32.mrf.mxu1 }
 0x1b5   : > { %3629 = vmatmul.msk.bf16.gmra.mxu1 %vm533_vm4, %v4328_v42 }
 0x1b8   : > { %v791_v36 = vpop.f32.mrf.mxu3 }
 0x1ba   : > { %v644_v44 = vpop.f32.mrf.mxu1 }
 0x1bb   : > { %v923_v45 = vpack.c.bf16 %v644_v44, %v642_v43 }
 0x1bd   : > { %3723 = vmatmul.msk.bf16.gmra.mxu3 %vm721_vm7, %v923_v45 }
 0x1c0   : > { %v794_v38 = vpop.f32.mrf.mxu3 }
 0x1c2   : > { %v647_v50 = vpop.f32.mrf.mxu1 }
 0x1c8   : > { %v796_v41 = vpop.f32.mrf.mxu3 }
 0x1ca   : > { %v649_v53 = vpop.f32.mrf.mxu1 }
 0x1cb   : > { %v980_v54 = vpack.c.bf16 %v649_v53, %v647_v50 }
 0x1cd   : > { %3742 = vmatmul.msk.bf16.vlgmr.msra.gmra.mxu0 %vm721_vm7, %v980_v54 }
 0x1d0   : > { %v744_v56 = vpop.f32.mrf.mxu2 }
 0x1d1   : > { %v790_v57 = vadd.f32 %v789_v55, %v744_v56 }
 0x1d2   : > { %v652_v58 = vpop.f32.mrf.mxu1 }
 0x1d8   : > { %v746_v35 = vpop.f32.mrf.mxu2 }
 0x1d9   : > { %v792_v0 = vadd.f32 %v791_v36, %v746_v35 }
 0x1da   : > { %v654_v59 = vpop.f32.mrf.mxu1 }
 0x1db   : > { %v981_v60 = vpack.c.bf16 %v654_v59, %v652_v58 }
 0x1dd   : > { %3743 = vmatmul.msk.bf16.gmra.mxu0 %vm721_vm7, %v981_v60 }
 0x1e0   : > { %v749_v37 = vpop.f32.mrf.mxu2 }
 0x1e1   : > { %v795_v61 = vadd.f32 %v794_v38, %v749_v37 }
 0x1e2   : > { %v657_v1 = vpop.f32.mrf.mxu1 }
 0x1e8   : > { %v751_v40 = vpop.f32.mrf.mxu2 }
 0x1e9   : > { %v797_v3 = vadd.f32 %v796_v41, %v751_v40 }
 0x1ea   : > { %v659_v5 = vpop.f32.mrf.mxu1  ;;  %v843_v6 = vpop.f32.mrf.mxu0 }
 0x1eb   : > { %v1038_v7 = vpack.c.bf16 %v659_v5, %v657_v1  ;;  %v4732_v8 = vadd.f32 %v843_v6, %v790_v57 }
 0x1ed   : > { %3762 = vmatmul.msk.bf16.vlgmr.msra.gmra.mxu2 %vm721_vm7, %v1038_v7 }
 0x1f2   : > { %v662_v9 = vpop.f32.mrf.mxu1  ;;  %v845_v39 = vpop.f32.mrf.mxu0 }
 0x1f3   : > { %v854_v5 = vadd.f32 %v845_v39, %v792_v0 }
 0x1fa   : > { %v664_v10 = vpop.f32.mrf.mxu1  ;;  %v848_v42 = vpop.f32.mrf.mxu0 }
 0x1fb   : > { %v1039_v11 = vpack.c.bf16 %v664_v10, %v662_v9  ;;  %v855_v1 = vadd.f32 %v848_v42, %v795_v61 }
 0x1fd   : > { %3763 = vmatmul.msk.bf16.gmra.mxu2 %vm721_vm7, %v1039_v11  ;;  %v1208_v11 = vpop.permute.xlu2 %1207 }
 0x202   : > { %v667_v16 = vpop.f32.mrf.mxu1  ;;  %v850_v45 = vpop.f32.mrf.mxu0 }
 0x203   : > { %v856_v7 = vadd.f32 %v850_v45, %v797_v3 }
 0x205   : > { %v1213_v35 = vpop.permute.xlu2 %1212 }
 0x20a   : > { %v669_v19 = vpop.f32.mrf.mxu1 }
 0x20b   : > { %v1096_v20 = vpack.c.bf16 %v669_v19, %v667_v16  ;;  %v1218_v16 = vpop.permute.xlu1 %1217 }
 0x20d   : > { %3782 = vmatmul.msk.bf16.vlgmr.msra.gmra.mxu3 %vm721_vm7, %v1096_v20 }
 0x210   : > { %v901_v43 = vpop.f32.mrf.mxu2 }
 0x211   : > { %v911_v12 = vadd.f32 %v901_v43, %v4732_v8 }
 0x212   : > { %v672_v21 = vpop.f32.mrf.mxu1 }
 0x213   : > { %v1223_v40 = vpop.permute.xlu1 %1222 }
 0x218   : > { %v903_v46 = vpop.f32.mrf.mxu2 }
 0x219   : > { %v912_v9 = vadd.f32 %v903_v46, %v854_v5 }
 0x21a   : > { %v674_v22 = vpop.f32.mrf.mxu1 }
 0x21b   : > { %v1097_v23 = vpack.c.bf16 %v674_v22, %v672_v21 }
 0x21d   : > { %3783 = vmatmul.msk.bf16.gmra.mxu3 %vm721_vm7, %v1097_v23 }
 0x220   : > { %v906_v49 = vpop.f32.mrf.mxu2 }
 0x221   : > { %v913_v6 = vadd.f32 %v906_v49, %v855_v1 }
 0x222   : > { %v677_v25 = vpop.f32.mrf.mxu1 }
 0x228   : > { %v908_v52 = vpop.f32.mrf.mxu2 }
 0x229   : > { %v914_v13 = vadd.f32 %v908_v52, %v856_v7  ;;  %v4358_v52 = vld [vmem:[%s5548_s2 + $0xa8] sm:$0xff] }
 0x22a   : > { %v679_v27 = vpop.f32.mrf.mxu1 }
 0x22b   : > { %v1154_v28 = vpack.c.bf16 %v679_v27, %v677_v25 }
 0x22d   : > { %3802 = vmatmul.msk.bf16.vlgmr.msrb.gmra.mxu0 %vm721_vm7, %v1154_v28 }
 0x230   : > { %v959_v44 = vpop.f32.mrf.mxu3 }
 0x231   : > { %v969_v18 = vadd.f32 %v959_v44, %v911_v12 }
 0x232   : > { %v682_v31 = vpop.f32.mrf.mxu1 }
 0x238   : > { %v961_v47 = vpop.f32.mrf.mxu3 }
 0x239   : > { %v970_v14 = vadd.f32 %v961_v47, %v912_v9 }
 0x23a   : > { %v684_v33 = vpop.f32.mrf.mxu1 }
 0x23b   : > { %v1155_v34 = vpack.c.bf16 %v684_v33, %v682_v31 }
 0x23d   : > { %3803 = vmatmul.msk.bf16.gmra.mxu0 %vm721_vm7, %v1155_v34 }
 0x240   : > { %v964_v50 = vpop.f32.mrf.mxu3 }
 0x241   : > { %v971_v10 = vadd.f32 %v964_v50, %v913_v6  ;;  %v4356_v50 = vld [vmem:[%s5548_s2 + $0x98] sm:$0xff] }
 0x248   : > { %v966_v53 = vpop.f32.mrf.mxu3 }
 0x249   : > { %v972_v19 = vadd.f32 %v966_v53, %v914_v13  ;;  %v4359_v53 = vld [vmem:[%s5548_s2 + $0xb0] sm:$0xff] }
 0x24a   : > { %v1017_v48 = vpop.f32.mrf.mxu0 }
 0x24b   : > { %v1027_v23 = vadd.f32 %v1017_v48, %v969_v18 }
 0x252   : > { %v1019_v51 = vpop.f32.mrf.mxu0 }
 0x253   : > { %v1028_v20 = vadd.f32 %v1019_v51, %v970_v14  ;;  %v4357_v51 = vld [vmem:[%s5548_s2 + $0xa0] sm:$0xff] }
 0x25a   : > { %v1022_v54 = vpop.f32.mrf.mxu0 }
 0x25b   : > { %v1029_v15 = vadd.f32 %v1022_v54, %v971_v10  ;;  %v4360_v54 = vld [vmem:[%s5548_s2 + $0xb8] sm:$0xff] }
 0x262   : > { %v1024_v57 = vpop.f32.mrf.mxu0 }
 0x263   : > { %v1030_v24 = vadd.f32 %v1024_v57, %v972_v19  ;;  %v4363_v57 = vld [vmem:[%s5548_s2 + $0xd0] sm:$0xff] }
 0x270   : > { %v1075_v55 = vpop.f32.mrf.mxu2 }
 0x271   : > { %v1085_v28 = vadd.f32 %v1075_v55, %v1027_v23  ;;  %v4361_v55 = vld [vmem:[%s5548_s2 + $0xc0] sm:$0xff] }
 0x278   : > { %v1077_v58 = vpop.f32.mrf.mxu2 }
 0x279   : > { %v1086_v25 = vadd.f32 %v1077_v58, %v1028_v20  ;;  %v1455_v58 = vlaneseq }
 0x280   : > { %v1080_v62 = vpop.f32.mrf.mxu2 }
 0x281   : > { %v1087_v21 = vadd.f32 %v1080_v62, %v1029_v15 }
 0x288   : > { %v1082_v22 = vpop.f32.mrf.mxu2 }
 0x289   : > { %v1088_v30 = vadd.f32 %v1082_v22, %v1030_v24  ;;  %v4366_v22 = vld [vmem:[%s5548_s2 + $0xe8] sm:$0xff] }
 0x290   : > { %v1133_v56 = vpop.f32.mrf.mxu3 }
 0x291   : > { %v1143_v8 = vadd.f32 %v1133_v56, %v1085_v28  ;;  %v4362_v56 = vld [vmem:[%s5548_s2 + $0xc8] sm:$0xff] }
 0x298   : > { %v1135_v59 = vpop.f32.mrf.mxu3 }
 0x299   : > { %v1144_v31 = vadd.f32 %v1135_v59, %v1086_v25  ;;  %v4799_v59 = vand.u32 127, %v1455_v58 }
 0x29b   : > { %v4805_v61 = vmul.u32 32, %v4799_v59 }
 0x2a0   : > { %v1138_v2 = vpop.f32.mrf.mxu3 }
 0x2a1   : > { %v1145_v26 = vadd.f32 %v1138_v2, %v1087_v21 }
 0x2a8   : > { %v1140_v27 = vpop.f32.mrf.mxu3 }
 0x2a9   : > { %v1146_v33 = vadd.f32 %v1140_v27, %v1088_v30 }
 0x2aa   : > { %v1191_v60 = vpop.f32.mrf.mxu0 }
 0x2ab   : > { %v1201_v37 = vadd.f32 %v1191_v60, %v1143_v8  ;;  %v4802_v60 = vshrl.u32 %v1455_v58, 7 }
 0x2ad   : > { %v1225_v43 = vadd.f32 %v1208_v11, %v1201_v37  ;;  %v1487_v62 = vsub.s32 %v4802_v60, %v4805_v61  ;;  %v1457_v0 = vadd.s32 8, %v4802_v60  ;;  %v1458_v6 = vadd.s32 16, %v4802_v60  ;;  %v4365_v11 = vld [vmem:[%s5548_s2 + $0xe0] sm:$0xff] }
 0x2ae   : > { %v1459_v13 = vadd.s32 24, %v4802_v60  ;;  %v1460_v18 = vadd.s32 32, %v4802_v60  ;;  %v1461_v24 = vadd.s32 40, %v4802_v60  ;;  %v1462_v30 = vadd.s32 48, %v4802_v60 }
 0x2af   : > { %v1229_v48 = vmax.f32 %v1225_v43, 0.0  ;;  %vm1515_vm9 = vcmp.ge.s32.totalorder %v1487_v62, 0  ;;  %vm1543_vm10 = vcmp.lt.s32.totalorder %v1487_v62, 32  ;;  %v1488_v1 = vsub.s32 %v1457_v0, %v4805_v61 }
 0x2b0   : > { %vm1571_vm11 = vmand %vm1515_vm9, %vm1543_vm10  ;;  %v1489_v7 = vsub.s32 %v1458_v6, %v4805_v61  ;;  %v1490_v14 = vsub.s32 %v1459_v13, %v4805_v61  ;;  %v1491_v19 = vsub.s32 %v1460_v18, %v4805_v61  ;;  %v1492_v25 = vsub.s32 %v1461_v24, %v4805_v61 }
 0x2b1   : > { %vm1516_vm13 = vcmp.ge.s32.totalorder %v1488_v1, 0  ;;  %vm1544_vm14 = vcmp.lt.s32.totalorder %v1488_v1, 32  ;;  %v1472_v24 = vadd.s32 128, %v4802_v60 }
 0x2b2   : > { %v1193_v63 = vpop.f32.mrf.mxu0  ;;  %vm1572_vm15 = vmand %vm1516_vm13, %vm1544_vm14  ;;  %vm1517_vm0 = vcmp.ge.s32.totalorder %v1489_v7, 0  ;;  %vm1545_vm1 = vcmp.lt.s32.totalorder %v1489_v7, 32  ;;  %vm1518_vm3 = vcmp.ge.s32.totalorder %v1490_v14, 0  ;;  %vm1546_vm5 = vcmp.lt.s32.totalorder %v1490_v14, 32 }
 0x2b3   : > { %v1202_v34 = vadd.f32 %v1193_v63, %v1144_v31  ;;  %v4364_v63 = vld [vmem:[%s5548_s2 + $0xd8] sm:$0xff]  ;;  %vm1573_vm2 = vmand %vm1517_vm0, %vm1545_vm1  ;;  %vm1519_vm9 = vcmp.ge.s32.totalorder %v1491_v19, 0  ;;  %vm1547_vm10 = vcmp.lt.s32.totalorder %v1491_v19, 32  ;;  %vm1520_vm13 = vcmp.ge.s32.totalorder %v1492_v25, 0 }
 0x2b4   : > { %vm1574_vm6 = vmand %vm1518_vm3, %vm1546_vm5  ;;  %vm1548_vm14 = vcmp.lt.s32.totalorder %v1492_v25, 32  ;;  %v1493_v31 = vsub.s32 %v1462_v30, %v4805_v61  ;;  %v1470_v14 = vadd.s32 112, %v4802_v60  ;;  %v1471_v19 = vadd.s32 120, %v4802_v60 }
 0x2b5   : > { %v1226_v41 = vadd.f32 %v1213_v35, %v1202_v34  ;;  %v1463_v35 = vadd.s32 56, %v4802_v60  ;;  %v1503_v25 = vsub.s32 %v1472_v24, %v4805_v61  ;;  %v1473_v30 = vadd.s32 136, %v4802_v60 }
 0x2b6   : > { %vm1521_vm0 = vcmp.ge.s32.totalorder %v1493_v31, 0  ;;  %vm1549_vm1 = vcmp.lt.s32.totalorder %v1493_v31, 32 }
 0x2b7   : > { %v1230_v46 = vmax.f32 %v1226_v41, 0.0  ;;  %v1504_v31 = vsub.s32 %v1473_v30, %v4805_v61 }
 0x2b9   : > { %v1261_v49 = vpack.c.bf16 %v1230_v46, %v1229_v48  ;;  %v1465_v46 = vadd.s32 72, %v4802_v60 }
 0x2ba   : > { %v1196_v17 = vpop.f32.mrf.mxu0 }
 0x2bb   : > { %v1203_v32 = vadd.f32 %v1196_v17, %v1145_v26 }
 0x2bd   : > { %v1227_v38 = vadd.f32 %v1218_v16, %v1203_v32 }
 0x2bf   : > { %v1231_v44 = vmax.f32 %v1227_v38, 0.0 }
 0x2c2   : > { %v1198_v36 = vpop.f32.mrf.mxu0 }
 0x2c3   : > { %v1204_v39 = vadd.f32 %v1198_v36, %v1146_v33  ;;  %v4367_v33 = vld [vmem:[%s5548_s2 + $0xf0] sm:$0xff]  ;;  %v1494_v36 = vsub.s32 %v1463_v35, %v4805_v61 }
 0x2c5   : > { %v1228_v42 = vadd.f32 %v1223_v40, %v1204_v39  ;;  %vm1522_vm3 = vcmp.ge.s32.totalorder %v1494_v36, 0  ;;  %vm1550_vm5 = vcmp.lt.s32.totalorder %v1494_v36, 32  ;;  %v1464_v40 = vadd.s32 64, %v4802_v60 }
 0x2c7   : > { %v1232_v45 = vmax.f32 %v1228_v42, 0.0  ;;  %v1495_v41 = vsub.s32 %v1464_v40, %v4805_v61 }
 0x2c9   : > { %v1262_v47 = vpack.c.bf16 %v1232_v45, %v1231_v44  ;;  %v4368_v44 = vld [vmem:[%s5548_s2 + $0xf8] sm:$0xff] }
 0x2cb   : > { %1382 = vmatpush.bf16.msrb.mxu2 %v1262_v47  ;;  %v1496_v47 = vsub.s32 %v1465_v46, %v4805_v61 }
 0x2cf   : > { %1383 = vmatpush.bf16.msrb.mxu2 %v1261_v49 }
 0x2d2   : > { %3860 = vmatmul.msk.bf16.vlgmr.msrb.gmra.mxu2 %vm1333_vm8, %v4356_v50 }
 0x2e2   : > { %3861 = vmatmul.msk.bf16.gmra.mxu2 %vm1333_vm8, %v4357_v51  ;;  %v1466_v51 = vadd.s32 80, %v4802_v60 }
 0x2f2   : > { %3862 = vmatmul.msk.bf16.gmra.mxu2 %vm1333_vm8, %v4358_v52  ;;  %v1497_v52 = vsub.s32 %v1466_v51, %v4805_v61 }
 0x302   : > { %3863 = vmatmul.msk.bf16.gmra.mxu2 %vm1333_vm8, %v4359_v53 }
 0x312   : > { %3864 = vmatmul.msk.bf16.gmra.mxu2 %vm1333_vm8, %v4360_v54 }
 0x322   : > { %3865 = vmatmul.msk.bf16.gmra.mxu2 %vm1333_vm8, %v4361_v55  ;;  %v4369_v55 = vld [vmem:[%s5548_s2 + $0x100] sm:$0xff] }
 0x332   : > { %3866 = vmatmul.msk.bf16.gmra.mxu2 %vm1333_vm8, %v4362_v56 }
 0x342   : > { %3867 = vmatmul.msk.bf16.gmra.mxu2 %vm1333_vm8, %v4363_v57  ;;  %v1467_v57 = vadd.s32 88, %v4802_v60 }
 0x344   : > { %v1498_v62 = vsub.s32 %v1467_v57, %v4805_v61 }
 0x352   : > { %3868 = vmatmul.msk.bf16.gmra.mxu2 %vm1333_vm8, %v4364_v63 }
 0x355   : > { %v1385_v2 = vpop.f32.mrf.mxu2 }
 0x356   : > { %v1599_v3 = vsel %vm1571_vm11, %v1385_v2, 0.0  ;;  %vm1575_vm11 = vmand %vm1519_vm9, %vm1547_vm10  ;;  %vm1523_vm9 = vcmp.ge.s32.totalorder %v1495_v41, 0  ;;  %vm1551_vm10 = vcmp.lt.s32.totalorder %v1495_v41, 32  ;;  %v1468_v2 = vadd.s32 96, %v4802_v60 }
 0x357   : > { %v1628_v5 = vsel %vm1627_vm12, %v1599_v3, 0.0 }
 0x358   : > { %1629 = vadd.xlane.f32.xlu2 %v1628_v5  ;;  %v1499_v3 = vsub.s32 %v1468_v2, %v4805_v61 }
 0x35d   : > { %v1387_v9 = vpop.f32.mrf.mxu2 }
 0x35e   : > { %v1600_v10 = vsel %vm1572_vm15, %v1387_v9, 0.0  ;;  %vm1576_vm15 = vmand %vm1520_vm13, %vm1548_vm14  ;;  %vm1524_vm13 = vcmp.ge.s32.totalorder %v1496_v47, 0  ;;  %vm1552_vm14 = vcmp.lt.s32.totalorder %v1496_v47, 32  ;;  %v1469_v9 = vadd.s32 104, %v4802_v60 }
 0x35f   : > { %v1631_v12 = vsel %vm1627_vm12, %v1600_v10, 0.0 }
 0x360   : > { %1632 = vadd.xlane.f32.xlu2 %v1631_v12  ;;  %v1500_v10 = vsub.s32 %v1469_v9, %v4805_v61 }
 0x362   : > { %3869 = vmatmul.msk.bf16.gmra.mxu2 %vm1333_vm8, %v4365_v11 }
 0x365   : > { %v1390_v15 = vpop.f32.mrf.mxu2 }
 0x366   : > { %v1601_v16 = vsel %vm1573_vm2, %v1390_v15, 0.0  ;;  %vm1577_vm2 = vmand %vm1521_vm0, %vm1549_vm1  ;;  %vm1525_vm0 = vcmp.ge.s32.totalorder %v1497_v52, 0  ;;  %vm1553_vm1 = vcmp.lt.s32.totalorder %v1497_v52, 32  ;;  %v1501_v15 = vsub.s32 %v1470_v14, %v4805_v61 }
 0x367   : > { %v1634_v17 = vsel %vm1627_vm12, %v1601_v16, 0.0 }
 0x368   : > { %1635 = vadd.xlane.f32.xlu0 %v1634_v17 }
 0x36d   : > { %v1392_v20 = vpop.f32.mrf.mxu2 }
 0x36e   : > { %v1602_v21 = vsel %vm1574_vm6, %v1392_v20, 0.0  ;;  %vm1578_vm6 = vmand %vm1522_vm3, %vm1550_vm5  ;;  %vm1526_vm3 = vcmp.ge.s32.totalorder %v1498_v62, 0  ;;  %vm1554_vm5 = vcmp.lt.s32.totalorder %v1498_v62, 32  ;;  %v1502_v20 = vsub.s32 %v1471_v19, %v4805_v61 }
 0x36f   : > { %v1637_v23 = vsel %vm1627_vm12, %v1602_v21, 0.0 }
 0x370   : > { %1638 = vadd.xlane.f32.xlu1 %v1637_v23 }
 0x372   : > { %3870 = vmatmul.msk.bf16.gmra.mxu2 %vm1333_vm8, %v4366_v22 }
 0x375   : > { %v1395_v26 = vpop.f32.mrf.mxu2 }
 0x376   : > { %v1603_v27 = vsel %vm1575_vm11, %v1395_v26, 0.0  ;;  %vm1579_vm11 = vmand %vm1523_vm9, %vm1551_vm10  ;;  %vm1527_vm9 = vcmp.ge.s32.totalorder %v1499_v3, 0  ;;  %vm1555_vm10 = vcmp.lt.s32.totalorder %v1499_v3, 32 }
 0x377   : > { %v1640_v28 = vsel %vm1627_vm12, %v1603_v27, 0.0 }
 0x378   : > { %1641 = vadd.xlane.f32.xlu2 %v1640_v28 }
 0x37d   : > { %v1397_v32 = vpop.f32.mrf.mxu2 }
 0x37e   : > { %v1604_v8 = vsel %vm1576_vm15, %v1397_v32, 0.0  ;;  %vm1580_vm15 = vmand %vm1524_vm13, %vm1552_vm14  ;;  %vm1528_vm13 = vcmp.ge.s32.totalorder %v1500_v10, 0  ;;  %vm1556_vm14 = vcmp.lt.s32.totalorder %v1500_v10, 32 }
 0x37f   : > { %v1643_v34 = vsel %vm1627_vm12, %v1604_v8, 0.0 }
 0x380   : > { %1644 = vadd.xlane.f32.xlu0 %v1643_v34  ;;  %v1474_v34 = vadd.s32 144, %v4802_v60 }
 0x382   : > { %3871 = vmatmul.msk.bf16.gmra.mxu2 %vm1333_vm8, %v4367_v33  ;;  %v1505_v35 = vsub.s32 %v1474_v34, %v4805_v61 }
 0x385   : > { %v1400_v37 = vpop.f32.mrf.mxu2 }
 0x386   : > { %v1605_v38 = vsel %vm1577_vm2, %v1400_v37, 0.0  ;;  %vm1581_vm2 = vmand %vm1525_vm0, %vm1553_vm1  ;;  %vm1529_vm0 = vcmp.ge.s32.totalorder %v1501_v15, 0  ;;  %vm1557_vm1 = vcmp.lt.s32.totalorder %v1501_v15, 32  ;;  %v345_v15 = vld [vmem:[%s5549_s3 + $0x38] sm:$0xff] }
 0x387   : > { %v1646_v39 = vsel %vm1627_vm12, %v1605_v38, 0.0 }
 0x388   : > { %1647 = vadd.xlane.f32.xlu0 %v1646_v39  ;;  %v1475_v39 = vadd.s32 152, %v4802_v60 }
 0x38a   : > { %v1506_v40 = vsub.s32 %v1475_v39, %v4805_v61 }
 0x38d   : > { %v1402_v42 = vpop.f32.mrf.mxu2 }
 0x38e   : > { %v1606_v43 = vsel %vm1578_vm6, %v1402_v42, 0.0  ;;  %vm1582_vm6 = vmand %vm1526_vm3, %vm1554_vm5  ;;  %vm1530_vm3 = vcmp.ge.s32.totalorder %v1502_v20, 0  ;;  %vm1558_vm5 = vcmp.lt.s32.totalorder %v1502_v20, 32 }
 0x38f   : > { %v1649_v45 = vsel %vm1627_vm12, %v1606_v43, 0.0 }
 0x390   : > { %1650 = vadd.xlane.f32.xlu1 %v1649_v45 }
 0x392   : > { %3872 = vmatmul.msk.bf16.gmra.mxu2 %vm1333_vm8, %v4368_v44  ;;  %v1476_v44 = vadd.s32 160, %v4802_v60 }
 0x394   : > { %v1507_v45 = vsub.s32 %v1476_v44, %v4805_v61 }
 0x395   : > { %v1405_v48 = vpop.f32.mrf.mxu2 }
 0x396   : > { %v1607_v49 = vsel %vm1579_vm11, %v1405_v48, 0.0  ;;  %vm1583_vm11 = vmand %vm1527_vm9, %vm1555_vm10  ;;  %vm1531_vm9 = vcmp.ge.s32.totalorder %v1503_v25, 0  ;;  %vm1559_vm10 = vcmp.lt.s32.totalorder %v1503_v25, 32 }
 0x397   : > { %v1652_v50 = vsel %vm1627_vm12, %v1607_v49, 0.0  ;;  %v1477_v49 = vadd.s32 168, %v4802_v60 }
 0x398   : > { %1653 = vadd.xlane.f32.xlu0 %v1652_v50 }
 0x399   : > { %v1508_v50 = vsub.s32 %v1477_v49, %v4805_v61 }
 0x39d   : > { %v1407_v53 = vpop.f32.mrf.mxu2 }
 0x39e   : > { %v1608_v54 = vsel %vm1580_vm15, %v1407_v53, 0.0  ;;  %vm1584_vm15 = vmand %vm1528_vm13, %vm1556_vm14  ;;  %vm1532_vm13 = vcmp.ge.s32.totalorder %v1504_v31, 0  ;;  %vm1560_vm14 = vcmp.lt.s32.totalorder %v1504_v31, 32 }
 0x39f   : > { %v1655_v56 = vsel %vm1627_vm12, %v1608_v54, 0.0  ;;  %v1478_v54 = vadd.s32 176, %v4802_v60 }
 0x3a0   : > { %1656 = vadd.xlane.f32.xlu1 %v1655_v56 }
 0x3a1   : > { %v1509_v56 = vsub.s32 %v1478_v54, %v4805_v61 }
 0x3a2   : > { %3873 = vmatmul.msk.bf16.gmra.mxu2 %vm1333_vm8, %v4369_v55 }
 0x3a5   : > { %v1410_v63 = vpop.f32.mrf.mxu2 }
 0x3a6   : > { %v1609_v0 = vsel %vm1581_vm2, %v1410_v63, 0.0  ;;  %vm1585_vm2 = vmand %vm1529_vm0, %vm1557_vm1  ;;  %vm1533_vm0 = vcmp.ge.s32.totalorder %v1505_v35, 0  ;;  %vm1561_vm1 = vcmp.lt.s32.totalorder %v1505_v35, 32  ;;  %v347_v63 = vld [vmem:[%s5549_s3 + $0x48] sm:$0xff] }
 0x3a7   : > { %v1658_v1 = vsel %vm1627_vm12, %v1609_v0, 0.0 }
 0x3a8   : > { %1659 = vadd.xlane.f32.xlu1 %v1658_v1  ;;  %v1479_v1 = vadd.s32 184, %v4802_v60 }
 0x3ad   : > { %v1412_v5 = vpop.f32.mrf.mxu2 }
 0x3ae   : > { %v1610_v6 = vsel %vm1582_vm6, %v1412_v5, 0.0  ;;  %vm1586_vm6 = vmand %vm1530_vm3, %vm1558_vm5  ;;  %vm1534_vm3 = vcmp.ge.s32.totalorder %v1506_v40, 0  ;;  %vm1562_vm5 = vcmp.lt.s32.totalorder %v1506_v40, 32 }
 0x3af   : > { %v1661_v7 = vsel %vm1627_vm12, %v1610_v6, 0.0 }
 0x3b0   : > { %1662 = vadd.xlane.f32.xlu2 %v1661_v7  ;;  %v1510_v7 = vsub.s32 %v1479_v1, %v4805_v61 }
 0x3b5   : > { %v1415_v11 = vpop.f32.mrf.mxu2 }
 0x3b6   : > { %v1611_v12 = vsel %vm1583_vm11, %v1415_v11, 0.0  ;;  %vm1587_vm11 = vmand %vm1531_vm9, %vm1559_vm10  ;;  %vm1535_vm9 = vcmp.ge.s32.totalorder %v1507_v45, 0  ;;  %vm1563_vm10 = vcmp.lt.s32.totalorder %v1507_v45, 32 }
 0x3b7   : > { %v1664_v13 = vsel %vm1627_vm12, %v1611_v12, 0.0 }
 0x3b8   : > { %1665 = vadd.xlane.f32.xlu1 %v1664_v13  ;;  %v1480_v13 = vadd.s32 192, %v4802_v60 }
 0x3ba   : > { %v1511_v14 = vsub.s32 %v1480_v13, %v4805_v61 }
 0x3bd   : > { %v1417_v16 = vpop.f32.mrf.mxu2 }
 0x3be   : > { %v1612_v17 = vsel %vm1584_vm15, %v1417_v16, 0.0  ;;  %vm1588_vm15 = vmand %vm1532_vm13, %vm1560_vm14  ;;  %vm1536_vm13 = vcmp.ge.s32.totalorder %v1508_v50, 0  ;;  %vm1564_vm14 = vcmp.lt.s32.totalorder %v1508_v50, 32 }
 0x3bf   : > { %v1667_v18 = vsel %vm1627_vm12, %v1612_v17, 0.0 }
 0x3c0   : > { %1668 = vadd.xlane.f32.xlu2 %v1667_v18 }
 0x3c5   : > { %v1420_v21 = vpop.f32.mrf.mxu2 }
 0x3c6   : > { %v1613_v22 = vsel %vm1585_vm2, %v1420_v21, 0.0  ;;  %vm1589_vm2 = vmand %vm1533_vm0, %vm1561_vm1  ;;  %vm1537_vm0 = vcmp.ge.s32.totalorder %v1509_v56, 0  ;;  %vm1565_vm1 = vcmp.lt.s32.totalorder %v1509_v56, 32 }
 0x3c7   : > { %v1670_v23 = vsel %vm1627_vm12, %v1613_v22, 0.0 }
 0x3c8   : > { %1671 = vadd.xlane.f32.xlu2 %v1670_v23 }
 0x3cb   : > { %v4903_v3 = vpop.xlane.xlu2 %1629 }
 0x3cd   : > { %v1422_v26 = vpop.f32.mrf.mxu2 }
 0x3ce   : > { %v1614_v27 = vsel %vm1586_vm6, %v1422_v26, 0.0  ;;  %vm1590_vm6 = vmand %vm1534_vm3, %vm1562_vm5  ;;  %vm1538_vm3 = vcmp.ge.s32.totalorder %v1510_v7, 0  ;;  %vm1566_vm5 = vcmp.lt.s32.totalorder %v1510_v7, 32 }
 0x3cf   : > { %v1673_v28 = vsel %vm1627_vm12, %v1614_v27, 0.0 }
 0x3d0   : > { %1674 = vadd.xlane.f32.xlu0 %v1673_v28  ;;  %v1482_v28 = vadd.s32 208, %v4802_v60 }
 0x3d2   : > { %v1513_v30 = vsub.s32 %v1482_v28, %v4805_v61 }
 0x3d3   : > { %v1633_v16 = vpop.xlane.xlu2 %1632 }
 0x3d4   : > { %v1713_v21 = vadd.f32 %v1633_v16, %v345_v15 }
 0x3d5   : > { %v1425_v32 = vpop.f32.mrf.mxu2 }
 0x3d6   : > { %v1615_v8 = vsel %vm1587_vm11, %v1425_v32, 0.0  ;;  %vm1591_vm11 = vmand %vm1535_vm9, %vm1563_vm10  ;;  %vm1539_vm9 = vcmp.ge.s32.totalorder %v1511_v14, 0  ;;  %vm1567_vm10 = vcmp.lt.s32.totalorder %v1511_v14, 32  ;;  %v1481_v32 = vadd.s32 200, %v4802_v60 }
 0x3d7   : > { %v1676_v33 = vsel %vm1627_vm12, %v1615_v8, 0.0  ;;  %v1483_v8 = vadd.s32 216, %v4802_v60 }
 0x3d8   : > { %1677 = vadd.xlane.f32.xlu2 %v1676_v33  ;;  %v1512_v33 = vsub.s32 %v1481_v32, %v4805_v61 }
 0x3d9   : > { %v1514_v34 = vsub.s32 %v1483_v8, %v4805_v61 }
 0x3db   : > { %v4908_v11 = vpop.xlane.xlu0 %1635 }
 0x3dd   : > { %v1427_v36 = vpop.f32.mrf.mxu2 }
 0x3de   : > { %v1616_v37 = vsel %vm1588_vm15, %v1427_v36, 0.0  ;;  %vm1592_vm15 = vmand %vm1536_vm13, %vm1564_vm14  ;;  %vm1541_vm13 = vcmp.ge.s32.totalorder %v1513_v30, 0  ;;  %vm1569_vm14 = vcmp.lt.s32.totalorder %v1513_v30, 32  ;;  %v1746_v30 = vld [vmem:[%s327_s16 + $0x8] sm:$0xff] }
 0x3df   : > { %v1679_v38 = vsel %vm1627_vm12, %v1616_v37, 0.0 }
 0x3e0   : > { %1680 = vadd.xlane.f32.xlu0 %v1679_v38 }
 0x3e3   : > { %v1639_v55 = vpop.xlane.xlu1 %1638 }
 0x3e4   : > { %v1715_v2 = vadd.f32 %v1639_v55, %v347_v63 }
 0x3e5   : > { %v1430_v41 = vpop.f32.mrf.mxu2 }
 0x3e6   : > { %v1617_v42 = vsel %vm1589_vm2, %v1430_v41, 0.0  ;;  %vm1593_vm2 = vmand %vm1537_vm0, %vm1565_vm1  ;;  %vm1540_vm0 = vcmp.ge.s32.totalorder %v1512_v33, 0  ;;  %vm1568_vm1 = vcmp.lt.s32.totalorder %v1512_v33, 32 }
 0x3e7   : > { %v1682_v43 = vsel %vm1627_vm12, %v1617_v42, 0.0 }
 0x3e8   : > { %1683 = vadd.xlane.f32.xlu0 %v1682_v43 }
 0x3eb   : > { %v1642_v43 = vpop.xlane.xlu2 %1641 }
 0x3ed   : > { %v1432_v46 = vpop.f32.mrf.mxu2 }
 0x3ee   : > { %v1618_v47 = vsel %vm1590_vm6, %v1432_v46, 0.0  ;;  %vm1594_vm6 = vmand %vm1538_vm3, %vm1566_vm5  ;;  %vm1570_vm3 = vcmp.lt.s32.totalorder %v1514_v34, 32 }
 0x3ef   : > { %v1685_v48 = vsel %vm1627_vm12, %v1618_v47, 0.0  ;;  %vm1596_vm5 = vmand %vm1540_vm0, %vm1568_vm1  ;;  %vm2126_vm0 = vcmp.eq.s32.totalorder %v4799_v59, 5  ;;  %vm2157_vm1 = vcmp.eq.s32.totalorder %v4799_v59, 6 }
 0x3f0   : > { %1686 = vadd.xlane.f32.xlu1 %v1685_v48 }
 0x3f3   : > { %v1645_v19 = vpop.xlane.xlu0 %1644 }
 0x3f4   : > { %v1717_v22 = vadd.f32 %v1713_v21, %v1645_v19 }
 0x3f5   : > { %v1435_v51 = vpop.f32.mrf.mxu2 }
 0x3f6   : > { %v1619_v52 = vsel %vm1591_vm11, %v1435_v51, 0.0  ;;  %vm1595_vm11 = vmand %vm1539_vm9, %vm1567_vm10  ;;  %vm1740_vm9 = vcmask 7168   ;;  %vm1971_vm10 = vcmp.eq.s32.totalorder %v4799_v59, 0 }
 0x3f7   : > { %v1688_v53 = vsel %vm1627_vm12, %v1619_v52, 0.0  ;;  %v344_v52 = vld [vmem:[%s5549_s3 + $0x30] sm:$0xff] }
 0x3f8   : > { %1689 = vadd.xlane.f32.xlu0 %v1688_v53  ;;  %v1712_v55 = vadd.f32 %v4903_v3, %v344_v52  ;;  %v346_v3 = vld [vmem:[%s5549_s3 + $0x40] sm:$0xff] }
 0x3fa   : > { %v1716_v56 = vadd.f32 %v1712_v55, %v1642_v43 }
 0x3fb   : > { %v1648_v61 = vpop.xlane.xlu0 %1647 }
 0x3fd   : > { %v1437_v57 = vpop.f32.mrf.mxu2 }
 0x3fe   : > { %v1620_v62 = vsel %vm1592_vm15, %v1437_v57, 0.0  ;;  %vm1597_vm15 = vmand %vm1541_vm13, %vm1569_vm14  ;;  %vm2033_vm13 = vcmp.eq.s32.totalorder %v4799_v59, 2  ;;  %vm2064_vm14 = vcmp.eq.s32.totalorder %v4799_v59, 3 }
 0x3ff   : > { %v1691_v0 = vsel %vm1627_vm12, %v1620_v62, 0.0 }
 0x400   : > { %1692 = vadd.xlane.f32.xlu1 %v1691_v0 }
 0x403   : > { %v1651_v5 = vpop.xlane.xlu1 %1650 }
 0x404   : > { %v4905_v6 = vadd.f32 %v1715_v2, %v1651_v5 }
 0x405   : > { %v1440_v9 = vpop.f32.mrf.mxu2 }
 0x406   : > { %v1621_v10 = vsel %vm1593_vm2, %v1440_v9, 0.0  ;;  %vm1542_vm2 = vcmp.ge.s32.totalorder %v1514_v34, 0 }
 0x407   : > { %v1694_v12 = vsel %vm1627_vm12, %v1621_v10, 0.0  ;;  %v1714_v10 = vadd.f32 %v4908_v11, %v346_v3 }
 0x408   : > { %1695 = vadd.xlane.f32.xlu1 %v1694_v12 }
 0x409   : > { %v1718_v12 = vadd.f32 %v1714_v10, %v1648_v61  ;;  %v4377_v61 = vld [vmem:[%s5548_s2 + $0x140] sm:$0xff] }
 0x40b   : > { %v1654_v44 = vpop.xlane.xlu0 %1653 }
 0x40c   : > { %v1720_v62 = vadd.f32 %v1716_v56, %v1654_v44 }
 0x40d   : > { %v1442_v17 = vpop.f32.mrf.mxu2 }
 0x40e   : > { %v1622_v18 = vsel %vm1594_vm6, %v1442_v17, 0.0  ;;  %vm1598_vm6 = vmand %vm1542_vm2, %vm1570_vm3 }
 0x40f   : > { %v1697_v20 = vsel %vm1627_vm12, %v1622_v18, 0.0 }
 0x410   : > { %1698 = vadd.xlane.f32.xlu2 %v1697_v20 }
 0x413   : > { %v1657_v23 = vpop.xlane.xlu1 %1656 }
 0x414   : > { %v4917_v24 = vadd.f32 %v1717_v22, %v1657_v23 }
 0x415   : > { %v1445_v25 = vpop.f32.mrf.mxu2 }
 0x416   : > { %v1623_v26 = vsel %vm1595_vm11, %v1445_v25, 0.0  ;;  %v1745_v25 = vld [vmem:[%s327_s16] sm:$0xff]  ;;  %vm2002_vm11 = vcmp.eq.s32.totalorder %v4799_v59, 1 }
 0x417   : > { %v1700_v27 = vsel %vm1627_vm12, %v1623_v26, 0.0 }
 0x418   : > { %1701 = vadd.xlane.f32.xlu1 %v1700_v27 }
 0x41b   : > { %v1660_v42 = vpop.xlane.xlu1 %1659 }
 0x41c   : > { %v1722_v14 = vadd.f32 %v1718_v12, %v1660_v42  ;;  %v4378_v42 = vld [vmem:[%s5548_s2 + $0x148] sm:$0xff] }
 0x41d   : > { %v1447_v31 = vpop.f32.mrf.mxu2 }
 0x41e   : > { %v1624_v38 = vsel %vm1596_vm5, %v1447_v31, 0.0 }
 0x41f   : > { %v1703_v60 = vsel %vm1627_vm12, %v1624_v38, 0.0  ;;  %v4372_v38 = vld [vmem:[%s5548_s2 + $0x118] sm:$0xff] }
 0x423   : > { %v1663_v46 = vpop.xlane.xlu2 %1662 }
 0x424   : > { %v1723_v19 = vadd.f32 %v4905_v6, %v1663_v46 }
 0x425   : > { %v1450_v35 = vpop.f32.mrf.mxu2 }
 0x426   : > { %v1625_v36 = vsel %vm1597_vm15, %v1450_v35, 0.0  ;;  %vm2095_vm15 = vcmp.eq.s32.totalorder %v4799_v59, 4 }
 0x427   : > { %v1706_v37 = vsel %vm1627_vm12, %v1625_v36, 0.0  ;;  %v4370_v36 = vld [vmem:[%s5548_s2 + $0x108] sm:$0xff] }
 0x428   : > { %1707 = vadd.xlane.f32.xlu2 %v1706_v37  ;;  %v4371_v37 = vld [vmem:[%s5548_s2 + $0x110] sm:$0xff] }
 0x42b   : > { %v1666_v45 = vpop.xlane.xlu1 %1665 }
 0x42c   : > { %v1724_v0 = vadd.f32 %v1720_v62, %v1666_v45  ;;  %v4379_v45 = vld [vmem:[%s5548_s2 + $0x150] sm:$0xff] }
 0x42d   : > { %v1452_v39 = vpop.f32.mrf.mxu2 }
 0x42e   : > { %v1626_v40 = vsel %vm1598_vm6, %v1452_v39, 0.0  ;;  %v4373_v39 = vld [vmem:[%s5548_s2 + $0x120] sm:$0xff] }
 0x42f   : > { %v1709_v41 = vsel %vm1627_vm12, %v1626_v40, 0.0  ;;  %v4374_v40 = vld [vmem:[%s5548_s2 + $0x128] sm:$0xff] }
 0x430   : > { %1704 = vadd.xlane.f32.xlu2 %v1703_v60  ;;  %1710 = vadd.xlane.f32.xlu0 %v1709_v41  ;;  %v4375_v60 = vld [vmem:[%s5548_s2 + $0x130] sm:$0xff]  ;;  %v4376_v41 = vld [vmem:[%s5548_s2 + $0x138] sm:$0xff] }
 0x433   : > { %v1669_v49 = vpop.xlane.xlu2 %1668 }
 0x434   : > { %v1725_v21 = vadd.f32 %v4917_v24, %v1669_v49 }
 0x43b   : > { %v1672_v53 = vpop.xlane.xlu2 %1671 }
 0x43c   : > { %v1726_v15 = vadd.f32 %v1722_v14, %v1672_v53 }
 0x443   : > { %v1675_v47 = vpop.xlane.xlu0 %1674 }
 0x444   : > { %v1727_v22 = vadd.f32 %v1723_v19, %v1675_v47 }
 0x44b   : > { %v1678_v63 = vpop.xlane.xlu2 %1677 }
 0x44c   : > { %v1728_v2 = vadd.f32 %v1724_v0, %v1678_v63 }
 0x453   : > { %v1681_v50 = vpop.xlane.xlu0 %1680 }
 0x454   : > { %v1729_v11 = vadd.f32 %v1725_v21, %v1681_v50  ;;  %v348_v21 = vld [vmem:[%s5549_s3 + $0x50] sm:$0xff] }
 0x45b   : > { %v1684_v54 = vpop.xlane.xlu0 %1683 }
 0x45c   : > { %v1730_v16 = vadd.f32 %v1726_v15, %v1684_v54  ;;  %v4382_v54 = vld [vmem:[%s5548_s2 + $0x168] sm:$0xff] }
 0x463   : > { %v1687_v48 = vpop.xlane.xlu1 %1686 }
 0x464   : > { %v1731_v23 = vadd.f32 %v1727_v22, %v1687_v48  ;;  %v4380_v48 = vld [vmem:[%s5548_s2 + $0x158] sm:$0xff] }
 0x465   : > { %v349_v22 = vld [vmem:[%s5549_s3 + $0x58] sm:$0xff] }
 0x46b   : > { %v1690_v1 = vpop.xlane.xlu0 %1689 }
 0x46c   : > { %v1732_v5 = vadd.f32 %v1728_v2, %v1690_v1 }
 0x473   : > { %v1693_v51 = vpop.xlane.xlu1 %1692 }
 0x474   : > { %v1733_v26 = vadd.f32 %v1729_v11, %v1693_v51  ;;  %v4381_v51 = vld [vmem:[%s5548_s2 + $0x160] sm:$0xff] }
 0x47b   : > { %v1696_v57 = vpop.xlane.xlu1 %1695 }
 0x47c   : > { %v1734_v17 = vadd.f32 %v1730_v16, %v1696_v57  ;;  %v4383_v57 = vld [vmem:[%s5548_s2 + $0x170] sm:$0xff] }
 0x483   : > { %v1699_v13 = vpop.xlane.xlu2 %1698 }
 0x484   : > { %v1735_v27 = vadd.f32 %v1731_v23, %v1699_v13 }
 0x48b   : > { %v1702_v7 = vpop.xlane.xlu1 %1701 }
 0x48c   : > { %v1736_v9 = vadd.f32 %v1732_v5, %v1702_v7 }
 0x48e   : > { %1741 = vst.msk [vmem:[%s4937_s10] sm:$0xff] %vm1740_vm9, %v1736_v9 }
 0x49b   : > { %v1708_v18 = vpop.xlane.xlu2 %1707 }
 0x49c   : > { %v1738_v20 = vadd.f32 %v1734_v17, %v1708_v18  ;;  %v350_v18 = vld [vmem:[%s5549_s3 + $0x60] sm:$0x1] }
 0x49e   : > { %1743 = vst.msk [vmem:[%s4937_s10 + $0x10] sm:$0xff] %vm1740_vm9, %v1738_v20  ;;  %v1747_v31 = vmul.f32 %v1745_v25, %v1738_v20 }
 0x4a0   : > { %v1749_v33 = vadd.f32 %v1747_v31, %v1736_v9 }
 0x4a3   : > { %v1705_v28 = vpop.xlane.xlu2 %1704  ;;  %v1711_v6 = vpop.xlane.xlu0 %1710 }
 0x4a4   : > { %v1737_v32 = vadd.f32 %v1733_v26, %v1705_v28  ;;  %v1739_v8 = vadd.f32 %v1735_v27, %v1711_v6 }
 0x4a6   : > { %1742 = vst.msk [vmem:[%s4937_s10 + $0x8] sm:$0xff] %vm1740_vm9, %v1737_v32  ;;  %v1748_v24 = vmul.f32 %v1746_v30, %v1739_v8 }
 0x4a7   : > { %1744 = vst.msk [vmem:[%s4937_s10 + $0x18] sm:$0xff] %vm1740_vm9, %v1739_v8 }
 0x4a8   : > { %v1750_v34 = vadd.f32 %v1748_v24, %v1737_v32 }
 0x4aa   : > { %v1779_v35 = vpack.c.bf16 %v1750_v34, %v1749_v33 }
 0x4ac   : > { %1899 = vmatpush.bf16.msrb.mxu3 %v1779_v35 }
 0x4af   : > { %3930 = vmatmul.msk.bf16.vlgmr.msrb.gmra.mxu3 %vm533_vm4, %v4370_v36 }
 0x4bf   : > { %3931 = vmatmul.msk.bf16.gmra.mxu3 %vm533_vm4, %v4371_v37 }
 0x4cf   : > { %3932 = vmatmul.msk.bf16.gmra.mxu3 %vm533_vm4, %v4372_v38 }
 0x4df   : > { %3933 = vmatmul.msk.bf16.gmra.mxu3 %vm533_vm4, %v4373_v39 }
 0x4ef   : > { %3934 = vmatmul.msk.bf16.gmra.mxu3 %vm533_vm4, %v4374_v40 }
 0x4ff   : > { %3935 = vmatmul.msk.bf16.gmra.mxu3 %vm533_vm4, %v4375_v60  ;;  %v4471_v60 = vmov 0.0  }
 0x50f   : > { %3936 = vmatmul.msk.bf16.gmra.mxu3 %vm533_vm4, %v4376_v41  ;;  %v3944_v41 = vsel %vm1971_vm10, 1.0, %v4471_v60 }
 0x51f   : > { %3937 = vmatmul.msk.bf16.gmra.mxu3 %vm533_vm4, %v4377_v61 }
 0x52f   : > { %3938 = vmatmul.msk.bf16.gmra.mxu3 %vm533_vm4, %v4378_v42 }
 0x532   : > { %v1901_v43 = vpop.f32.mrf.mxu3 }
 0x533   : > { %1976 = vperm.xlu1 %4459, %v1901_v43   ;;  %v353_v43 = vld [vmem:[%s5549_s3 + $0x78] sm:$0xff] }
 0x53a   : > { %v1903_v44 = vpop.f32.mrf.mxu3 }
 0x53b   : > { %1981 = vperm.xlu0 %4458, %v1903_v44   ;;  %v3945_v44 = vsel %vm2002_vm11, 1.0, %v4471_v60 }
 0x53f   : > { %3939 = vmatmul.msk.bf16.gmra.mxu3 %vm533_vm4, %v4379_v45 }
 0x542   : > { %v1906_v46 = vpop.f32.mrf.mxu3 }
 0x543   : > { %1986 = vperm.xlu0 %4458, %v1906_v46   ;;  %v354_v46 = vld [vmem:[%s5549_s3 + $0x80] sm:$0xff] }
 0x54a   : > { %v1908_v47 = vpop.f32.mrf.mxu3 }
 0x54b   : > { %1991 = vperm.xlu1 %4459, %v1908_v47  }
 0x54f   : > { %3940 = vmatmul.msk.bf16.gmra.mxu3 %vm533_vm4, %v4380_v48  ;;  %v3946_v48 = vsel %vm2033_vm13, 1.0, %v4471_v60 }
 0x552   : > { %v1911_v49 = vpop.f32.mrf.mxu3 }
 0x553   : > { %2007 = vperm.xlu0 %4458, %v1911_v49  }
 0x55a   : > { %v1913_v50 = vpop.f32.mrf.mxu3 }
 0x55b   : > { %2012 = vperm.xlu2 %4460, %v1913_v50  }
 0x55f   : > { %3941 = vmatmul.msk.bf16.gmra.mxu3 %vm533_vm4, %v4381_v51 }
 0x562   : > { %v1916_v52 = vpop.f32.mrf.mxu3 }
 0x563   : > { %2017 = vperm.xlu2 %4460, %v1916_v52  }
 0x56a   : > { %v1918_v53 = vpop.f32.mrf.mxu3 }
 0x56b   : > { %2022 = vperm.xlu0 %4458, %v1918_v53   ;;  %v351_v53 = vld [vmem:[%s5549_s3 + $0x68] sm:$0xff] }
 0x56f   : > { %3942 = vmatmul.msk.bf16.gmra.mxu3 %vm533_vm4, %v4382_v54 }
 0x572   : > { %v1921_v55 = vpop.f32.mrf.mxu3 }
 0x573   : > { %2038 = vperm.xlu2 %4460, %v1921_v55  }
 0x57a   : > { %v1923_v56 = vpop.f32.mrf.mxu3 }
 0x57b   : > { %2043 = vperm.xlu1 %4459, %v1923_v56  }
 0x57f   : > { %3943 = vmatmul.msk.bf16.gmra.mxu3 %vm533_vm4, %v4383_v57 }
 0x582   : > { %v1926_v62 = vpop.f32.mrf.mxu3 }
 0x583   : > { %2048 = vperm.xlu2 %4460, %v1926_v62   ;;  %v3947_v62 = vsel %vm2064_vm14, 1.0, %v4471_v60 }
 0x58a   : > { %v1928_v63 = vpop.f32.mrf.mxu3 }
 0x58b   : > { %2053 = vperm.xlu1 %4459, %v1928_v63  }
 0x592   : > { %v1931_v0 = vpop.f32.mrf.mxu3 }
 0x593   : > { %2069 = vperm.xlu1 %4459, %v1931_v0  }
 0x59a   : > { %v1933_v1 = vpop.f32.mrf.mxu3 }
 0x59b   : > { %2074 = vperm.xlu0 %4458, %v1933_v1   ;;  %v352_v1 = vld [vmem:[%s5549_s3 + $0x70] sm:$0xff] }
 0x5a2   : > { %v1936_v2 = vpop.f32.mrf.mxu3 }
 0x5a3   : > { %2079 = vperm.xlu1 %4459, %v1936_v2  }
 0x5a5   : > { %v1977_v23 = vpop.permute.xlu1 %1976 }
 0x5a6   : > { %v1994_v50 = vmul.f32 %v3944_v41, %v1977_v23 }
 0x5aa   : > { %v1938_v5 = vpop.f32.mrf.mxu3 }
 0x5ab   : > { %2084 = vperm.xlu0 %4458, %v1938_v5  }
 0x5ad   : > { %v1982_v11 = vpop.permute.xlu0 %1981 }
 0x5ae   : > { %v1995_v56 = vmul.f32 %v3944_v41, %v1982_v11 }
 0x5b2   : > { %v1941_v7 = vpop.f32.mrf.mxu3 }
 0x5b3   : > { %2100 = vperm.xlu0 %4458, %v1941_v7  }
 0x5b5   : > { %v2013_v25 = vpop.permute.xlu2 %2012  ;;  %v1987_v26 = vpop.permute.xlu0 %1986 }
 0x5b6   : > { %v1996_v61 = vmul.f32 %v3944_v41, %v1987_v26 }
 0x5b8   : > { %v2000_v51 = vadd.f32 %v1996_v61, %v353_v43 }
 0x5ba   : > { %v1943_v9 = vpop.f32.mrf.mxu3 }
 0x5bb   : > { %2105 = vperm.xlu2 %4460, %v1943_v9   ;;  %v1998_v9 = vadd.f32 %v1994_v50, %v351_v53 }
 0x5bd   : > { %v1992_v27 = vpop.permute.xlu1 %1991  ;;  %v2018_v28 = vpop.permute.xlu2 %2017 }
 0x5be   : > { %v1997_v45 = vmul.f32 %v3944_v41, %v1992_v27  ;;  %v2027_v47 = vmul.f32 %v3945_v44, %v2018_v28 }
 0x5c0   : > { %v2001_v54 = vadd.f32 %v1997_v45, %v354_v46  ;;  %v2031_v57 = vadd.f32 %v2027_v47, %v2000_v51 }
 0x5c2   : > { %v1946_v3 = vpop.f32.mrf.mxu3 }
 0x5c3   : > { %2110 = vperm.xlu0 %4458, %v1946_v3   ;;  %v2026_v3 = vmul.f32 %v3945_v44, %v2013_v25  ;;  %v3950_v25 = vsel %vm2157_vm1, 1.0, %v4471_v60 }
 0x5c5   : > { %v2008_v30 = vpop.permute.xlu0 %2007 }
 0x5ca   : > { %v1948_v10 = vpop.f32.mrf.mxu3 }
 0x5cb   : > { %2115 = vperm.xlu2 %4460, %v1948_v10  }
 0x5cd   : > { %v2039_v31 = vpop.permute.xlu2 %2038 }
 0x5ce   : > { %v2056_v27 = vmul.f32 %v3946_v48, %v2039_v31 }
 0x5d2   : > { %v1951_v12 = vpop.f32.mrf.mxu3 }
 0x5d3   : > { %2131 = vperm.xlu2 %4460, %v1951_v12   ;;  %v3948_v12 = vsel %vm2095_vm15, 1.0, %v4471_v60 }
 0x5da   : > { %v1953_v13 = vpop.f32.mrf.mxu3 }
 0x5dd   : > { %v2023_v32 = vpop.permute.xlu0 %2022  ;;  %v2049_v24 = vpop.permute.xlu2 %2048 }
 0x5de   : > { %v2028_v49 = vmul.f32 %v3945_v44, %v2023_v32  ;;  %v2058_v52 = vmul.f32 %v3946_v48, %v2049_v24 }
 0x5e0   : > { %v2032_v2 = vadd.f32 %v2028_v49, %v2001_v54  ;;  %v2062_v10 = vadd.f32 %v2058_v52, %v2031_v57 }
 0x5e2   : > { %v1956_v14 = vpop.f32.mrf.mxu3 }
 0x5e3   : > { %2141 = vperm.xlu2 %4460, %v1956_v14  }
 0x5ea   : > { %v1958_v15 = vpop.f32.mrf.mxu3 }
 0x5eb   : > { %2146 = vperm.xlu1 %4459, %v1958_v15  }
 0x5ed   : > { %v2044_v6 = vpop.permute.xlu1 %2043 }
 0x5f2   : > { %v1961_v16 = vpop.f32.mrf.mxu3 }
 0x5fa   : > { %v1963_v17 = vpop.f32.mrf.mxu3 }
 0x5fb   : > { %2167 = vperm.xlu2 %4460, %v1963_v17   ;;  %v1999_v17 = vadd.f32 %v1995_v56, %v352_v1  ;;  %v4387_v1 = vld [vmem:[%s5548_s2 + $0x190] sm:$0xff] }
 0x5fd   : > { %v2054_v8 = vpop.permute.xlu1 %2053  ;;  %v2030_v26 = vadd.f32 %v2026_v3, %v1999_v17 }
 0x5fe   : > { %v2059_v55 = vmul.f32 %v3946_v48, %v2054_v8 }
 0x600   : > { %v2063_v14 = vadd.f32 %v2059_v55, %v2032_v2  ;;  %v4388_v2 = vld [vmem:[%s5548_s2 + $0x198] sm:$0xff] }
 0x602   : > { %v1966_v19 = vpop.f32.mrf.mxu3 }
 0x603   : > { %3405 = vperm.xlu2 %4460, %v350_v18   ;;  %2172 = vperm.xlu1 %4459, %v1966_v19   ;;  %v2025_v18 = vmul.f32 %v3945_v44, %v2008_v30  ;;  %v2057_v19 = vmul.f32 %v3946_v48, %v2044_v6 }
 0x605   : > { %v5022_v34 = vpop.permute.xlu1 %2069 }
 0x60a   : > { %v1968_v20 = vpop.f32.mrf.mxu3 }
 0x60b   : > { %2136 = vperm.xlu1 %4459, %v1953_v13   ;;  %2177 = vperm.xlu0 %4458, %v1968_v20   ;;  %v3949_v20 = vsel %vm2126_vm0, 1.0, %v4471_v60 }
 0x60d   : > { %v2075_v33 = vpop.permute.xlu0 %2074 }
 0x60e   : > { %v2088_v28 = vmul.f32 %v3947_v62, %v2075_v33 }
 0x613   : > { %2559 = vperm.xlu1 %4459, %v348_v21   ;;  %2162 = vperm.xlu0 %4458, %v1961_v16  }
 0x615   : > { %v5024_v35 = vpop.permute.xlu2 %2105  ;;  %v2080_v37 = vpop.permute.xlu1 %2079 }
 0x616   : > { %v2089_v5 = vmul.f32 %v3947_v62, %v2080_v37  ;;  %v2061_v37 = vadd.f32 %v2057_v19, %v2030_v26  ;;  %v2119_v30 = vmul.f32 %v3948_v12, %v5024_v35  ;;  %v4003_v26 = vld [vmem:[%s5551_s5 + $0x10] sm:$0xf] }
 0x618   : > { %v2093_v21 = vadd.f32 %v2089_v5, %v2062_v10  ;;  %v4389_v5 = vld [vmem:[%s5548_s2 + $0x1a0] sm:$0xff]  ;;  %v4391_v10 = vld [vmem:[%s5548_s2 + $0x1b0] sm:$0xff] }
 0x61b   : > { %2564 = vperm.xlu0 %4458, %v349_v22  }
 0x61d   : > { %v2085_v36 = vpop.permute.xlu0 %2084 }
 0x61e   : > { %v2090_v7 = vmul.f32 %v3947_v62, %v2085_v36  ;;  %v2029_v36 = vadd.f32 %v2025_v18, %v1998_v9  ;;  %v4011_v9 = vld [vmem:[%s5551_s5 + $0x20] sm:$0xf] }
 0x61f   : > { %v2539_v3 = vand.u32 %v4011_v9, %v4530_v4  ;;  %v4023_v9 = vld [vmem:[%s5552_s6 + $0x30] sm:$0xf] }
 0x620   : > { %v2094_v22 = vadd.f32 %v2090_v7, %v2063_v14  ;;  %v2060_v44 = vadd.f32 %v2056_v27, %v2029_v36  ;;  %v4390_v7 = vld [vmem:[%s5548_s2 + $0x1a8] sm:$0xff]  ;;  %v4392_v14 = vld [vmem:[%s5548_s2 + $0x1b8] sm:$0xff] }
 0x621   : > { %2548 = vmatpush.bf16.msra.mxu2 %v2539_v3  ;;  %v4400_v3 = vld [vmem:[%s5552_s6 + $0x34] sm:$0xf0] }
 0x625   : > { %v2116_v38 = vpop.permute.xlu2 %2115  ;;  %v5028_v39 = vpop.permute.xlu0 %2100 }
 0x626   : > { %v2121_v15 = vmul.f32 %v3948_v12, %v2116_v38  ;;  %v2087_v38 = vmul.f32 %v3947_v62, %v5022_v34  ;;  %v2118_v31 = vmul.f32 %v3948_v12, %v5028_v39  ;;  %v4384_v39 = vld [vmem:[%s5548_s2 + $0x178] sm:$0xff] }
 0x628   : > { %v2125_v32 = vadd.f32 %v2121_v15, %v2094_v22  ;;  %v2091_v46 = vadd.f32 %v2087_v38, %v2060_v44  ;;  %v4009_v44 = vld [vmem:[%s5551_s5 + $0x1c] sm:$0xf] }
 0x62a   : > { %v2122_v50 = vadd.f32 %v2118_v31, %v2091_v46 }
 0x62d   : > { %v5031_v42 = vpop.permute.xlu2 %2131 }
 0x62e   : > { %v2149_v48 = vmul.f32 %v3949_v20, %v5031_v42  ;;  %v4001_v42 = vld [vmem:[%s5551_s5 + $0xc] sm:$0xf] }
 0x62f   : > { %v2414_v62 = vand.u32 %v4001_v42, %v4530_v4  ;;  %v4404_v42 = vld [vmem:[%s5552_s6 + $0x54] sm:$0x70] }
 0x630   : > { %v2153_v52 = vadd.f32 %v2149_v48, %v2122_v50 }
 0x631   : > { %2423 = vmatpush.bf16.msrb.mxu1 %v2414_v62 }
 0x635   : > { %v2111_v63 = vpop.permute.xlu0 %2110 }
 0x636   : > { %v2120_v16 = vmul.f32 %v3948_v12, %v2111_v63  ;;  %v4385_v63 = vld [vmem:[%s5548_s2 + $0x180] sm:$0xff] }
 0x637   : > { %v3996_v12 = vld [vmem:[%s5551_s5 + $0x4] sm:$0xf] }
 0x638   : > { %v2124_v8 = vadd.f32 %v2120_v16, %v2093_v21  ;;  %v2334_v16 = vld [vmem:[%s5551_s5] sm:$0xf] }
 0x639   : > { %v2366_v17 = vand.u32 %v4530_v4, %v2334_v16 }
 0x63d   : > { %v2142_v13 = vpop.permute.xlu2 %2141 }
 0x63e   : > { %v2151_v11 = vmul.f32 %v3949_v20, %v2142_v13  ;;  %v2346_v13 = vand.u32 %v3996_v12, %v4530_v4 }
 0x640   : > { %v2155_v6 = vadd.f32 %v2151_v11, %v2124_v8  ;;  %v4005_v8 = vld [vmem:[%s5551_s5 + $0x14] sm:$0xf] }
 0x655   : > { %v2168_v34 = vpop.permute.xlu2 %2167 }
 0x656   : > { %v2181_v53 = vmul.f32 %v3950_v25, %v2168_v34 }
 0x65d   : > { %v2147_v40 = vpop.permute.xlu1 %2146 }
 0x65e   : > { %v2152_v23 = vmul.f32 %v3949_v20, %v2147_v40  ;;  %v2092_v40 = vadd.f32 %v2088_v28, %v2061_v37  ;;  %v2439_v28 = vand.u32 %v4003_v26, %v4530_v4 }
 0x660   : > { %v2156_v61 = vadd.f32 %v2152_v23, %v2125_v32  ;;  %v2123_v47 = vadd.f32 %v2119_v30, %v2092_v40  ;;  %v2514_v40 = vand.u32 %v4009_v44, %v4530_v4  ;;  %v4398_v44 = vld [vmem:[%s5552_s6 + $0x24] sm:$0x70] }
 0x675   : > { %v2173_v0 = vpop.permute.xlu1 %2172 }
 0x676   : > { %v2182_v24 = vmul.f32 %v3950_v25, %v2173_v0  ;;  %v4386_v0 = vld [vmem:[%s5548_s2 + $0x188] sm:$0xff] }
 0x678   : > { %v2186_v33 = vadd.f32 %v2182_v24, %v2155_v6  ;;  %v2464_v24 = vand.u32 %v4005_v8, %v4530_v4 }
 0x67a   : > { %2473 = vmatpush.bf16.msra.mxu1 %v2464_v24 }
 0x67d   : > { %v2137_v59 = vpop.permute.xlu1 %2136  ;;  %v2178_v41 = vpop.permute.xlu0 %2177 }
 0x67e   : > { %v2183_v43 = vmul.f32 %v3950_v25, %v2178_v41  ;;  %v2150_v60 = vmul.f32 %v3949_v20, %v2137_v59  ;;  %v3999_v20 = vld [vmem:[%s5551_s5 + $0x8] sm:$0xf]  ;;  %v4007_v41 = vld [vmem:[%s5551_s5 + $0x18] sm:$0xf] }
 0x67f   : > { %v2389_v22 = vand.u32 %v3999_v20, %v4530_v4  ;;  %v2489_v30 = vand.u32 %v4007_v41, %v4530_v4  ;;  %v4067_v41 = vld [vmem:[%s5552_s6 + $0x28] sm:$0x70] }
 0x680   : > { %v2187_v45 = vadd.f32 %v2183_v43, %v2156_v61  ;;  %v2154_v51 = vadd.f32 %v2150_v60, %v2123_v47 }
 0x682   : > { %v2207_v49 = vpack.c.bf16 %v2187_v45, %v2186_v33  ;;  %v2185_v55 = vadd.f32 %v2181_v53, %v2154_v51 }
 0x684   : > { %2286 = vmatpush.bf16.msra.mxu0 %v2207_v49 }
 0x685   : > { %v2163_v35 = vpop.permute.xlu0 %2162 }
 0x686   : > { %v2180_v54 = vmul.f32 %v3950_v25, %v2163_v35 }
 0x688   : > { %v2184_v56 = vadd.f32 %v2180_v54, %v2153_v52 }
 0x68a   : > { %v2206_v57 = vpack.c.bf16 %v2185_v55, %v2184_v56 }
 0x68c   : > { %2287 = vmatpush.bf16.msra.mxu0 %v2206_v57 }
 0x68f   : > { %3987 = vmatmul.msk.bf16.vlgmr.msra.gmra.mxu0 %vm1333_vm8, %v4384_v39  ;;  %v4039_v39 = vld [vmem:[%s5552_s6 + $0x50] sm:$0xf] }
 0x690   : > { %2355 = vmatpush.bf16.msrb.mxu0 %v2346_v13  ;;  %v4040_v62 = vor.u32 %v4404_v42, %v4039_v39  ;;  %v4049_v42 = vld [vmem:[%s5552_s6] sm:$0xf] }
 0x694   : > { %2375 = vmatpush.bf16.msra.mxu0 %v2366_v17 }
 0x69f   : > { %3988 = vmatmul.msk.bf16.gmra.mxu0 %vm1333_vm8, %v4385_v63 }
 0x6af   : > { %3989 = vmatmul.msk.bf16.gmra.mxu0 %vm1333_vm8, %v4386_v0  ;;  %v2658_v0 = vand.u32 %v4040_v62, %v4566_v29  ;;  %v4394_v62 = vld [vmem:[%s5552_s6 + $0x4] sm:$0xf0] }
 0x6bf   : > { %3990 = vmatmul.msk.bf16.gmra.mxu0 %vm1333_vm8, %v4387_v1 }
 0x6cf   : > { %3991 = vmatmul.msk.bf16.gmra.mxu0 %vm1333_vm8, %v4388_v2  ;;  %v4031_v2 = vld [vmem:[%s5552_s6 + $0x40] sm:$0xf] }
 0x6df   : > { %3992 = vmatmul.msk.bf16.gmra.mxu0 %vm1333_vm8, %v4389_v5  ;;  %v4402_v5 = vld [vmem:[%s5552_s6 + $0x44] sm:$0xf0] }
 0x6ef   : > { %3993 = vmatmul.msk.bf16.gmra.mxu0 %vm1333_vm8, %v4390_v7  ;;  %v4032_v7 = vor.u32 %v4402_v5, %v4031_v2  ;;  %v4041_v2 = vld [vmem:[%s5552_s6 + $0x58] sm:$0x70] }
 0x6ff   : > { %3994 = vmatmul.msk.bf16.gmra.mxu0 %vm1333_vm8, %v4391_v10  ;;  %v4024_v10 = vor.u32 %v4400_v3, %v4023_v9  ;;  %v4401_v9 = vld [vmem:[%s5552_s6 + $0x44] sm:$0xf]  ;;  %v4033_v3 = vld [vmem:[%s5552_s6 + $0x48] sm:$0xf0] }
 0x70c   : > { %v2289_v15 = vpop.f32.mrf.mxu0 }
 0x70f   : > { %3995 = vmatmul.msk.bf16.gmra.mxu0 %vm1333_vm8, %v4392_v14  ;;  %vm3418_vm8 = vcmp.lt.s32.totalorder %v1455_v58, 256 }
 0x714   : > { %v2291_v18 = vpop.f32.mrf.mxu0 }
 0x715   : > { %v2335_v25 = vpack.c.bf16 %v2291_v18, %v2289_v15 }
 0x71c   : > { %v2294_v19 = vpop.f32.mrf.mxu0 }
 0x724   : > { %v2296_v21 = vpop.f32.mrf.mxu0 }
 0x725   : > { %v2338_v11 = vpack.c.bf16 %v2296_v21, %v2294_v19 }
 0x727   : > { %3997 = vmatmul.msk.bf16.vlgmr.msrb.gmra.mxu0 %vm1627_vm12, %v2338_v11 }
 0x728   : > { %2398 = vmatpush.bf16.msrb.mxu0 %v2389_v22 }
 0x72c   : > { %v2299_v23 = vpop.f32.mrf.mxu0 }
 0x734   : > { %v2301_v27 = vpop.f32.mrf.mxu0 }
 0x735   : > { %v2384_v37 = vpack.c.bf16 %v2301_v27, %v2299_v23 }
 0x737   : > { %3998 = vmatmul.msk.bf16.vlgmr.msra.gmra.mxu0 %vm1627_vm12, %v2335_v25 }
 0x738   : > { %2448 = vmatpush.bf16.msra.mxu0 %v2439_v28 }
 0x73c   : > { %v2304_v32 = vpop.f32.mrf.mxu0 }
 0x744   : > { %v2306_v36 = vpop.f32.mrf.mxu0 }
 0x745   : > { %v2409_v38 = vpack.c.bf16 %v2306_v36, %v2304_v32 }
 0x747   : > { %4000 = vmatmul.msk.bf16.vlgmr.msrb.gmra.mxu0 %vm1627_vm12, %v2384_v37  ;;  %4002 = vmatmul.msk.bf16.vlgmr.msrb.gmra.mxu1 %vm1627_vm12, %v2409_v38  ;;  %v2571_v37 = vld [vmem:[%s5548_s2 + $0x1c0] sm:$0x1] }
 0x748   : > { %2498 = vmatpush.bf16.msrb.mxu0 %v2489_v30  ;;  %2523 = vmatpush.bf16.msrb.mxu1 %v2514_v40  ;;  %v2560_v30 = vpop.permute.xlu1 %2559 }
 0x74c   : > { %v2309_v59 = vpop.f32.mrf.mxu0 }
 0x754   : > { %v2311_v6 = vpop.f32.mrf.mxu0 }
 0x755   : > { %v2434_v61 = vpack.c.bf16 %v2311_v6, %v2309_v59  ;;  %v4397_v59 = vld [vmem:[%s5552_s6 + $0x24] sm:$0xf] }
 0x757   : > { %4004 = vmatmul.msk.bf16.vlgmr.msra.gmra.mxu0 %vm1627_vm12, %v2434_v61  ;;  %v2597_v61 = vunpack.c.l.b16 %v2571_v37 }
 0x75c   : > { %v2314_v43 = vpop.f32.mrf.mxu0 }
 0x764   : > { %v2316_v31 = vpop.f32.mrf.mxu0 }
 0x765   : > { %v2459_v33 = vpack.c.bf16 %v2316_v31, %v2314_v43  ;;  %v4065_v43 = vld [vmem:[%s5552_s6 + $0x20] sm:$0xf] }
 0x767   : > { %4006 = vmatmul.msk.bf16.vlgmr.msra.gmra.mxu1 %vm1627_vm12, %v2459_v33  ;;  %v2565_v33 = vpop.permute.xlu0 %2564 }
 0x768   : > { %2668 = vmatpush.bf16.msra.mxu1 %v2658_v0  ;;  %v4050_v0 = vor.u32 %v4394_v62, %v4049_v42  ;;  %v4115_v42 = vld [vmem:[%s5552_s6 + $0x90] sm:$0xf]  ;;  %v4412_v62 = vld [vmem:[%s5552_s6 + $0x94] sm:$0xf0] }
 0x76c   : > { %v2319_v60 = vpop.f32.mrf.mxu0  ;;  %2669 = vmatpush.bf16.msra.mxu1 %v4032_v7 }
 0x770   : > { %2670 = vmatpush.bf16.msra.mxu1 %v4024_v10  ;;  %v4036_v10 = vor.u32 %v4401_v9, %v4033_v3  ;;  %v4419_v3 = vld [vmem:[%s5552_s6 + $0xd4] sm:$0xf] }
 0x774   : > { %v2321_v45 = vpop.f32.mrf.mxu0 }
 0x775   : > { %v2484_v46 = vpack.c.bf16 %v2321_v45, %v2319_v60  ;;  %v4070_v60 = vor.u32 %v4397_v59, %v4067_v41 }
 0x777   : > { %4008 = vmatmul.msk.bf16.vlgmr.msrb.gmra.mxu0 %vm1627_vm12, %v2484_v46  ;;  %v4066_v46 = vor.u32 %v4398_v44, %v4065_v43  ;;  %v4090_v44 = vld [vmem:[%s5552_s6 + $0x70] sm:$0xf] }
 0x77c   : > { %v2324_v47 = vpop.f32.mrf.mxu0 }
 0x784   : > { %v2326_v48 = vpop.f32.mrf.mxu0 }
 0x785   : > { %v2509_v49 = vpack.c.bf16 %v2326_v48, %v2324_v47  ;;  %v2598_v47 = vpack.c.b16 %v2597_v61, %v2597_v61 }
 0x787   : > { %4010 = vmatmul.msk.bf16.vlgmr.msrb.gmra.mxu1 %vm1627_vm12, %v2509_v49 }
 0x78c   : > { %v2329_v34 = vpop.f32.mrf.mxu0 }
 0x794   : > { %v2331_v50 = vpop.f32.mrf.mxu0 }
 0x795   : > { %v2534_v51 = vpack.c.bf16 %v2331_v50, %v2329_v34  ;;  %v2724_v34 = vand.u32 %v4070_v60, %v4566_v29  ;;  %v4416_v60 = vld [vmem:[%s5552_s6 + $0xb4] sm:$0x70] }
 0x797   : > { %4012 = vmatmul.msk.bf16.vlgmr.msra.gmra.mxu2 %vm1627_vm12, %v2534_v51  ;;  %v4395_v51 = vld [vmem:[%s5552_s6 + $0x14] sm:$0xf] }
 0x7a4   : > { %v2357_v4 = vpop.f32.mrf.mxu0 }
 0x7ac   : > { %v2359_v35 = vpop.f32.mrf.mxu0 }
 0x7b4   : > { %v2377_v52 = vpop.f32.mrf.mxu0 }
 0x7b5   : > { %v2378_v14 = vadd.f32 %v2377_v52, %v2357_v4  ;;  %v4059_v4 = vld [vmem:[%s5552_s6 + $0x18] sm:$0xf0]  ;;  %v2600_v52 = vshrl.u32 %v2598_v47, 16  ;;  %v4415_v47 = vld [vmem:[%s5552_s6 + $0xb4] sm:$0xf] }
 0x7bc   : > { %v2379_v53 = vpop.f32.mrf.mxu0 }
 0x7bd   : > { %v2380_v17 = vadd.f32 %v2379_v53, %v2359_v35  ;;  %v2721_v35 = vand.u32 %v4066_v46, %v4566_v29  ;;  %v4057_v53 = vld [vmem:[%s5552_s6 + $0x10] sm:$0xf] }
 0x7c4   : > { %v2400_v54 = vpop.f32.mrf.mxu0  ;;  %v2425_v55 = vpop.f32.mrf.mxu1 }
 0x7c5   : > { %v2405_v15 = vadd.f32 %v2400_v54, %v2378_v14  ;;  %v4396_v54 = vld [vmem:[%s5552_s6 + $0x14] sm:$0xf0] }
 0x7c6   : > { %v4058_v39 = vor.u32 %v4396_v54, %v4057_v53 }
 0x7c7   : > { %v2430_v19 = vadd.f32 %v2425_v55, %v2405_v15  ;;  %v4062_v55 = vor.u32 %v4395_v51, %v4059_v4  ;;  %v4399_v15 = vld [vmem:[%s5552_s6 + $0x34] sm:$0xf] }
 0x7cc   : > { %v2402_v56 = vpop.f32.mrf.mxu0  ;;  %v2427_v57 = vpop.f32.mrf.mxu1 }
 0x7cd   : > { %v2406_v20 = vadd.f32 %v2402_v56, %v2380_v17  ;;  %v4393_v56 = vld [vmem:[%s5552_s6 + $0x4] sm:$0xf] }
 0x7cf   : > { %v2431_v22 = vadd.f32 %v2427_v57, %v2406_v20  ;;  %v4051_v57 = vld [vmem:[%s5552_s6 + $0x8] sm:$0xf0]  ;;  %v4092_v20 = vld [vmem:[%s5552_s6 + $0x78] sm:$0xf0] }
 0x7d4   : > { %v2450_v63 = vpop.f32.mrf.mxu0 }
 0x7d5   : > { %v2455_v21 = vadd.f32 %v2450_v63, %v2430_v19  ;;  %v4054_v63 = vor.u32 %v4393_v56, %v4051_v57  ;;  %v4407_v19 = vld [vmem:[%s5552_s6 + $0x74] sm:$0xf]  ;;  %v4125_v56 = vld [vmem:[%s5552_s6 + $0xa8] sm:$0xf0]  ;;  %v4421_v57 = vld [vmem:[%s5552_s6 + $0xe4] sm:$0xf] }
 0x7dc   : > { %v2452_v12 = vpop.f32.mrf.mxu0 }
 0x7dd   : > { %v2456_v26 = vadd.f32 %v2452_v12, %v2431_v22  ;;  %v4409_v12 = vld [vmem:[%s5552_s6 + $0x84] sm:$0xf] }
 0x7de   : > { %v4405_v22 = vld [vmem:[%s5552_s6 + $0x64] sm:$0xf] }
 0x7e4   : > { %v2475_v1 = vpop.f32.mrf.mxu1 }
 0x7e5   : > { %v2480_v11 = vadd.f32 %v2475_v1, %v2455_v21  ;;  %v4403_v1 = vld [vmem:[%s5552_s6 + $0x54] sm:$0xf]  ;;  %v4095_v21 = vor.u32 %v4407_v19, %v4092_v20 }
 0x7e6   : > { %v4044_v5 = vor.u32 %v4403_v1, %v4041_v2 }
 0x7e8   : > { %v2661_v7 = vand.u32 %v4044_v5, %v4566_v29  ;;  %v4411_v5 = vld [vmem:[%s5552_s6 + $0x94] sm:$0xf] }
 0x7ea   : > { %2681 = vmatpush.bf16.msrb.mxu2 %v2661_v7  ;;  %v4117_v7 = vld [vmem:[%s5552_s6 + $0x98] sm:$0xf0] }
 0x7eb   : > { %v4120_v9 = vor.u32 %v4411_v5, %v4117_v7  ;;  %v4424_v5 = vld [vmem:[%s5552_s6 + $0xf4] sm:$0xf0] }
 0x7ec   : > { %v2477_v13 = vpop.f32.mrf.mxu1 }
 0x7ed   : > { %v2481_v25 = vadd.f32 %v2477_v13, %v2456_v26  ;;  %v4100_v13 = vld [vmem:[%s5552_s6 + $0x88] sm:$0x70] }
 0x7ee   : > { %v4103_v14 = vor.u32 %v4409_v12, %v4100_v13  ;;  %2682 = vmatpush.bf16.msrb.mxu2 %v4036_v10  ;;  %v4158_v10 = vld [vmem:[%s5552_s6 + $0xd8] sm:$0xf0]  ;;  %v4417_v13 = vld [vmem:[%s5552_s6 + $0xc4] sm:$0xf] }
 0x7ef   : > { %v4161_v12 = vor.u32 %v4419_v3, %v4158_v10  ;;  %v4431_v3 = vld [vmem:[%s5552_s6 + $0x134] sm:$0xf]  ;;  %v4224_v10 = vld [vmem:[%s5552_s6 + $0x138] sm:$0xf0] }
 0x7f0   : > { %v2816_v17 = vand.u32 %v4103_v14, %v4566_v29  ;;  %v4150_v14 = vld [vmem:[%s5552_s6 + $0xc8] sm:$0xf0] }
 0x7f4   : > { %v2500_v16 = vpop.f32.mrf.mxu0 }
 0x7f5   : > { %v2505_v27 = vadd.f32 %v2500_v16, %v2480_v11  ;;  %v4025_v16 = vld [vmem:[%s5552_s6 + $0x38] sm:$0xf0]  ;;  %v4084_v11 = vld [vmem:[%s5552_s6 + $0x68] sm:$0xf0] }
 0x7fc   : > { %v2502_v28 = vpop.f32.mrf.mxu0 }
 0x7fd   : > { %v2506_v24 = vadd.f32 %v2502_v28, %v2481_v25  ;;  %v2752_v28 = vld [vmem:[%s5548_s2 + $0x1c0] sm:$0x2] }
 0x804   : > { %v2525_v18 = vpop.f32.mrf.mxu1 }
 0x805   : > { %v2530_v32 = vadd.f32 %v2525_v18, %v2505_v27  ;;  %v4028_v18 = vor.u32 %v4399_v15, %v4025_v16  ;;  %v4153_v15 = vor.u32 %v4417_v13, %v4150_v14  ;;  %v4227_v13 = vor.u32 %v4431_v3, %v4224_v10 }
 0x807   : > { %2683 = vmatpush.bf16.msrb.mxu2 %v4028_v18 }
 0x80c   : > { %v2527_v8 = vpop.f32.mrf.mxu1 }
 0x80d   : > { %v2531_v38 = vadd.f32 %v2527_v8, %v2506_v24  ;;  %v2754_v8 = vunpack.c.l.b16 %v2752_v28  ;;  %v2939_v28 = vld [vmem:[%s5548_s2 + $0x1c0] sm:$0x4] }
 0x81a   : > { %v2550_v23 = vpop.f32.mrf.mxu2 }
 0x81b   : > { %v2555_v36 = vadd.f32 %v2550_v23, %v2530_v32  ;;  %v4087_v23 = vor.u32 %v4405_v22, %v4084_v11 }
 0x81d   : > { %v2567_v40 = vadd.f32 %v2560_v30, %v2555_v36  ;;  %v2755_v36 = vpack.c.b16 %v2754_v8, %v2754_v8  ;;  %v4098_v30 = vld [vmem:[%s5552_s6 + $0x80] sm:$0xf] }
 0x81f   : > { %v2569_v48 = vmax.f32 %v2567_v40, 0.0  ;;  %v2847_v59 = vshrl.u32 %v2755_v36, 16  ;;  %v4408_v40 = vld [vmem:[%s5552_s6 + $0x74] sm:$0xf0] }
 0x821   : > { %v2849_v41 = vrot.slane %v2847_v59, 1 }
 0x822   : > { %v2552_v6 = vpop.f32.mrf.mxu2 }
 0x823   : > { %v2556_v31 = vadd.f32 %v2552_v6, %v2531_v38  ;;  %v2756_v38 = vrot.slane %v2755_v36, 1  ;;  %v4410_v6 = vld [vmem:[%s5552_s6 + $0x84] sm:$0x70] }
 0x824   : > { %v4099_v61 = vor.u32 %v4410_v6, %v4098_v30  ;;  %v4164_v6 = vld [vmem:[%s5552_s6 + $0xe0] sm:$0xf] }
 0x825   : > { %v2568_v45 = vadd.f32 %v2565_v33, %v2556_v31  ;;  %v4091_v31 = vor.u32 %v4408_v40, %v4090_v44  ;;  %v4131_v33 = vld [vmem:[%s5552_s6 + $0xb0] sm:$0xf] }
 0x826   : > { %v2813_v43 = vand.u32 %v4099_v61, %v4566_v29  ;;  %v4422_v61 = vld [vmem:[%s5552_s6 + $0xe4] sm:$0x70]  ;;  %v4156_v40 = vld [vmem:[%s5552_s6 + $0xd0] sm:$0xf] }
 0x827   : > { %v2570_v49 = vmax.f32 %v2568_v45, 0.0  ;;  %v4132_v45 = vor.u32 %v4416_v60, %v4131_v33  ;;  %v4427_v60 = vld [vmem:[%s5552_s6 + $0x114] sm:$0xf] }
 0x828   : > { %2823 = vmatpush.bf16.msra.mxu2 %v2813_v43  ;;  %v4165_v43 = vor.u32 %v4422_v61, %v4164_v6 }
 0x829   : > { %v5169_v50 = vpack.c.bf16 %v2570_v49, %v2569_v48  ;;  %v2906_v46 = vand.u32 %v4132_v45, %v4566_v29  ;;  %v4133_v48 = vld [vmem:[%s5552_s6 + $0xb8] sm:$0x70]  ;;  %v4082_v49 = vld [vmem:[%s5552_s6 + $0x60] sm:$0xf] }
 0x82a   : > { %v4136_v51 = vor.u32 %v4415_v47, %v4133_v48  ;;  %v3000_v44 = vand.u32 %v4165_v43, %v4566_v29  ;;  %v4199_v45 = vld [vmem:[%s5552_s6 + $0x118] sm:$0x70]  ;;  %v4418_v47 = vld [vmem:[%s5552_s6 + $0xc4] sm:$0xf0] }
 0x82b   : > { %2583 = vmatpush.bf16.msra.mxu3 %v5169_v50  ;;  %2612 = vmatpush.bf16.msra.mxu0 %v5169_v50  ;;  %v4202_v48 = vor.u32 %v4427_v60, %v4199_v45  ;;  %v4432_v60 = vld [vmem:[%s5552_s6 + $0x134] sm:$0xf0] }
 0x82c   : > { %2767 = vmatpush.bf16.msrb.mxu1 %v5169_v50  ;;  %2824 = vmatpush.bf16.msra.mxu2 %v4091_v31  ;;  %v2909_v53 = vand.u32 %v4136_v51, %v4566_v29  ;;  %v4420_v31 = vld [vmem:[%s5552_s6 + $0xd4] sm:$0xf0]  ;;  %v4191_v51 = vld [vmem:[%s5552_s6 + $0x108] sm:$0xf0] }
 0x82d   : > { %v4157_v33 = vor.u32 %v4420_v31, %v4156_v40  ;;  %v4434_v40 = vld [vmem:[%s5552_s6 + $0x144] sm:$0x70] }
 0x82e   : > { %4013 = vmatmul.msk.bf16.vlgmr.msra.gmra.mxu3 %vm533_vm4, %v2571_v37  ;;  %4014 = vmatmul.msk.bf16.vlgmr.msra.gmra.mxu0 %vm533_vm4, %v2600_v52  ;;  %v4414_v52 = vld [vmem:[%s5552_s6 + $0xa4] sm:$0xf0] }
 0x82f   : > { %2744 = vmatpush.bf16.msrb.mxu0 %v2724_v34  ;;  %2731 = vmatpush.bf16.msrb.mxu3 %v2721_v35  ;;  %v4406_v34 = vld [vmem:[%s5552_s6 + $0x64] sm:$0xf0]  ;;  %v4123_v35 = vld [vmem:[%s5552_s6 + $0xa0] sm:$0xf] }
 0x830   : > { %v4083_v4 = vor.u32 %v4406_v34, %v4082_v49  ;;  %v4124_v54 = vor.u32 %v4414_v52, %v4123_v35  ;;  %v4425_v34 = vld [vmem:[%s5552_s6 + $0x104] sm:$0xf]  ;;  %v4197_v52 = vld [vmem:[%s5552_s6 + $0x110] sm:$0xf] }
 0x831   : > { %v4194_v35 = vor.u32 %v4425_v34, %v4191_v51  ;;  %v4440_v34 = vld [vmem:[%s5552_s6 + $0x174] sm:$0x70]  ;;  %v4439_v51 = vld [vmem:[%s5552_s6 + $0x174] sm:$0xf] }
 0x832   : > { %2825 = vmatpush.bf16.msra.mxu2 %v4083_v4  ;;  %v3096_v4 = vand.u32 %v4202_v48, %v4566_v29 }
 0x833   : > { %2745 = vmatpush.bf16.msrb.mxu0 %v4062_v55  ;;  %2732 = vmatpush.bf16.msrb.mxu3 %v4058_v39  ;;  %v4413_v55 = vld [vmem:[%s5552_s6 + $0xa4] sm:$0xf] }
 0x834   : > { %v4128_v39 = vor.u32 %v4413_v55, %v4125_v56  ;;  %v4423_v56 = vld [vmem:[%s5552_s6 + $0xf4] sm:$0xf] }
 0x837   : > { %2746 = vmatpush.bf16.msrb.mxu0 %v4054_v63  ;;  %2733 = vmatpush.bf16.msrb.mxu3 %v4050_v0  ;;  %v4166_v63 = vld [vmem:[%s5552_s6 + $0xe8] sm:$0x70]  ;;  %v4116_v0 = vor.u32 %v4412_v62, %v4115_v42  ;;  %v4189_v42 = vld [vmem:[%s5552_s6 + $0x100] sm:$0xf]  ;;  %v4426_v62 = vld [vmem:[%s5552_s6 + $0x104] sm:$0xf0] }
 0x838   : > { %v4169_v1 = vor.u32 %v4421_v57, %v4166_v63  ;;  %v4183_v57 = vld [vmem:[%s5552_s6 + $0xf8] sm:$0xf0]  ;;  %v4190_v63 = vor.u32 %v4426_v62, %v4189_v42  ;;  %v4257_v42 = vld [vmem:[%s5552_s6 + $0x168] sm:$0xf0] }
 0x83a   : > { %v3003_v2 = vand.u32 %v4169_v1, %v4566_v29  ;;  %v4232_v1 = vld [vmem:[%s5552_s6 + $0x148] sm:$0x70] }
 0x83b   : > { %2860 = vmatpush.bf16.msra.mxu0 %v5169_v50  ;;  %2836 = vmatpush.bf16.msra.mxu3 %v2816_v17 }
 0x83f   : > { %2837 = vmatpush.bf16.msra.mxu3 %v4095_v21 }
 0x843   : > { %2838 = vmatpush.bf16.msra.mxu3 %v4087_v23 }
 0x8ab   : > { %v2614_v26 = vpop.f32.mrf.mxu0 }
 0x8ac   : > { %v2625_v27 = vpack.c.bf16 %v2614_v26, %v2614_v26 }
 0x8ae   : > { %4045 = vmatmul.msk.bf16.vlgmr.msra.gmra.mxu1 %vm721_vm7, %v2625_v27  ;;  %4046 = vmatmul.msk.bf16.vlgmr.msrb.gmra.mxu2 %vm721_vm7, %v2625_v27 }
 0x8af   : > { %2916 = vmatpush.bf16.msra.mxu1 %v2906_v46  ;;  %2929 = vmatpush.bf16.msrb.mxu2 %v2909_v53  ;;  %v4148_v46 = vld [vmem:[%s5552_s6 + $0xc0] sm:$0xf]  ;;  %v4428_v53 = vld [vmem:[%s5552_s6 + $0x114] sm:$0x70] }
 0x8b0   : > { %v4149_v49 = vor.u32 %v4418_v47, %v4148_v46  ;;  %v4214_v46 = vld [vmem:[%s5552_s6 + $0x120] sm:$0xf]  ;;  %v4430_v47 = vld [vmem:[%s5552_s6 + $0x124] sm:$0xf0] }
 0x8b1   : > { %v2585_v25 = vpop.f32.mrf.mxu3  ;;  %v4215_v48 = vor.u32 %v4430_v47, %v4214_v46 }
 0x8b2   : > { %v2595_v32 = vpack.c.bf16 %v2585_v25, %v2585_v25 }
 0x8b3   : > { %v2616_v24 = vpop.f32.mrf.mxu0  ;;  %2917 = vmatpush.bf16.msra.mxu1 %v4124_v54  ;;  %2930 = vmatpush.bf16.msrb.mxu2 %v4128_v39  ;;  %v4198_v54 = vor.u32 %v4428_v53, %v4197_v52  ;;  %v4186_v39 = vor.u32 %v4423_v56, %v4183_v57  ;;  %v4438_v56 = vld [vmem:[%s5552_s6 + $0x164] sm:$0xf0]  ;;  %v4437_v57 = vld [vmem:[%s5552_s6 + $0x164] sm:$0xf] }
 0x8b4   : > { %4071 = vmatmul.msk.bf16.vlgmr.msrb.gmra.mxu3 %vm721_vm7, %v2595_v32  ;;  %4072 = vmatmul.msk.bf16.vlgmr.msrb.gmra.mxu0 %vm721_vm7, %v2595_v32  ;;  %v2941_v24 = vunpack.c.l.b16 %v2939_v28  ;;  %v4260_v62 = vor.u32 %v4437_v57, %v4257_v42 }
 0x8b5   : > { %2954 = vmatpush.bf16.msrb.mxu3 %v5169_v50  ;;  %3010 = vmatpush.bf16.msrb.mxu0 %v3000_v44  ;;  %v3093_v55 = vand.u32 %v4198_v54, %v4566_v29  ;;  %v4230_v44 = vld [vmem:[%s5552_s6 + $0x140] sm:$0xf] }
 0x8b6   : > { %v4231_v31 = vor.u32 %v4434_v40, %v4230_v44  ;;  %v4280_v44 = vld [vmem:[%s5552_s6 + $0x180] sm:$0xf]  ;;  %v4442_v40 = vld [vmem:[%s5552_s6 + $0x184] sm:$0xf0] }
 0x8b7   : > { %2918 = vmatpush.bf16.msra.mxu1 %v4116_v0  ;;  %2931 = vmatpush.bf16.msrb.mxu2 %v4120_v9  ;;  %v4433_v0 = vld [vmem:[%s5552_s6 + $0x144] sm:$0xf] }
 0x8b8   : > { %v4235_v7 = vor.u32 %v4433_v0, %v4232_v1  ;;  %v4436_v0 = vld [vmem:[%s5552_s6 + $0x154] sm:$0xf0]  ;;  %v4435_v1 = vld [vmem:[%s5552_s6 + $0x154] sm:$0xf] }
 0x8b9   : > { %v2587_v37 = vpop.f32.mrf.mxu3  ;;  %3011 = vmatpush.bf16.msrb.mxu0 %v4157_v33  ;;  %v3187_v33 = vand.u32 %v4231_v31, %v4566_v29  ;;  %v4441_v31 = vld [vmem:[%s5552_s6 + $0x184] sm:$0xf] }
 0x8ba   : > { %v2942_v37 = vpack.c.b16 %v2941_v24, %v2941_v24 }
 0x8bc   : > { %v2943_v59 = vrot.slane %v2942_v37, 2 }
 0x8bd   : > { %3012 = vmatpush.bf16.msrb.mxu0 %v4149_v49  ;;  %v4263_v49 = vld [vmem:[%s5552_s6 + $0x170] sm:$0xf] }
 0x8be   : > { %4073 = vmatmul.msk.bf16.vlgmr.msrb.gmra.mxu1 %vm533_vm4, %v2756_v38 }
 0x8bf   : > { %3023 = vmatpush.bf16.msrb.mxu1 %v3003_v2  ;;  %v4181_v2 = vld [vmem:[%s5552_s6 + $0xf0] sm:$0xf] }
 0x8c0   : > { %v4182_v9 = vor.u32 %v4424_v5, %v4181_v2  ;;  %v4249_v5 = vld [vmem:[%s5552_s6 + $0x158] sm:$0xf0] }
 0x8c1   : > { %v4252_v3 = vor.u32 %v4435_v1, %v4249_v5 }
 0x8c3   : > { %3024 = vmatpush.bf16.msrb.mxu1 %v4161_v12  ;;  %v3190_v12 = vand.u32 %v4235_v7, %v4566_v29 }
 0x8c4   : > { %4106 = vmatmul.msk.bf16.vlgmr.msra.gmra.mxu0 %vm533_vm4, %v2849_v41  ;;  %v3034_v41 = vshrl.u32 %v2942_v37, 16 }
 0x8c5   : > { %3116 = vmatpush.bf16.msra.mxu0 %v3096_v4  ;;  %v4264_v4 = vor.u32 %v4440_v34, %v4263_v49 }
 0x8c6   : > { %v3036_v30 = vrot.slane %v3034_v41, 2 }
 0x8c7   : > { %3025 = vmatpush.bf16.msrb.mxu1 %v4153_v15  ;;  %v3280_v53 = vand.u32 %v4264_v4, %v4566_v29 }
 0x8c9   : > { %3117 = vmatpush.bf16.msra.mxu0 %v4194_v35  ;;  %v4265_v35 = vld [vmem:[%s5552_s6 + $0x178] sm:$0x70] }
 0x8ca   : > { %v4268_v52 = vor.u32 %v4439_v51, %v4265_v35 }
 0x8cc   : > { %v3283_v54 = vand.u32 %v4268_v52, %v4566_v29 }
 0x8cd   : > { %3118 = vmatpush.bf16.msra.mxu0 %v4186_v39 }
 0x92b   : > { %v2672_v16 = vpop.f32.mrf.mxu1 }
 0x931   : > { %v2748_v17 = vpop.f32.mrf.mxu0  ;;  %v2685_v18 = vpop.f32.mrf.mxu2 }
 0x932   : > { %v5326_v19 = vadd.f32 %v2748_v17, %v2685_v18  ;;  %v4216_v17 = vld [vmem:[%s5552_s6 + $0x128] sm:$0xf0] }
 0x933   : > { %v2674_v20 = vpop.f32.mrf.mxu1 }
 0x937   : > { %v2735_v21 = vpop.f32.mrf.mxu3 }
 0x938   : > { %v5328_v22 = vadd.f32 %v2735_v21, %v2672_v16  ;;  %v4429_v16 = vld [vmem:[%s5552_s6 + $0x124] sm:$0xf] }
 0x939   : > { %v2750_v11 = vpop.f32.mrf.mxu0  ;;  %v2687_v23 = vpop.f32.mrf.mxu2 }
 0x93a   : > { %v4219_v11 = vor.u32 %v4429_v16, %v4216_v17 }
 0x93b   : > { %v2769_v26 = vpop.f32.mrf.mxu1 }
 0x93c   : > { %v2780_v27 = vpack.c.bf16 %v2769_v26, %v2769_v26 }
 0x93e   : > { %4104 = vmatmul.msk.bf16.vlgmr.msra.gmra.mxu2 %vm721_vm7, %v2780_v27  ;;  %4105 = vmatmul.msk.bf16.vlgmr.msra.gmra.mxu3 %vm721_vm7, %v2780_v27 }
 0x93f   : > { %3047 = vmatpush.bf16.msra.mxu2 %v5169_v50  ;;  %v2737_v25 = vpop.f32.mrf.mxu3  ;;  %3103 = vmatpush.bf16.msra.mxu3 %v3093_v55  ;;  %v4255_v55 = vld [vmem:[%s5552_s6 + $0x160] sm:$0xf] }
 0x940   : > { %v4256_v39 = vor.u32 %v4438_v56, %v4255_v55 }
 0x941   : > { %v2862_v32 = vpop.f32.mrf.mxu0 }
 0x942   : > { %v2873_v8 = vpack.c.bf16 %v2862_v32, %v2862_v32 }
 0x943   : > { %v2771_v36 = vpop.f32.mrf.mxu1  ;;  %3104 = vmatpush.bf16.msra.mxu3 %v4190_v63  ;;  %v4247_v63 = vld [vmem:[%s5552_s6 + $0x150] sm:$0xf] }
 0x944   : > { %4137 = vmatmul.msk.bf16.vlgmr.msra.gmra.mxu1 %vm721_vm7, %v2873_v8  ;;  %v4248_v2 = vor.u32 %v4436_v0, %v4247_v63  ;;  %v3406_v0 = vpop.permute.xlu2 %3405 }
 0x945   : > { %3141 = vmatpush.bf16.msra.mxu1 %v5169_v50 }
 0x947   : > { %3105 = vmatpush.bf16.msra.mxu3 %v4182_v9 }
 0x949   : > { %v2864_v38 = vpop.f32.mrf.mxu0 }
 0x94e   : > { %4138 = vmatmul.msk.bf16.vlgmr.msrb.gmra.mxu2 %vm721_vm7, %v2873_v8  ;;  %4139 = vmatmul.msk.bf16.vlgmr.msrb.gmra.mxu3 %vm533_vm4, %v2943_v59 }
 0x94f   : > { %3210 = vmatpush.bf16.msrb.mxu3 %v3190_v12  ;;  %3197 = vmatpush.bf16.msrb.mxu2 %v3187_v33  ;;  %v4281_v33 = vor.u32 %v4442_v40, %v4280_v44 }
 0x953   : > { %3211 = vmatpush.bf16.msrb.mxu3 %v4227_v13 }
 0x957   : > { %3212 = vmatpush.bf16.msrb.mxu3 %v4219_v11 }
 0x95e   : > { %4172 = vmatmul.msk.bf16.vlgmr.msra.gmra.mxu2 %vm533_vm4, %v3036_v30 }
 0x9c1   : > { %v2827_v14 = vpop.f32.mrf.mxu2  ;;  %v2840_v15 = vpop.f32.mrf.mxu3 }
 0x9c2   : > { %v2844_v18 = vadd.f32 %v2827_v14, %v5328_v22  ;;  %v2845_v20 = vadd.f32 %v2840_v15, %v5326_v19  ;;  %v2920_v21 = vpop.f32.mrf.mxu1  ;;  %v3126_v19 = vld [vmem:[%s5548_s2 + $0x1c0] sm:$0x8] }
 0x9c3   : > { %v3128_v36 = vunpack.c.l.b16 %v3126_v19  ;;  %v4445_v19 = vld [vmem:[%s5552_s6 + $0x1a4] sm:$0xf] }
 0x9c4   : > { %v5419_v23 = vadd.f32 %v2920_v21, %v2844_v18 }
 0x9c5   : > { %v3129_v38 = vpack.c.b16 %v3128_v36, %v3128_v36  ;;  %v4298_v36 = vld [vmem:[%s5552_s6 + $0x1a8] sm:$0x70] }
 0x9c7   : > { %v3130_v41 = vrot.slane %v3129_v38, 3  ;;  %v3221_v61 = vshrl.u32 %v3129_v38, 16 }
 0x9c9   : > { %v2829_v26 = vpop.f32.mrf.mxu2  ;;  %v2842_v27 = vpop.f32.mrf.mxu3  ;;  %v3223_v43 = vrot.slane %v3221_v61, 3 }
 0x9ca   : > { %v2922_v28 = vpop.f32.mrf.mxu1 }
 0x9d1   : > { %v2933_v25 = vpop.f32.mrf.mxu2  ;;  %v2956_v32 = vpop.f32.mrf.mxu3 }
 0x9d2   : > { %v2938_v8 = vadd.f32 %v2933_v25, %v2845_v20  ;;  %v2967_v24 = vpack.c.bf16 %v2956_v32, %v2956_v32  ;;  %v3313_v25 = vld [vmem:[%s5548_s2 + $0x1c4] sm:$0x1] }
 0x9d4   : > { %4170 = vmatmul.msk.bf16.vlgmr.msrb.gmra.mxu0 %vm721_vm7, %v2967_v24  ;;  %4171 = vmatmul.msk.bf16.vlgmr.msrb.gmra.mxu1 %vm721_vm7, %v2967_v24  ;;  %v4446_v24 = vld [vmem:[%s5552_s6 + $0x1a4] sm:$0x70] }
 0x9d5   : > { %3234 = vmatpush.bf16.msrb.mxu0 %v5169_v50  ;;  %3290 = vmatpush.bf16.msrb.mxu1 %v3280_v53 }
 0x9d9   : > { %v2935_v22 = vpop.f32.mrf.mxu2  ;;  %v2958_v37 = vpop.f32.mrf.mxu3  ;;  %3291 = vmatpush.bf16.msrb.mxu1 %v4256_v39 }
 0x9da   : > { %v4301_v37 = vor.u32 %v4445_v19, %v4298_v36 }
 0x9dd   : > { %3292 = vmatpush.bf16.msrb.mxu1 %v4248_v2 }
 0x9e1   : > { %v3049_v59 = vpop.f32.mrf.mxu2 }
 0x9e2   : > { %v3060_v30 = vpack.c.bf16 %v3049_v59, %v3049_v59  ;;  %v3373_v59 = vand.u32 %v4301_v37, %v4566_v29 }
 0x9e4   : > { %4203 = vmatmul.msk.bf16.vlgmr.msra.gmra.mxu3 %vm721_vm7, %v3060_v30  ;;  %4204 = vmatmul.msk.bf16.vlgmr.msra.gmra.mxu0 %vm721_vm7, %v3060_v30  ;;  %v4444_v30 = vld [vmem:[%s5552_s6 + $0x194] sm:$0xf0] }
 0x9e5   : > { %4205 = vmatmul.msk.bf16.vlgmr.msra.gmra.mxu1 %vm533_vm4, %v3130_v41  ;;  %3324 = vmatpush.bf16.msra.mxu3 %v5169_v50  ;;  %v4222_v50 = vld [vmem:[%s5552_s6 + $0x130] sm:$0xf] }
 0x9e6   : > { %v4223_v45 = vor.u32 %v4432_v60, %v4222_v50  ;;  %3393 = vmatpush.bf16.msra.mxu1 %v3373_v59  ;;  %v4288_v41 = vld [vmem:[%s5552_s6 + $0x190] sm:$0xf]  ;;  %v4282_v50 = vld [vmem:[%s5552_s6 + $0x188] sm:$0xf0] }
 0x9e7   : > { %v4289_v61 = vor.u32 %v4444_v30, %v4288_v41  ;;  %v4285_v60 = vor.u32 %v4441_v31, %v4282_v50 }
 0x9e8   : > { %3198 = vmatpush.bf16.msrb.mxu2 %v4223_v45 }
 0x9e9   : > { %v3051_v6 = vpop.f32.mrf.mxu2 }
 0x9ea   : > { %v4443_v6 = vld [vmem:[%s5552_s6 + $0x194] sm:$0xf] }
 0x9ec   : > { %3199 = vmatpush.bf16.msrb.mxu2 %v4215_v48 }
 0x9f0   : > { %3303 = vmatpush.bf16.msra.mxu2 %v3283_v54 }
 0x9f4   : > { %4238 = vmatmul.msk.bf16.vlgmr.msrb.gmra.mxu0 %vm533_vm4, %v3223_v43  ;;  %3304 = vmatpush.bf16.msra.mxu2 %v4260_v62  ;;  %v4290_v43 = vld [vmem:[%s5552_s6 + $0x198] sm:$0xf0] }
 0x9f8   : > { %3305 = vmatpush.bf16.msra.mxu2 %v4252_v3 }
 0xa51   : > { %v3014_v7 = vpop.f32.mrf.mxu0  ;;  %v3027_v9 = vpop.f32.mrf.mxu1 }
 0xa52   : > { %v3031_v10 = vadd.f32 %v3014_v7, %v5419_v23  ;;  %v3032_v12 = vadd.f32 %v3027_v9, %v2938_v8  ;;  %v4296_v8 = vld [vmem:[%s5552_s6 + $0x1a0] sm:$0xf] }
 0xa53   : > { %v4297_v22 = vor.u32 %v4446_v24, %v4296_v8 }
 0xa55   : > { %v3370_v38 = vand.u32 %v4297_v22, %v4566_v29  ;;  %v4293_v29 = vor.u32 %v4443_v6, %v4290_v43 }
 0xa57   : > { %3380 = vmatpush.bf16.msra.mxu0 %v3370_v38  ;;  %3394 = vmatpush.bf16.msra.mxu1 %v4293_v29 }
 0xa59   : > { %v3016_v13 = vpop.f32.mrf.mxu0  ;;  %v3029_v14 = vpop.f32.mrf.mxu1 }
 0xa5b   : > { %3381 = vmatpush.bf16.msra.mxu0 %v4289_v61  ;;  %3395 = vmatpush.bf16.msra.mxu1 %v4285_v60 }
 0xa5f   : > { %3382 = vmatpush.bf16.msra.mxu0 %v4281_v33 }
 0xa61   : > { %v3120_v15 = vpop.f32.mrf.mxu0 }
 0xa62   : > { %v3125_v16 = vadd.f32 %v3120_v15, %v3032_v12  ;;  %v3143_v17 = vpop.f32.mrf.mxu1 }
 0xa63   : > { %v3154_v18 = vpack.c.bf16 %v3143_v17, %v3143_v17 }
 0xa65   : > { %4236 = vmatmul.msk.bf16.vlgmr.msrb.gmra.mxu2 %vm721_vm7, %v3154_v18  ;;  %4237 = vmatmul.msk.bf16.vlgmr.msrb.gmra.mxu3 %vm721_vm7, %v3154_v18 }
 0xa67   : > { %v3107_v20 = vpop.f32.mrf.mxu3 }
 0xa68   : > { %v3124_v21 = vadd.f32 %v3107_v20, %v3031_v10 }
 0xa69   : > { %v3122_v11 = vpop.f32.mrf.mxu0 }
 0xa6a   : > { %v3145_v26 = vpop.f32.mrf.mxu1 }
 0xa6f   : > { %v3109_v27 = vpop.f32.mrf.mxu3 }
 0xa71   : > { %v3236_v28 = vpop.f32.mrf.mxu0 }
 0xa72   : > { %v3247_v23 = vpack.c.bf16 %v3236_v28, %v3236_v28 }
 0xa74   : > { %4269 = vmatmul.msk.bf16.vlgmr.msrb.gmra.mxu1 %vm721_vm7, %v3247_v23 }
 0xa75   : > { %4270 = vmatmul.msk.bf16.vlgmr.msra.gmra.mxu2 %vm721_vm7, %v3247_v23  ;;  %4271 = vmatmul.msk.bf16.vlgmr.msra.gmra.mxu3 %vm533_vm4, %v3313_v25  ;;  %vm3413_vm4 = vcmask 1040384  }
 0xa79   : > { %v3238_v32 = vpop.f32.mrf.mxu0 }
 0xae8   : > { %v3201_v45 = vpop.f32.mrf.mxu2  ;;  %v3214_v46 = vpop.f32.mrf.mxu3 }
 0xae9   : > { %v3218_v47 = vadd.f32 %v3201_v45, %v3124_v21  ;;  %v3219_v48 = vadd.f32 %v3214_v46, %v3125_v16 }
 0xaf0   : > { %v3203_v49 = vpop.f32.mrf.mxu2  ;;  %v3216_v34 = vpop.f32.mrf.mxu3 }
 0xaf1   : > { %v3294_v51 = vpop.f32.mrf.mxu1 }
 0xaf2   : > { %v3311_v4 = vadd.f32 %v3294_v51, %v3218_v47 }
 0xaf8   : > { %v3307_v35 = vpop.f32.mrf.mxu2  ;;  %v3326_v52 = vpop.f32.mrf.mxu3 }
 0xaf9   : > { %v3312_v53 = vadd.f32 %v3307_v35, %v3219_v48  ;;  %v3337_v54 = vpack.c.bf16 %v3326_v52, %v3326_v52  ;;  %v3296_v55 = vpop.f32.mrf.mxu1 }
 0xafb   : > { %4302 = vmatmul.msk.bf16.vlgmr.msra.gmra.mxu0 %vm721_vm7, %v3337_v54  ;;  %4303 = vmatmul.msk.bf16.vlgmr.msra.gmra.mxu1 %vm721_vm7, %v3337_v54 }
 0xb00   : > { %v3328_v56 = vpop.f32.mrf.mxu3  ;;  %v3309_v57 = vpop.f32.mrf.mxu2 }
 0xb78   : > { %v3384_v39 = vpop.f32.mrf.mxu0  ;;  %v3397_v42 = vpop.f32.mrf.mxu1 }
 0xb79   : > { %v3401_v62 = vadd.f32 %v3384_v39, %v3311_v4  ;;  %v3402_v63 = vadd.f32 %v3397_v42, %v3312_v53 }
 0xb7b   : > { %v3409_v1 = vadd.f32 %v3406_v0, %v3402_v63  ;;  %v3408_v2 = vadd.f32 %v3406_v0, %v3401_v62 }
 0xb7d   : > { %v3412_v5 = vrot.slane %v3409_v1, 7 }
 0xb7f   : > { %v3414_v7 = vsel %vm3413_vm4, %v3408_v2, %v3412_v5 }
 0xb80   : > { %3420 = vst.msk [vmem:[%s331_s24] sm:$0x3] %vm3418_vm8, %v3414_v7  ;;  %v3386_v9 = vpop.f32.mrf.mxu0  ;;  %v3399_v3 = vpop.f32.mrf.mxu1 }
 0xb81 PF: > { %s19_s27 = sadd.s32 1, %s4467_s27  }
 0xb82   : > { %p16_p4 = scmp.ge.s32.totalorder %s19_s27, 4  }
 0xb84   :  { %18 = sbr.rel (!%p16_p4) target bundleno = 1 (0x1), region = 117 }

</bundles_post_ra>
